<compile_context>
chip_gen: v6e
topology: v6e:2x2x1
jax: 0.10.0
libtpu: 0.0.40
codegen_flags: <defaults>
</compile_context>

<pallas_src>
import functools
import numpy as np
import jax
import jax.numpy as jnp
from jax.experimental import pallas as pl
from jax.experimental.pallas import tpu as pltpu


# ---------------------------------------------------------------------------
# Pallas kernels
# ---------------------------------------------------------------------------

def _mm_bias_kernel(a_ref, w_ref, b_ref, o_ref, *, relu):
    acc = jnp.dot(a_ref[...], w_ref[...], preferred_element_type=jnp.float32)
    acc = acc + b_ref[...]
    if relu:
        acc = jnp.maximum(acc, 0.0)
    o_ref[...] = acc.astype(o_ref.dtype)


def _mm_bias_res_kernel(a_ref, w_ref, b_ref, r_ref, o_ref, *, relu):
    acc = jnp.dot(a_ref[...], w_ref[...], preferred_element_type=jnp.float32)
    acc = acc + b_ref[...] + r_ref[...].astype(jnp.float32)
    if relu:
        acc = jnp.maximum(acc, 0.0)
    o_ref[...] = acc.astype(o_ref.dtype)


def _maxpool9_kernel(x00_ref, x01_ref, x10_ref, x11_ref, o_ref):
    # x_pq[b, i, j, c] = xpad[b, 2i+p, 2j+q, c]; each ref is (B, Ho+1, Wo+1, C).
    # out[b,i,j,c] = max over the 3x3 window xpad[2i..2i+2, 2j..2j+2].
    Ho, Wo = o_ref.shape[1], o_ref.shape[2]
    a, b = x00_ref[...], x01_ref[...]
    c, d = x10_ref[...], x11_ref[...]
    m = jnp.maximum(a[:, :Ho, :Wo], b[:, :Ho, :Wo])          # taps (0,0) (0,1)
    m = jnp.maximum(m, a[:, :Ho, 1:Wo + 1])                  # (0,2)
    m = jnp.maximum(m, c[:, :Ho, :Wo])                       # (1,0)
    m = jnp.maximum(m, d[:, :Ho, :Wo])                       # (1,1)
    m = jnp.maximum(m, c[:, :Ho, 1:Wo + 1])                  # (1,2)
    m = jnp.maximum(m, a[:, 1:Ho + 1, :Wo])                  # (2,0)
    m = jnp.maximum(m, b[:, 1:Ho + 1, :Wo])                  # (2,1)
    m = jnp.maximum(m, a[:, 1:Ho + 1, 1:Wo + 1])             # (2,2)
    o_ref[...] = m


# ---------------------------------------------------------------------------
# Kernel wrappers
# ---------------------------------------------------------------------------

# M-tile cap: (A + W + bias + out + residual) blocks, double-buffered, stay far
# below the 32 MiB default scoped-VMEM limit even on v7x (64 MiB physical VMEM).
_TM_MAX = 512


def matmul_fused(a, w, bias, residual=None, relu=False, out_dtype=jnp.bfloat16):
    """out = [relu]( a @ w + bias [+ residual] ), f32 accumulate on the MXU.

    a: (M, K) bf16, w: (K, N) bf16 (BN scale pre-folded into columns),
    bias: (1, N) f32, residual: optional (M, N) added in f32 before the ReLU.
    Tiled over M only (K/N are small and kept resident); the M grid axis is
    "parallel" so v7x shards it across its two TensorCores. A ragged last block
    is safe: rows are independent and out-of-bounds stores are masked.
    """
    M, K = a.shape
    N = w.shape[1]
    tm = M if M <= _TM_MAX else _TM_MAX
    grid = (pl.cdiv(M, tm),)
    in_specs = [
        pl.BlockSpec((tm, K), lambda i: (i, 0)),
        pl.BlockSpec((K, N), lambda i: (0, 0)),
        pl.BlockSpec((1, N), lambda i: (0, 0)),
    ]
    operands = [a, w, bias]
    if residual is None:
        kernel = functools.partial(_mm_bias_kernel, relu=relu)
    else:
        kernel = functools.partial(_mm_bias_res_kernel, relu=relu)
        in_specs.append(pl.BlockSpec((tm, N), lambda i: (i, 0)))
        operands.append(residual)
    return pl.pallas_call(
        kernel,
        out_shape=jax.ShapeDtypeStruct((M, N), out_dtype),
        grid=grid,
        in_specs=in_specs,
        out_specs=pl.BlockSpec((tm, N), lambda i: (i, 0)),
        compiler_params=pltpu.CompilerParams(dimension_semantics=("parallel",)),
    )(*operands)


def maxpool3x3_s2_p1(x):
    """MaxPool2d(kernel=3, stride=2, padding=1) on NHWC input (H, W even)."""
    B, H, W, C = x.shape
    assert H % 2 == 0 and W % 2 == 0
    Ho, Wo = H // 2, W // 2
    xp = jnp.pad(x, ((0, 0), (1, 1), (1, 1), (0, 0)), constant_values=-jnp.inf)

    def parity(p, q):  # xp[:, p::2, q::2, :] restricted to the needed extent
        return jax.lax.slice(xp, (0, p, q, 0),
                             (B, p + 2 * Ho + 1, q + 2 * Wo + 1, C),
                             (1, 2, 2, 1))

    x00, x01, x10, x11 = parity(0, 0), parity(0, 1), parity(1, 0), parity(1, 1)
    return pl.pallas_call(
        _maxpool9_kernel,
        out_shape=jax.ShapeDtypeStruct((B, Ho, Wo, C), x.dtype),
    )(x00, x01, x10, x11)


# ---------------------------------------------------------------------------
# Conv / block / resize built on the kernels
# ---------------------------------------------------------------------------

def conv2d_fused(x, layer, *, stride, padding, relu, pad_value=0.0,
                 residual=None, out_dtype=jnp.bfloat16):
    """NHWC conv + folded-BN bias (+ residual add) (+ ReLU), via im2col + fused matmul."""
    wmat, bias = layer['w'], layer['b']
    kh, kw = layer['kh'], layer['kw']
    B, H, W, C = x.shape
    Ho = (H + 2 * padding - kh) // stride + 1
    Wo = (W + 2 * padding - kw) // stride + 1
    if padding:
        x = jnp.pad(x, ((0, 0), (padding, padding), (padding, padding), (0, 0)),
                    constant_values=pad_value)
    patches = [
        jax.lax.slice(x, (0, i, j, 0),
                      (B, i + stride * (Ho - 1) + 1, j + stride * (Wo - 1) + 1, C),
                      (1, stride, stride, 1))
        for i in range(kh) for j in range(kw)
    ]
    col = patches[0] if len(patches) == 1 else jnp.concatenate(patches, axis=-1)
    a = col.reshape(B * Ho * Wo, kh * kw * C)
    r = None if residual is None else residual.reshape(B * Ho * Wo, wmat.shape[1])
    y = matmul_fused(a, wmat, bias, residual=r, relu=relu, out_dtype=out_dtype)
    return y.reshape(B, Ho, Wo, wmat.shape[1])


def basic_block(x, prep, prefix, stride, downsample):
    if downsample:
        identity = conv2d_fused(x, prep[prefix + '.down'], stride=stride,
                                padding=0, relu=False)
    else:
        identity = x
    out = conv2d_fused(x, prep[prefix + '.conv1'], stride=stride, padding=1,
                       relu=True)
    # conv2 + BN + residual add + ReLU fused into one kernel epilogue.
    return conv2d_fused(out, prep[prefix + '.conv2'], stride=1, padding=1,
                        relu=True, residual=identity)


def _bilinear_matrix(in_size, out_size):
    A = np.zeros((out_size, in_size), np.float32)
    for i in range(out_size):
        src = 0.0 if out_size == 1 else i * (in_size - 1) / (out_size - 1)
        lo = min(int(np.floor(src)), in_size - 1)
        hi = min(lo + 1, in_size - 1)
        frac = src - lo
        A[i, lo] += 1.0 - frac
        A[i, hi] += frac
    return A


def bilinear_resize_to_nchw(x, out_size):
    """F.interpolate(mode='bilinear', align_corners=True): NHWC bf16 -> NCHW f32."""
    B, h, w, C = x.shape
    if h == out_size and w == out_size:
        return jnp.transpose(x, (0, 3, 1, 2)).astype(jnp.float32)
    # Fuse the two separable 1-D interpolations into one (h*w, out*out) Kronecker
    # operator -> a single small MXU matmul, output lands directly in NCHW.
    op = np.kron(_bilinear_matrix(h, out_size), _bilinear_matrix(w, out_size))
    op_t = jnp.asarray(op.T, dtype=jnp.bfloat16)                 # (h*w, out*out)
    xm = jnp.transpose(x, (0, 3, 1, 2)).reshape(B * C, h * w)
    zero_bias = jnp.zeros((1, out_size * out_size), jnp.float32)
    y = matmul_fused(xm, op_t, zero_bias, relu=False, out_dtype=jnp.float32)
    return y.reshape(B, C, out_size, out_size)


# ---------------------------------------------------------------------------
# Parameter preparation (BN / normalisation folding)
# ---------------------------------------------------------------------------

def prepare_params(raw, in_channels):
    """Fold BN scale into (K, O) bf16 weight matrices, BN shift into a (1, O) f32
    bias row, and fold the input normalisation + grayscale repeat into conv1."""
    prep = {}

    def fold(name, w, scale, bias, pre_bias=None):
        O, I, kh, kw = w.shape
        wmat = jnp.transpose(w, (2, 3, 1, 0)).reshape(kh * kw * I, O)
        wmat = wmat * scale[None, :]
        b = bias if pre_bias is None else bias + scale * pre_bias
        prep[name] = dict(w=wmat.astype(jnp.bfloat16),
                          b=b.reshape(1, O).astype(jnp.float32),
                          kh=kh, kw=kw)

    # conv1 sees (x - 0.5) * 2, repeated to 3 channels for grayscale input.
    # Fold: sum over input channels (repeat), *2 and -sum(W) (normalisation).
    # The conv's zero padding of the *normalised* input is reproduced by padding
    # the raw input with 0.5 (2*0.5 - 1 = 0); see the conv1 call's pad_value.
    w1 = raw['conv1.w']
    if in_channels == 1:
        w1 = w1.sum(axis=1, keepdims=True)
    fold('conv1', 2.0 * w1, raw['bn1.s'], raw['bn1.b'],
         pre_bias=-w1.sum(axis=(1, 2, 3)))

    for blk in ('layer1.0', 'layer1.1', 'layer2.0', 'layer2.1'):
        fold(blk + '.conv1', raw[blk + '.conv1.w'], raw[blk + '.bn1.s'], raw[blk + '.bn1.b'])
        fold(blk + '.conv2', raw[blk + '.conv2.w'], raw[blk + '.bn2.s'], raw[blk + '.bn2.b'])
    fold('layer2.0.down', raw['layer2.0.down.w'],
         raw['layer2.0.downbn.s'], raw['layer2.0.downbn.b'])
    return prep


# ---------------------------------------------------------------------------
# Extractor forward (cnn_layers=['layer1','layer2'], keep_feature_prop=1.0)
# ---------------------------------------------------------------------------

def extractor_forward(prep, x):
    """x: NCHW float. Returns NCHW float32 features (B, 64+128, H//4, W//4)."""
    B, _, H, W = x.shape
    featmap_size = H // 4

    h = jnp.transpose(x, (0, 2, 3, 1)).astype(jnp.bfloat16)   # NHWC, bf16

    # layer0: conv7x7/2 (normalisation + repeat + BN + ReLU folded) + maxpool3x3/2.
    h = conv2d_fused(h, prep['conv1'], stride=2, padding=3, relu=True,
                     pad_value=0.5)
    h = maxpool3x3_s2_p1(h)

    # layer1: 2 basic blocks, 64 channels.
    h = basic_block(h, prep, 'layer1.0', 1, False)
    h = basic_block(h, prep, 'layer1.1', 1, False)
    f1 = h
    # layer2: 2 basic blocks, 128 channels (first strided + 1x1 downsample).
    h = basic_block(h, prep, 'layer2.0', 2, True)
    h = basic_block(h, prep, 'layer2.1', 1, False)
    f2 = h

    feats = [bilinear_resize_to_nchw(f, featmap_size) for f in (f1, f2)]
    features = jnp.concatenate(feats, axis=1)
    # feature_mask: uniform_() < keep_feature_prop(=1.0) -> all True -> identity,
    # so the boolean gather is skipped entirely.
    return features


# ---------------------------------------------------------------------------
# Deterministic synthetic parameters (ResNet18 layer0..layer2)
# ---------------------------------------------------------------------------

def init_params(key):
    params = {}
    keys = iter(jax.random.split(key, 64))

    def conv(name, o, i, k):
        params[name + '.w'] = (jax.random.normal(next(keys), (o, i, k, k), jnp.float32)
                               * np.sqrt(2.0 / (i * k * k)))

    def bn(name, c):
        k1, k2, k3, k4 = jax.random.split(next(keys), 4)
        gamma = 1.0 + 0.1 * jax.random.normal(k1, (c,), jnp.float32)
        beta = 0.1 * jax.random.normal(k2, (c,), jnp.float32)
        mean = 0.1 * jax.random.normal(k3, (c,), jnp.float32)
        var = 0.5 + jax.random.uniform(k4, (c,), jnp.float32)
        scale = gamma / jnp.sqrt(var + 1e-5)
        params[name + '.s'] = scale
        params[name + '.b'] = beta - mean * scale

    conv('conv1', 64, 3, 7); bn('bn1', 64)
    for blk in range(2):
        p = f'layer1.{blk}'
        conv(p + '.conv1', 64, 64, 3); bn(p + '.bn1', 64)
        conv(p + '.conv2', 64, 64, 3); bn(p + '.bn2', 64)
    p = 'layer2.0'
    conv(p + '.conv1', 128, 64, 3); bn(p + '.bn1', 128)
    conv(p + '.conv2', 128, 128, 3); bn(p + '.bn2', 128)
    conv(p + '.down', 128, 64, 1); bn(p + '.downbn', 128)
    p = 'layer2.1'
    conv(p + '.conv1', 128, 128, 3); bn(p + '.bn1', 128)
    conv(p + '.conv2', 128, 128, 3); bn(p + '.bn2', 128)
    return params


if __name__ == "__main__":
    key = jax.random.PRNGKey(0)
    kp, kx = jax.random.split(key)
    raw = init_params(kp)

    INP_SIZE = 32  # Extractor(inp_size=32); featmap_size = 8
    x = jax.random.uniform(kx, (2, 1, INP_SIZE, INP_SIZE), jnp.float32)

    prep = prepare_params(raw, in_channels=1)
    fwd = jax.jit(functools.partial(extractor_forward, prep))
    out = fwd(x)
    jax.block_until_ready(out)

    assert out.shape == (2, 64 + 128, INP_SIZE // 4, INP_SIZE // 4), out.shape
    assert out.dtype == jnp.float32
    assert bool(jnp.isfinite(out).all())
    print("KERNEL_OK")
</pallas_src>

<mosaic_0001>
module attributes {stable_mosaic.version = 11 : i64} {
  func.func @_mm_bias_kernel(%arg0: i32, %arg1: memref<512x49xbf16, #tpu.memory_space<vmem>>, %arg2: memref<49x64xbf16, #tpu.memory_space<vmem>>, %arg3: memref<1x64xf32, #tpu.memory_space<vmem>>, %arg4: memref<512x64xbf16, #tpu.memory_space<vmem>>) attributes {dimension_semantics = [#tpu.dimension_semantics<parallel>], iteration_bounds = array<i64: 1>, scalar_prefetch = 0 : i64, scratch_operands = 0 : i64, tpu.core_type = #tpu.core_type<tc>, window_params = [{transform_indices = @transform_0, window_bounds = array<i64: 512, 49>}, {pipeline_mode = #tpu.pipeline_mode<synchronous>, transform_indices = @transform_1, window_bounds = array<i64: 49, 64>}, {pipeline_mode = #tpu.pipeline_mode<synchronous>, transform_indices = @transform_2, window_bounds = array<i64: 1, 64>}, {transform_indices = @transform_3, window_bounds = array<i64: 512, 64>}]} {
    %c0 = arith.constant 0 : index
    %c0_0 = arith.constant 0 : index
    %0 = vector.load %arg1[%c0, %c0_0] : memref<512x49xbf16, #tpu.memory_space<vmem>>, vector<512x49xbf16>
    %c0_1 = arith.constant 0 : index
    %c0_2 = arith.constant 0 : index
    %1 = vector.load %arg2[%c0_1, %c0_2] : memref<49x64xbf16, #tpu.memory_space<vmem>>, vector<49x64xbf16>
    %cst = arith.constant dense<0.000000e+00> : vector<512x64xf32>
    %2 = tpu.matmul %0, %1, %cst {dimension_numbers = #tpu.dot_dimension_numbers<[1], [0], [0], [1], [0, 0, 1, 1], [], []>} : vector<512x49xbf16>, vector<49x64xbf16>, vector<512x64xf32> -> vector<512x64xf32>
    %c0_3 = arith.constant 0 : index
    %c0_4 = arith.constant 0 : index
    %3 = vector.load %arg3[%c0_3, %c0_4] : memref<1x64xf32, #tpu.memory_space<vmem>>, vector<1x64xf32>
    %4 = vector.broadcast %3 : vector<1x64xf32> to vector<512x64xf32>
    %5 = arith.addf %2, %4 : vector<512x64xf32>
    %cst_5 = arith.constant 0.000000e+00 : f32
    %6 = vector.broadcast %cst_5 : f32 to vector<512x64xf32>
    %7 = arith.maximumf %5, %6 : vector<512x64xf32>
    %8 = arith.truncf %7 : vector<512x64xf32> to vector<512x64xbf16>
    %c0_6 = arith.constant 0 : index
    %c0_7 = arith.constant 0 : index
    %9 = vector.load %arg4[%c0_6, %c0_7] : memref<512x64xbf16, #tpu.memory_space<vmem>>, vector<512x64xbf16>
    tpu.vector_store %arg4[%c0_6, %c0_7], %8 {strides = array<i32>} : memref<512x64xbf16, #tpu.memory_space<vmem>>, vector<512x64xbf16>,
    return
  }
  func.func @transform_0(%arg0: i32) -> (i32, i32) {
    %c0_i32 = arith.constant 0 : i32
    %c0_i32_0 = arith.constant 0 : i32
    return %arg0, %c0_i32 : i32, i32
  }
  func.func @transform_1(%arg0: i32) -> (i32, i32) {
    %c0_i32 = arith.constant 0 : i32
    %c0_i32_0 = arith.constant 0 : i32
    %c0_i32_1 = arith.constant 0 : i32
    return %c0_i32, %c0_i32_0 : i32, i32
  }
  func.func @transform_2(%arg0: i32) -> (i32, i32) {
    %c0_i32 = arith.constant 0 : i32
    %c0_i32_0 = arith.constant 0 : i32
    %c0_i32_1 = arith.constant 0 : i32
    return %c0_i32, %c0_i32_0 : i32, i32
  }
  func.func @transform_3(%arg0: i32) -> (i32, i32) {
    %c0_i32 = arith.constant 0 : i32
    %c0_i32_0 = arith.constant 0 : i32
    return %arg0, %c0_i32 : i32, i32
  }
}

module attributes {stable_mosaic.version = 11 : i64} {
  func.func @_maxpool9_kernel(%arg0: memref<2x9x9x64xbf16, #tpu.memory_space<vmem>>, %arg1: memref<2x9x9x64xbf16, #tpu.memory_space<vmem>>, %arg2: memref<2x9x9x64xbf16, #tpu.memory_space<vmem>>, %arg3: memref<2x9x9x64xbf16, #tpu.memory_space<vmem>>, %arg4: memref<2x8x8x64xbf16, #tpu.memory_space<vmem>>) attributes {dimension_semantics = [], scalar_prefetch = 0 : i64, scratch_operands = 0 : i64, tpu.core_type = #tpu.core_type<tc>} {
    %c0 = arith.constant 0 : index
    %c0_0 = arith.constant 0 : index
    %c0_1 = arith.constant 0 : index
    %c0_2 = arith.constant 0 : index
    %0 = vector.load %arg0[%c0, %c0_0, %c0_1, %c0_2] : memref<2x9x9x64xbf16, #tpu.memory_space<vmem>>, vector<2x9x9x64xbf16>
    %c0_3 = arith.constant 0 : index
    %c0_4 = arith.constant 0 : index
    %c0_5 = arith.constant 0 : index
    %c0_6 = arith.constant 0 : index
    %1 = vector.load %arg1[%c0_3, %c0_4, %c0_5, %c0_6] : memref<2x9x9x64xbf16, #tpu.memory_space<vmem>>, vector<2x9x9x64xbf16>
    %c0_7 = arith.constant 0 : index
    %c0_8 = arith.constant 0 : index
    %c0_9 = arith.constant 0 : index
    %c0_10 = arith.constant 0 : index
    %2 = vector.load %arg2[%c0_7, %c0_8, %c0_9, %c0_10] : memref<2x9x9x64xbf16, #tpu.memory_space<vmem>>, vector<2x9x9x64xbf16>
    %c0_11 = arith.constant 0 : index
    %c0_12 = arith.constant 0 : index
    %c0_13 = arith.constant 0 : index
    %c0_14 = arith.constant 0 : index
    %3 = vector.load %arg3[%c0_11, %c0_12, %c0_13, %c0_14] : memref<2x9x9x64xbf16, #tpu.memory_space<vmem>>, vector<2x9x9x64xbf16>
    %4 = vector.extract_strided_slice %0 {offsets = [0, 0, 0, 0], sizes = [2, 8, 8, 64], strides = [1, 1, 1, 1]} : vector<2x9x9x64xbf16> to vector<2x8x8x64xbf16>
    %5 = vector.extract_strided_slice %1 {offsets = [0, 0, 0, 0], sizes = [2, 8, 8, 64], strides = [1, 1, 1, 1]} : vector<2x9x9x64xbf16> to vector<2x8x8x64xbf16>
    %6 = arith.maximumf %4, %5 : vector<2x8x8x64xbf16>
    %7 = vector.extract_strided_slice %0 {offsets = [0, 0, 1, 0], sizes = [2, 8, 8, 64], strides = [1, 1, 1, 1]} : vector<2x9x9x64xbf16> to vector<2x8x8x64xbf16>
    %8 = arith.maximumf %6, %7 : vector<2x8x8x64xbf16>
    %9 = vector.extract_strided_slice %2 {offsets = [0, 0, 0, 0], sizes = [2, 8, 8, 64], strides = [1, 1, 1, 1]} : vector<2x9x9x64xbf16> to vector<2x8x8x64xbf16>
    %10 = arith.maximumf %8, %9 : vector<2x8x8x64xbf16>
    %11 = vector.extract_strided_slice %3 {offsets = [0, 0, 0, 0], sizes = [2, 8, 8, 64], strides = [1, 1, 1, 1]} : vector<2x9x9x64xbf16> to vector<2x8x8x64xbf16>
    %12 = arith.maximumf %10, %11 : vector<2x8x8x64xbf16>
    %13 = vector.extract_strided_slice %2 {offsets = [0, 0, 1, 0], sizes = [2, 8, 8, 64], strides = [1, 1, 1, 1]} : vector<2x9x9x64xbf16> to vector<2x8x8x64xbf16>
    %14 = arith.maximumf %12, %13 : vector<2x8x8x64xbf16>
    %15 = vector.extract_strided_slice %0 {offsets = [0, 1, 0, 0], sizes = [2, 8, 8, 64], strides = [1, 1, 1, 1]} : vector<2x9x9x64xbf16> to vector<2x8x8x64xbf16>
    %16 = arith.maximumf %14, %15 : vector<2x8x8x64xbf16>
    %17 = vector.extract_strided_slice %1 {offsets = [0, 1, 0, 0], sizes = [2, 8, 8, 64], strides = [1, 1, 1, 1]} : vector<2x9x9x64xbf16> to vector<2x8x8x64xbf16>
    %18 = arith.maximumf %16, %17 : vector<2x8x8x64xbf16>
    %19 = vector.extract_strided_slice %0 {offsets = [0, 1, 1, 0], sizes = [2, 8, 8, 64], strides = [1, 1, 1, 1]} : vector<2x9x9x64xbf16> to vector<2x8x8x64xbf16>
    %20 = arith.maximumf %18, %19 : vector<2x8x8x64xbf16>
    %c0_15 = arith.constant 0 : index
    %c0_16 = arith.constant 0 : index
    %c0_17 = arith.constant 0 : index
    %c0_18 = arith.constant 0 : index
    %21 = vector.load %arg4[%c0_15, %c0_16, %c0_17, %c0_18] : memref<2x8x8x64xbf16, #tpu.memory_space<vmem>>, vector<2x8x8x64xbf16>
    tpu.vector_store %arg4[%c0_15, %c0_16, %c0_17, %c0_18], %20 {strides = array<i32>} : memref<2x8x8x64xbf16, #tpu.memory_space<vmem>>, vector<2x8x8x64xbf16>,
    return
  }
}

module attributes {stable_mosaic.version = 11 : i64} {
  func.func @_mm_bias_kernel(%arg0: i32, %arg1: memref<128x576xbf16, #tpu.memory_space<vmem>>, %arg2: memref<576x64xbf16, #tpu.memory_space<vmem>>, %arg3: memref<1x64xf32, #tpu.memory_space<vmem>>, %arg4: memref<128x64xbf16, #tpu.memory_space<vmem>>) attributes {dimension_semantics = [#tpu.dimension_semantics<parallel>], iteration_bounds = array<i64: 1>, scalar_prefetch = 0 : i64, scratch_operands = 0 : i64, tpu.core_type = #tpu.core_type<tc>, window_params = [{transform_indices = @transform_0, window_bounds = array<i64: 128, 576>}, {pipeline_mode = #tpu.pipeline_mode<synchronous>, transform_indices = @transform_1, window_bounds = array<i64: 576, 64>}, {pipeline_mode = #tpu.pipeline_mode<synchronous>, transform_indices = @transform_2, window_bounds = array<i64: 1, 64>}, {transform_indices = @transform_3, window_bounds = array<i64: 128, 64>}]} {
    %c0 = arith.constant 0 : index
    %c0_0 = arith.constant 0 : index
    %0 = vector.load %arg1[%c0, %c0_0] : memref<128x576xbf16, #tpu.memory_space<vmem>>, vector<128x576xbf16>
    %c0_1 = arith.constant 0 : index
    %c0_2 = arith.constant 0 : index
    %1 = vector.load %arg2[%c0_1, %c0_2] : memref<576x64xbf16, #tpu.memory_space<vmem>>, vector<576x64xbf16>
    %cst = arith.constant dense<0.000000e+00> : vector<128x64xf32>
    %2 = tpu.matmul %0, %1, %cst {dimension_numbers = #tpu.dot_dimension_numbers<[1], [0], [0], [1], [0, 0, 1, 1], [], []>} : vector<128x576xbf16>, vector<576x64xbf16>, vector<128x64xf32> -> vector<128x64xf32>
    %c0_3 = arith.constant 0 : index
    %c0_4 = arith.constant 0 : index
    %3 = vector.load %arg3[%c0_3, %c0_4] : memref<1x64xf32, #tpu.memory_space<vmem>>, vector<1x64xf32>
    %4 = vector.broadcast %3 : vector<1x64xf32> to vector<128x64xf32>
    %5 = arith.addf %2, %4 : vector<128x64xf32>
    %cst_5 = arith.constant 0.000000e+00 : f32
    %6 = vector.broadcast %cst_5 : f32 to vector<128x64xf32>
    %7 = arith.maximumf %5, %6 : vector<128x64xf32>
    %8 = arith.truncf %7 : vector<128x64xf32> to vector<128x64xbf16>
    %c0_6 = arith.constant 0 : index
    %c0_7 = arith.constant 0 : index
    %9 = vector.load %arg4[%c0_6, %c0_7] : memref<128x64xbf16, #tpu.memory_space<vmem>>, vector<128x64xbf16>
    tpu.vector_store %arg4[%c0_6, %c0_7], %8 {strides = array<i32>} : memref<128x64xbf16, #tpu.memory_space<vmem>>, vector<128x64xbf16>,
    return
  }
  func.func @transform_0(%arg0: i32) -> (i32, i32) {
    %c0_i32 = arith.constant 0 : i32
    %c0_i32_0 = arith.constant 0 : i32
    return %arg0, %c0_i32 : i32, i32
  }
  func.func @transform_1(%arg0: i32) -> (i32, i32) {
    %c0_i32 = arith.constant 0 : i32
    %c0_i32_0 = arith.constant 0 : i32
    %c0_i32_1 = arith.constant 0 : i32
    return %c0_i32, %c0_i32_0 : i32, i32
  }
  func.func @transform_2(%arg0: i32) -> (i32, i32) {
    %c0_i32 = arith.constant 0 : i32
    %c0_i32_0 = arith.constant 0 : i32
    %c0_i32_1 = arith.constant 0 : i32
    return %c0_i32, %c0_i32_0 : i32, i32
  }
  func.func @transform_3(%arg0: i32) -> (i32, i32) {
    %c0_i32 = arith.constant 0 : i32
    %c0_i32_0 = arith.constant 0 : i32
    return %arg0, %c0_i32 : i32, i32
  }
}

module attributes {stable_mosaic.version = 11 : i64} {
  func.func @_mm_bias_res_kernel(%arg0: i32, %arg1: memref<128x576xbf16, #tpu.memory_space<vmem>>, %arg2: memref<576x64xbf16, #tpu.memory_space<vmem>>, %arg3: memref<1x64xf32, #tpu.memory_space<vmem>>, %arg4: memref<128x64xbf16, #tpu.memory_space<vmem>>, %arg5: memref<128x64xbf16, #tpu.memory_space<vmem>>) attributes {dimension_semantics = [#tpu.dimension_semantics<parallel>], iteration_bounds = array<i64: 1>, scalar_prefetch = 0 : i64, scratch_operands = 0 : i64, tpu.core_type = #tpu.core_type<tc>, window_params = [{transform_indices = @transform_0, window_bounds = array<i64: 128, 576>}, {pipeline_mode = #tpu.pipeline_mode<synchronous>, transform_indices = @transform_1, window_bounds = array<i64: 576, 64>}, {pipeline_mode = #tpu.pipeline_mode<synchronous>, transform_indices = @transform_2, window_bounds = array<i64: 1, 64>}, {transform_indices = @transform_3, window_bounds = array<i64: 128, 64>}, {transform_indices = @transform_4, window_bounds = array<i64: 128, 64>}]} {
    %c0 = arith.constant 0 : index
    %c0_0 = arith.constant 0 : index
    %0 = vector.load %arg1[%c0, %c0_0] : memref<128x576xbf16, #tpu.memory_space<vmem>>, vector<128x576xbf16>
    %c0_1 = arith.constant 0 : index
    %c0_2 = arith.constant 0 : index
    %1 = vector.load %arg2[%c0_1, %c0_2] : memref<576x64xbf16, #tpu.memory_space<vmem>>, vector<576x64xbf16>
    %cst = arith.constant dense<0.000000e+00> : vector<128x64xf32>
    %2 = tpu.matmul %0, %1, %cst {dimension_numbers = #tpu.dot_dimension_numbers<[1], [0], [0], [1], [0, 0, 1, 1], [], []>} : vector<128x576xbf16>, vector<576x64xbf16>, vector<128x64xf32> -> vector<128x64xf32>
    %c0_3 = arith.constant 0 : index
    %c0_4 = arith.constant 0 : index
    %3 = vector.load %arg3[%c0_3, %c0_4] : memref<1x64xf32, #tpu.memory_space<vmem>>, vector<1x64xf32>
    %4 = vector.broadcast %3 : vector<1x64xf32> to vector<128x64xf32>
    %5 = arith.addf %2, %4 : vector<128x64xf32>
    %c0_5 = arith.constant 0 : index
    %c0_6 = arith.constant 0 : index
    %6 = vector.load %arg4[%c0_5, %c0_6] : memref<128x64xbf16, #tpu.memory_space<vmem>>, vector<128x64xbf16>
    %7 = arith.extf %6 : vector<128x64xbf16> to vector<128x64xf32>
    %8 = arith.addf %5, %7 : vector<128x64xf32>
    %cst_7 = arith.constant 0.000000e+00 : f32
    %9 = vector.broadcast %cst_7 : f32 to vector<128x64xf32>
    %10 = arith.maximumf %8, %9 : vector<128x64xf32>
    %11 = arith.truncf %10 : vector<128x64xf32> to vector<128x64xbf16>
    %c0_8 = arith.constant 0 : index
    %c0_9 = arith.constant 0 : index
    %12 = vector.load %arg5[%c0_8, %c0_9] : memref<128x64xbf16, #tpu.memory_space<vmem>>, vector<128x64xbf16>
    tpu.vector_store %arg5[%c0_8, %c0_9], %11 {strides = array<i32>} : memref<128x64xbf16, #tpu.memory_space<vmem>>, vector<128x64xbf16>,
    return
  }
  func.func @transform_0(%arg0: i32) -> (i32, i32) {
    %c0_i32 = arith.constant 0 : i32
    %c0_i32_0 = arith.constant 0 : i32
    return %arg0, %c0_i32 : i32, i32
  }
  func.func @transform_1(%arg0: i32) -> (i32, i32) {
    %c0_i32 = arith.constant 0 : i32
    %c0_i32_0 = arith.constant 0 : i32
    %c0_i32_1 = arith.constant 0 : i32
    return %c0_i32, %c0_i32_0 : i32, i32
  }
  func.func @transform_2(%arg0: i32) -> (i32, i32) {
    %c0_i32 = arith.constant 0 : i32
    %c0_i32_0 = arith.constant 0 : i32
    %c0_i32_1 = arith.constant 0 : i32
    return %c0_i32, %c0_i32_0 : i32, i32
  }
  func.func @transform_3(%arg0: i32) -> (i32, i32) {
    %c0_i32 = arith.constant 0 : i32
    %c0_i32_0 = arith.constant 0 : i32
    return %arg0, %c0_i32 : i32, i32
  }
  func.func @transform_4(%arg0: i32) -> (i32, i32) {
    %c0_i32 = arith.constant 0 : i32
    %c0_i32_0 = arith.constant 0 : i32
    return %arg0, %c0_i32 : i32, i32
  }
}

module attributes {stable_mosaic.version = 11 : i64} {
  func.func @_mm_bias_kernel(%arg0: i32, %arg1: memref<32x576xbf16, #tpu.memory_space<vmem>>, %arg2: memref<576x128xbf16, #tpu.memory_space<vmem>>, %arg3: memref<1x128xf32, #tpu.memory_space<vmem>>, %arg4: memref<32x128xbf16, #tpu.memory_space<vmem>>) attributes {dimension_semantics = [#tpu.dimension_semantics<parallel>], iteration_bounds = array<i64: 1>, scalar_prefetch = 0 : i64, scratch_operands = 0 : i64, tpu.core_type = #tpu.core_type<tc>, window_params = [{transform_indices = @transform_0, window_bounds = array<i64: 32, 576>}, {pipeline_mode = #tpu.pipeline_mode<synchronous>, transform_indices = @transform_1, window_bounds = array<i64: 576, 128>}, {pipeline_mode = #tpu.pipeline_mode<synchronous>, transform_indices = @transform_2, window_bounds = array<i64: 1, 128>}, {transform_indices = @transform_3, window_bounds = array<i64: 32, 128>}]} {
    %c0 = arith.constant 0 : index
    %c0_0 = arith.constant 0 : index
    %0 = vector.load %arg1[%c0, %c0_0] : memref<32x576xbf16, #tpu.memory_space<vmem>>, vector<32x576xbf16>
    %c0_1 = arith.constant 0 : index
    %c0_2 = arith.constant 0 : index
    %1 = vector.load %arg2[%c0_1, %c0_2] : memref<576x128xbf16, #tpu.memory_space<vmem>>, vector<576x128xbf16>
    %cst = arith.constant dense<0.000000e+00> : vector<32x128xf32>
    %2 = tpu.matmul %0, %1, %cst {dimension_numbers = #tpu.dot_dimension_numbers<[1], [0], [0], [1], [0, 0, 1, 1], [], []>} : vector<32x576xbf16>, vector<576x128xbf16>, vector<32x128xf32> -> vector<32x128xf32>
    %c0_3 = arith.constant 0 : index
    %c0_4 = arith.constant 0 : index
    %3 = vector.load %arg3[%c0_3, %c0_4] : memref<1x128xf32, #tpu.memory_space<vmem>>, vector<1x128xf32>
    %4 = vector.broadcast %3 : vector<1x128xf32> to vector<32x128xf32>
    %5 = arith.addf %2, %4 : vector<32x128xf32>
    %cst_5 = arith.constant 0.000000e+00 : f32
    %6 = vector.broadcast %cst_5 : f32 to vector<32x128xf32>
    %7 = arith.maximumf %5, %6 : vector<32x128xf32>
    %8 = arith.truncf %7 : vector<32x128xf32> to vector<32x128xbf16>
    %c0_6 = arith.constant 0 : index
    %c0_7 = arith.constant 0 : index
    %9 = vector.load %arg4[%c0_6, %c0_7] : memref<32x128xbf16, #tpu.memory_space<vmem>>, vector<32x128xbf16>
    tpu.vector_store %arg4[%c0_6, %c0_7], %8 {strides = array<i32>} : memref<32x128xbf16, #tpu.memory_space<vmem>>, vector<32x128xbf16>,
    return
  }
  func.func @transform_0(%arg0: i32) -> (i32, i32) {
    %c0_i32 = arith.constant 0 : i32
    %c0_i32_0 = arith.constant 0 : i32
    return %arg0, %c0_i32 : i32, i32
  }
  func.func @transform_1(%arg0: i32) -> (i32, i32) {
    %c0_i32 = arith.constant 0 : i32
    %c0_i32_0 = arith.constant 0 : i32
    %c0_i32_1 = arith.constant 0 : i32
    return %c0_i32, %c0_i32_0 : i32, i32
  }
  func.func @transform_2(%arg0: i32) -> (i32, i32) {
    %c0_i32 = arith.constant 0 : i32
    %c0_i32_0 = arith.constant 0 : i32
    %c0_i32_1 = arith.constant 0 : i32
    return %c0_i32, %c0_i32_0 : i32, i32
  }
  func.func @transform_3(%arg0: i32) -> (i32, i32) {
    %c0_i32 = arith.constant 0 : i32
    %c0_i32_0 = arith.constant 0 : i32
    return %arg0, %c0_i32 : i32, i32
  }
}

module attributes {stable_mosaic.version = 11 : i64} {
  func.func @_mm_bias_kernel(%arg0: i32, %arg1: memref<32x64xbf16, #tpu.memory_space<vmem>>, %arg2: memref<64x128xbf16, #tpu.memory_space<vmem>>, %arg3: memref<1x128xf32, #tpu.memory_space<vmem>>, %arg4: memref<32x128xbf16, #tpu.memory_space<vmem>>) attributes {dimension_semantics = [#tpu.dimension_semantics<parallel>], iteration_bounds = array<i64: 1>, scalar_prefetch = 0 : i64, scratch_operands = 0 : i64, tpu.core_type = #tpu.core_type<tc>, window_params = [{transform_indices = @transform_0, window_bounds = array<i64: 32, 64>}, {pipeline_mode = #tpu.pipeline_mode<synchronous>, transform_indices = @transform_1, window_bounds = array<i64: 64, 128>}, {pipeline_mode = #tpu.pipeline_mode<synchronous>, transform_indices = @transform_2, window_bounds = array<i64: 1, 128>}, {transform_indices = @transform_3, window_bounds = array<i64: 32, 128>}]} {
    %c0 = arith.constant 0 : index
    %c0_0 = arith.constant 0 : index
    %0 = vector.load %arg1[%c0, %c0_0] : memref<32x64xbf16, #tpu.memory_space<vmem>>, vector<32x64xbf16>
    %c0_1 = arith.constant 0 : index
    %c0_2 = arith.constant 0 : index
    %1 = vector.load %arg2[%c0_1, %c0_2] : memref<64x128xbf16, #tpu.memory_space<vmem>>, vector<64x128xbf16>
    %cst = arith.constant dense<0.000000e+00> : vector<32x128xf32>
    %2 = tpu.matmul %0, %1, %cst {dimension_numbers = #tpu.dot_dimension_numbers<[1], [0], [0], [1], [0, 0, 1, 1], [], []>} : vector<32x64xbf16>, vector<64x128xbf16>, vector<32x128xf32> -> vector<32x128xf32>
    %c0_3 = arith.constant 0 : index
    %c0_4 = arith.constant 0 : index
    %3 = vector.load %arg3[%c0_3, %c0_4] : memref<1x128xf32, #tpu.memory_space<vmem>>, vector<1x128xf32>
    %4 = vector.broadcast %3 : vector<1x128xf32> to vector<32x128xf32>
    %5 = arith.addf %2, %4 : vector<32x128xf32>
    %6 = arith.truncf %5 : vector<32x128xf32> to vector<32x128xbf16>
    %c0_5 = arith.constant 0 : index
    %c0_6 = arith.constant 0 : index
    %7 = vector.load %arg4[%c0_5, %c0_6] : memref<32x128xbf16, #tpu.memory_space<vmem>>, vector<32x128xbf16>
    tpu.vector_store %arg4[%c0_5, %c0_6], %6 {strides = array<i32>} : memref<32x128xbf16, #tpu.memory_space<vmem>>, vector<32x128xbf16>,
    return
  }
  func.func @transform_0(%arg0: i32) -> (i32, i32) {
    %c0_i32 = arith.constant 0 : i32
    %c0_i32_0 = arith.constant 0 : i32
    return %arg0, %c0_i32 : i32, i32
  }
  func.func @transform_1(%arg0: i32) -> (i32, i32) {
    %c0_i32 = arith.constant 0 : i32
    %c0_i32_0 = arith.constant 0 : i32
    %c0_i32_1 = arith.constant 0 : i32
    return %c0_i32, %c0_i32_0 : i32, i32
  }
  func.func @transform_2(%arg0: i32) -> (i32, i32) {
    %c0_i32 = arith.constant 0 : i32
    %c0_i32_0 = arith.constant 0 : i32
    %c0_i32_1 = arith.constant 0 : i32
    return %c0_i32, %c0_i32_0 : i32, i32
  }
  func.func @transform_3(%arg0: i32) -> (i32, i32) {
    %c0_i32 = arith.constant 0 : i32
    %c0_i32_0 = arith.constant 0 : i32
    return %arg0, %c0_i32 : i32, i32
  }
}

module attributes {stable_mosaic.version = 11 : i64} {
  func.func @_mm_bias_kernel(%arg0: i32, %arg1: memref<32x1152xbf16, #tpu.memory_space<vmem>>, %arg2: memref<1152x128xbf16, #tpu.memory_space<vmem>>, %arg3: memref<1x128xf32, #tpu.memory_space<vmem>>, %arg4: memref<32x128xbf16, #tpu.memory_space<vmem>>) attributes {dimension_semantics = [#tpu.dimension_semantics<parallel>], iteration_bounds = array<i64: 1>, scalar_prefetch = 0 : i64, scratch_operands = 0 : i64, tpu.core_type = #tpu.core_type<tc>, window_params = [{transform_indices = @transform_0, window_bounds = array<i64: 32, 1152>}, {pipeline_mode = #tpu.pipeline_mode<synchronous>, transform_indices = @transform_1, window_bounds = array<i64: 1152, 128>}, {pipeline_mode = #tpu.pipeline_mode<synchronous>, transform_indices = @transform_2, window_bounds = array<i64: 1, 128>}, {transform_indices = @transform_3, window_bounds = array<i64: 32, 128>}]} {
    %c0 = arith.constant 0 : index
    %c0_0 = arith.constant 0 : index
    %0 = vector.load %arg1[%c0, %c0_0] : memref<32x1152xbf16, #tpu.memory_space<vmem>>, vector<32x1152xbf16>
    %c0_1 = arith.constant 0 : index
    %c0_2 = arith.constant 0 : index
    %1 = vector.load %arg2[%c0_1, %c0_2] : memref<1152x128xbf16, #tpu.memory_space<vmem>>, vector<1152x128xbf16>
    %cst = arith.constant dense<0.000000e+00> : vector<32x128xf32>
    %2 = tpu.matmul %0, %1, %cst {dimension_numbers = #tpu.dot_dimension_numbers<[1], [0], [0], [1], [0, 0, 1, 1], [], []>} : vector<32x1152xbf16>, vector<1152x128xbf16>, vector<32x128xf32> -> vector<32x128xf32>
    %c0_3 = arith.constant 0 : index
    %c0_4 = arith.constant 0 : index
    %3 = vector.load %arg3[%c0_3, %c0_4] : memref<1x128xf32, #tpu.memory_space<vmem>>, vector<1x128xf32>
    %4 = vector.broadcast %3 : vector<1x128xf32> to vector<32x128xf32>
    %5 = arith.addf %2, %4 : vector<32x128xf32>
    %cst_5 = arith.constant 0.000000e+00 : f32
    %6 = vector.broadcast %cst_5 : f32 to vector<32x128xf32>
    %7 = arith.maximumf %5, %6 : vector<32x128xf32>
    %8 = arith.truncf %7 : vector<32x128xf32> to vector<32x128xbf16>
    %c0_6 = arith.constant 0 : index
    %c0_7 = arith.constant 0 : index
    %9 = vector.load %arg4[%c0_6, %c0_7] : memref<32x128xbf16, #tpu.memory_space<vmem>>, vector<32x128xbf16>
    tpu.vector_store %arg4[%c0_6, %c0_7], %8 {strides = array<i32>} : memref<32x128xbf16, #tpu.memory_space<vmem>>, vector<32x128xbf16>,
    return
  }
  func.func @transform_0(%arg0: i32) -> (i32, i32) {
    %c0_i32 = arith.constant 0 : i32
    %c0_i32_0 = arith.constant 0 : i32
    return %arg0, %c0_i32 : i32, i32
  }
  func.func @transform_1(%arg0: i32) -> (i32, i32) {
    %c0_i32 = arith.constant 0 : i32
    %c0_i32_0 = arith.constant 0 : i32
    %c0_i32_1 = arith.constant 0 : i32
    return %c0_i32, %c0_i32_0 : i32, i32
  }
  func.func @transform_2(%arg0: i32) -> (i32, i32) {
    %c0_i32 = arith.constant 0 : i32
    %c0_i32_0 = arith.constant 0 : i32
    %c0_i32_1 = arith.constant 0 : i32
    return %c0_i32, %c0_i32_0 : i32, i32
  }
  func.func @transform_3(%arg0: i32) -> (i32, i32) {
    %c0_i32 = arith.constant 0 : i32
    %c0_i32_0 = arith.constant 0 : i32
    return %arg0, %c0_i32 : i32, i32
  }
}

module attributes {stable_mosaic.version = 11 : i64} {
  func.func @_mm_bias_res_kernel(%arg0: i32, %arg1: memref<32x1152xbf16, #tpu.memory_space<vmem>>, %arg2: memref<1152x128xbf16, #tpu.memory_space<vmem>>, %arg3: memref<1x128xf32, #tpu.memory_space<vmem>>, %arg4: memref<32x128xbf16, #tpu.memory_space<vmem>>, %arg5: memref<32x128xbf16, #tpu.memory_space<vmem>>) attributes {dimension_semantics = [#tpu.dimension_semantics<parallel>], iteration_bounds = array<i64: 1>, scalar_prefetch = 0 : i64, scratch_operands = 0 : i64, tpu.core_type = #tpu.core_type<tc>, window_params = [{transform_indices = @transform_0, window_bounds = array<i64: 32, 1152>}, {pipeline_mode = #tpu.pipeline_mode<synchronous>, transform_indices = @transform_1, window_bounds = array<i64: 1152, 128>}, {pipeline_mode = #tpu.pipeline_mode<synchronous>, transform_indices = @transform_2, window_bounds = array<i64: 1, 128>}, {transform_indices = @transform_3, window_bounds = array<i64: 32, 128>}, {transform_indices = @transform_4, window_bounds = array<i64: 32, 128>}]} {
    %c0 = arith.constant 0 : index
    %c0_0 = arith.constant 0 : index
    %0 = vector.load %arg1[%c0, %c0_0] : memref<32x1152xbf16, #tpu.memory_space<vmem>>, vector<32x1152xbf16>
    %c0_1 = arith.constant 0 : index
    %c0_2 = arith.constant 0 : index
    %1 = vector.load %arg2[%c0_1, %c0_2] : memref<1152x128xbf16, #tpu.memory_space<vmem>>, vector<1152x128xbf16>
    %cst = arith.constant dense<0.000000e+00> : vector<32x128xf32>
    %2 = tpu.matmul %0, %1, %cst {dimension_numbers = #tpu.dot_dimension_numbers<[1], [0], [0], [1], [0, 0, 1, 1], [], []>} : vector<32x1152xbf16>, vector<1152x128xbf16>, vector<32x128xf32> -> vector<32x128xf32>
    %c0_3 = arith.constant 0 : index
    %c0_4 = arith.constant 0 : index
    %3 = vector.load %arg3[%c0_3, %c0_4] : memref<1x128xf32, #tpu.memory_space<vmem>>, vector<1x128xf32>
    %4 = vector.broadcast %3 : vector<1x128xf32> to vector<32x128xf32>
    %5 = arith.addf %2, %4 : vector<32x128xf32>
    %c0_5 = arith.constant 0 : index
    %c0_6 = arith.constant 0 : index
    %6 = vector.load %arg4[%c0_5, %c0_6] : memref<32x128xbf16, #tpu.memory_space<vmem>>, vector<32x128xbf16>
    %7 = arith.extf %6 : vector<32x128xbf16> to vector<32x128xf32>
    %8 = arith.addf %5, %7 : vector<32x128xf32>
    %cst_7 = arith.constant 0.000000e+00 : f32
    %9 = vector.broadcast %cst_7 : f32 to vector<32x128xf32>
    %10 = arith.maximumf %8, %9 : vector<32x128xf32>
    %11 = arith.truncf %10 : vector<32x128xf32> to vector<32x128xbf16>
    %c0_8 = arith.constant 0 : index
    %c0_9 = arith.constant 0 : index
    %12 = vector.load %arg5[%c0_8, %c0_9] : memref<32x128xbf16, #tpu.memory_space<vmem>>, vector<32x128xbf16>
    tpu.vector_store %arg5[%c0_8, %c0_9], %11 {strides = array<i32>} : memref<32x128xbf16, #tpu.memory_space<vmem>>, vector<32x128xbf16>,
    return
  }
  func.func @transform_0(%arg0: i32) -> (i32, i32) {
    %c0_i32 = arith.constant 0 : i32
    %c0_i32_0 = arith.constant 0 : i32
    return %arg0, %c0_i32 : i32, i32
  }
  func.func @transform_1(%arg0: i32) -> (i32, i32) {
    %c0_i32 = arith.constant 0 : i32
    %c0_i32_0 = arith.constant 0 : i32
    %c0_i32_1 = arith.constant 0 : i32
    return %c0_i32, %c0_i32_0 : i32, i32
  }
  func.func @transform_2(%arg0: i32) -> (i32, i32) {
    %c0_i32 = arith.constant 0 : i32
    %c0_i32_0 = arith.constant 0 : i32
    %c0_i32_1 = arith.constant 0 : i32
    return %c0_i32, %c0_i32_0 : i32, i32
  }
  func.func @transform_3(%arg0: i32) -> (i32, i32) {
    %c0_i32 = arith.constant 0 : i32
    %c0_i32_0 = arith.constant 0 : i32
    return %arg0, %c0_i32 : i32, i32
  }
  func.func @transform_4(%arg0: i32) -> (i32, i32) {
    %c0_i32 = arith.constant 0 : i32
    %c0_i32_0 = arith.constant 0 : i32
    return %arg0, %c0_i32 : i32, i32
  }
}

module attributes {stable_mosaic.version = 11 : i64} {
  func.func @_mm_bias_kernel(%arg0: i32, %arg1: memref<256x16xbf16, #tpu.memory_space<vmem>>, %arg2: memref<16x64xbf16, #tpu.memory_space<vmem>>, %arg3: memref<1x64xf32, #tpu.memory_space<vmem>>, %arg4: memref<256x64xf32, #tpu.memory_space<vmem>>) attributes {dimension_semantics = [#tpu.dimension_semantics<parallel>], iteration_bounds = array<i64: 1>, scalar_prefetch = 0 : i64, scratch_operands = 0 : i64, tpu.core_type = #tpu.core_type<tc>, window_params = [{transform_indices = @transform_0, window_bounds = array<i64: 256, 16>}, {pipeline_mode = #tpu.pipeline_mode<synchronous>, transform_indices = @transform_1, window_bounds = array<i64: 16, 64>}, {pipeline_mode = #tpu.pipeline_mode<synchronous>, transform_indices = @transform_2, window_bounds = array<i64: 1, 64>}, {transform_indices = @transform_3, window_bounds = array<i64: 256, 64>}]} {
    %c0 = arith.constant 0 : index
    %c0_0 = arith.constant 0 : index
    %0 = vector.load %arg1[%c0, %c0_0] : memref<256x16xbf16, #tpu.memory_space<vmem>>, vector<256x16xbf16>
    %c0_1 = arith.constant 0 : index
    %c0_2 = arith.constant 0 : index
    %1 = vector.load %arg2[%c0_1, %c0_2] : memref<16x64xbf16, #tpu.memory_space<vmem>>, vector<16x64xbf16>
    %cst = arith.constant dense<0.000000e+00> : vector<256x64xf32>
    %2 = tpu.matmul %0, %1, %cst {dimension_numbers = #tpu.dot_dimension_numbers<[1], [0], [0], [1], [0, 0, 1, 1], [], []>} : vector<256x16xbf16>, vector<16x64xbf16>, vector<256x64xf32> -> vector<256x64xf32>
    %c0_3 = arith.constant 0 : index
    %c0_4 = arith.constant 0 : index
    %3 = vector.load %arg3[%c0_3, %c0_4] : memref<1x64xf32, #tpu.memory_space<vmem>>, vector<1x64xf32>
    %4 = vector.broadcast %3 : vector<1x64xf32> to vector<256x64xf32>
    %5 = arith.addf %2, %4 : vector<256x64xf32>
    %c0_5 = arith.constant 0 : index
    %c0_6 = arith.constant 0 : index
    %6 = vector.load %arg4[%c0_5, %c0_6] : memref<256x64xf32, #tpu.memory_space<vmem>>, vector<256x64xf32>
    tpu.vector_store %arg4[%c0_5, %c0_6], %5 {strides = array<i32>} : memref<256x64xf32, #tpu.memory_space<vmem>>, vector<256x64xf32>,
    return
  }
  func.func @transform_0(%arg0: i32) -> (i32, i32) {
    %c0_i32 = arith.constant 0 : i32
    %c0_i32_0 = arith.constant 0 : i32
    return %arg0, %c0_i32 : i32, i32
  }
  func.func @transform_1(%arg0: i32) -> (i32, i32) {
    %c0_i32 = arith.constant 0 : i32
    %c0_i32_0 = arith.constant 0 : i32
    %c0_i32_1 = arith.constant 0 : i32
    return %c0_i32, %c0_i32_0 : i32, i32
  }
  func.func @transform_2(%arg0: i32) -> (i32, i32) {
    %c0_i32 = arith.constant 0 : i32
    %c0_i32_0 = arith.constant 0 : i32
    %c0_i32_1 = arith.constant 0 : i32
    return %c0_i32, %c0_i32_0 : i32, i32
  }
  func.func @transform_3(%arg0: i32) -> (i32, i32) {
    %c0_i32 = arith.constant 0 : i32
    %c0_i32_0 = arith.constant 0 : i32
    return %arg0, %c0_i32 : i32, i32
  }
}

</mosaic_0001>

<bundles_post_ra>
// kernel: extractor_forward.12
= control target key start
LH: loop header
LB: loop body
LE: loop exit
PB: predicated region body
PF: predicated region fallthrough
CT: control target
= control target key end

     0   :  { %vm371_vm0 = vcmask 1040384   ;;  %v1405_v1 = vmov 0   ;;  %vm274_vm1 = vcmask 400384   ;;  %vm986_vm2 = vcmask 519168   ;;  %s1891_s1 = inlined_call_operand.vmem [shape: bf16[49,64], index: 1, kind: input, shape index: {}]   ;;  %s1892_s0 = inlined_call_operand.vmem [shape: bf16[512,49], index: 0, kind: input, shape index: {}]   ;;  %s1893_s2 = inlined_call_operand.vmem [shape: f32[1,64], index: 2, kind: input, shape index: {}]   ;;  %s1894_s3 = inlined_call_operand.vmem [shape: bf16[512,64], index: 3, kind: output, shape index: {}]  }
   0x1   :  { %v1369_v0 = vld [vmem:[%s1891_s1 + $0x18] ss:$0 sps:$4 sm:$0x11]   ;;  %v373_v2 = vsel %vm371_vm0, 65535, %v1405_v1  ;;  %v1370_v4 = vld [vmem:[%s1891_s1 + $0x10] sm:$0xff]   ;;  %v1373_v5 = vld [vmem:[%s1892_s0] sm:$0xff]  }
   0x2   :  { %v375_v3 = vand.u32 %v1369_v0, %v373_v2  ;;  %v1374_v6 = vld [vmem:[%s1892_s0 + $0x80] sm:$0xff]   ;;  %v1371_v7 = vld [vmem:[%s1891_s1 + $0x8] sm:$0xff]   ;;  %1296 = vmatprep.mubr.msk.bf16.mxu0 %vm274_vm1, %v1373_v5  ;;  %v1377_v11 = vld [vmem:[%s1892_s0 + $0x10] sm:$0xff]  }
   0x3   :  { %1328 = vmatprep.mubr.msk.bf16.mxu1 %vm274_vm1, %v1374_v6  ;;  %v1372_v8 = vld [vmem:[%s1891_s1] sm:$0xff]   ;;  %v1375_v9 = vld [vmem:[%s1892_s0 + $0x8] sm:$0xff]   ;;  %v1378_v12 = vld [vmem:[%s1892_s0 + $0x90] sm:$0xff]  }
   0x4   :  { %1288 = vmatprep.subr.bf16.mxu0 %v375_v3  ;;  %1360 = vmatprep.subr.bf16.mxu1 %v375_v3  ;;  %v1376_v10 = vld [vmem:[%s1892_s0 + $0x88] sm:$0xff]   ;;  %v1379_v13 = vld [vmem:[%s1892_s0 + $0x18] sm:$0xff]   ;;  %v1381_v15 = vld [vmem:[%s1892_s0 + $0x20] sm:$0xff]  }
   0x5   :  { %1289 = vmatpush3.bf16.msra.mxu0 %v375_v3  ;;  %1364 = vmatpush3.bf16.msra.mxu1 %v375_v3  ;;  %v1380_v14 = vld [vmem:[%s1892_s0 + $0x98] sm:$0xff]   ;;  %v1382_v16 = vld [vmem:[%s1892_s0 + $0xa0] sm:$0xff]   ;;  %v1383_v17 = vld [vmem:[%s1892_s0 + $0x28] sm:$0xff]  }
   0x6   :  { %1290 = vmatprep.subr.bf16.mxu0 %v1370_v4  ;;  %1361 = vmatprep.subr.bf16.mxu1 %v1370_v4  ;;  %v1384_v18 = vld [vmem:[%s1892_s0 + $0xa8] sm:$0xff]   ;;  %v1385_v19 = vld [vmem:[%s1892_s0 + $0x30] sm:$0xff]   ;;  %v1387_v21 = vld [vmem:[%s1892_s0 + $0x38] sm:$0xff]  }
   0x7   :  { %v1386_v20 = vld [vmem:[%s1892_s0 + $0xb0] sm:$0xff]   ;;  %v1388_v22 = vld [vmem:[%s1892_s0 + $0xb8] sm:$0xff]   ;;  %v1389_v23 = vld [vmem:[%s1892_s0 + $0x40] sm:$0xff]  }
   0x8   :  { %v1390_v24 = vld [vmem:[%s1892_s0 + $0xc0] sm:$0xff]   ;;  %v1391_v25 = vld [vmem:[%s1892_s0 + $0x48] sm:$0xff]   ;;  %v1393_v27 = vld [vmem:[%s1892_s0 + $0x50] sm:$0xff]  }
   0x9   :  { %1291 = vmatpush3.bf16.msra.mxu0 %v1370_v4  ;;  %1365 = vmatpush3.bf16.msra.mxu1 %v1370_v4  ;;  %v1392_v26 = vld [vmem:[%s1892_s0 + $0xc8] sm:$0xff]   ;;  %v1394_v28 = vld [vmem:[%s1892_s0 + $0xd0] sm:$0xff]   ;;  %v1395_v29 = vld [vmem:[%s1892_s0 + $0x58] sm:$0xff]  }
   0xa   :  { %1292 = vmatprep.subr.bf16.mxu0 %v1371_v7  ;;  %1362 = vmatprep.subr.bf16.mxu1 %v1371_v7  ;;  %v1396_v30 = vld [vmem:[%s1892_s0 + $0xd8] sm:$0xff]   ;;  %v1397_v31 = vld [vmem:[%s1892_s0 + $0x60] sm:$0xff]   ;;  %v1399_v33 = vld [vmem:[%s1892_s0 + $0x68] sm:$0xff]  }
   0xb   :  { %v1398_v32 = vld [vmem:[%s1892_s0 + $0xe0] sm:$0xff]   ;;  %v1400_v34 = vld [vmem:[%s1892_s0 + $0xe8] sm:$0xff]   ;;  %v1401_v35 = vld [vmem:[%s1892_s0 + $0x70] sm:$0xff]  }
   0xc   :  { %v1402_v36 = vld [vmem:[%s1892_s0 + $0xf0] sm:$0xff]   ;;  %v1403_v37 = vld [vmem:[%s1892_s0 + $0x78] sm:$0xff]   ;;  %v1569_v39 = vld [vmem:[%s1893_s2] ss:$0 sm:$0xff] }
   0xd   :  { %1293 = vmatpush3.bf16.msra.mxu0 %v1371_v7  ;;  %1366 = vmatpush3.bf16.msra.mxu1 %v1371_v7  ;;  %v1404_v38 = vld [vmem:[%s1892_s0 + $0xf8] sm:$0xff]  }
   0xe   :  { %1294 = vmatprep.subr.bf16.mxu0 %v1372_v8  ;;  %1363 = vmatprep.subr.bf16.mxu1 %v1372_v8 }
  0x11   :  { %1295 = vmatpush3.bf16.msra.mxu0 %v1372_v8  ;;  %1367 = vmatpush3.bf16.msra.mxu1 %v1372_v8 }
  0x14   :  { %1297 = vmatmul.mubr.msk.bf16.vlgmr.msra.gmra.mxu0 %vm274_vm1, %v1375_v9  ;;  %1329 = vmatmul.mubr.msk.bf16.vlgmr.msra.gmra.mxu1 %vm274_vm1, %v1376_v10 }
  0x15   :  { %1300 = vmatprep.mubr.msk.bf16.mxu0 %vm274_vm1, %v1377_v11  ;;  %1332 = vmatprep.mubr.msk.bf16.mxu1 %vm274_vm1, %v1378_v12 }
  0x1c   :  { %1301 = vmatmul.mubr.msk.bf16.gmra.mxu0 %vm274_vm1, %v1379_v13  ;;  %1333 = vmatmul.mubr.msk.bf16.gmra.mxu1 %vm274_vm1, %v1380_v14 }
  0x1d   :  { %1304 = vmatprep.mubr.msk.bf16.mxu0 %vm274_vm1, %v1381_v15  ;;  %1336 = vmatprep.mubr.msk.bf16.mxu1 %vm274_vm1, %v1382_v16 }
  0x24   :  { %1305 = vmatmul.mubr.msk.bf16.gmra.mxu0 %vm274_vm1, %v1383_v17  ;;  %1337 = vmatmul.mubr.msk.bf16.gmra.mxu1 %vm274_vm1, %v1384_v18 }
  0x25   :  { %1308 = vmatprep.mubr.msk.bf16.mxu0 %vm274_vm1, %v1385_v19  ;;  %1340 = vmatprep.mubr.msk.bf16.mxu1 %vm274_vm1, %v1386_v20 }
  0x2c   :  { %1309 = vmatmul.mubr.msk.bf16.gmra.mxu0 %vm274_vm1, %v1387_v21  ;;  %1341 = vmatmul.mubr.msk.bf16.gmra.mxu1 %vm274_vm1, %v1388_v22 }
  0x2d   :  { %1312 = vmatprep.mubr.msk.bf16.mxu0 %vm274_vm1, %v1389_v23  ;;  %1344 = vmatprep.mubr.msk.bf16.mxu1 %vm274_vm1, %v1390_v24 }
  0x34   :  { %1313 = vmatmul.mubr.msk.bf16.gmra.mxu0 %vm274_vm1, %v1391_v25  ;;  %1345 = vmatmul.mubr.msk.bf16.gmra.mxu1 %vm274_vm1, %v1392_v26 }
  0x35   :  { %1316 = vmatprep.mubr.msk.bf16.mxu0 %vm274_vm1, %v1393_v27  ;;  %1348 = vmatprep.mubr.msk.bf16.mxu1 %vm274_vm1, %v1394_v28 }
  0x3c   :  { %1317 = vmatmul.mubr.msk.bf16.gmra.mxu0 %vm274_vm1, %v1395_v29  ;;  %1349 = vmatmul.mubr.msk.bf16.gmra.mxu1 %vm274_vm1, %v1396_v30 }
  0x3d   :  { %1320 = vmatprep.mubr.msk.bf16.mxu0 %vm274_vm1, %v1397_v31  ;;  %1352 = vmatprep.mubr.msk.bf16.mxu1 %vm274_vm1, %v1398_v32 }
  0x44   :  { %1321 = vmatmul.mubr.msk.bf16.gmra.mxu0 %vm274_vm1, %v1399_v33  ;;  %1353 = vmatmul.mubr.msk.bf16.gmra.mxu1 %vm274_vm1, %v1400_v34 }
  0x45   :  { %1324 = vmatprep.mubr.msk.bf16.mxu0 %vm274_vm1, %v1401_v35  ;;  %1356 = vmatprep.mubr.msk.bf16.mxu1 %vm274_vm1, %v1402_v36 }
  0x4c   :  { %1325 = vmatmul.mubr.msk.bf16.gmra.mxu0 %vm274_vm1, %v1403_v37  ;;  %1357 = vmatmul.mubr.msk.bf16.gmra.mxu1 %vm274_vm1, %v1404_v38 }
  0xd4   :  { %v1298_v40 = vpop.f32.mrf.mxu0  ;;  %v1330_v41 = vpop.f32.mrf.mxu1 }
  0xd5   :  { %v420_v42 = vadd.f32 %v1298_v40, %v1569_v39  ;;  %v548_v43 = vadd.f32 %v1330_v41, %v1569_v39 }
  0xd6   :  { %v411_v44 = vpop.f32.mrf.mxu0  ;;  %v539_v45 = vpop.f32.mrf.mxu1 }
  0xd7   :  { %v668_v46 = vmax.f32 %v420_v42, 0.0  ;;  %v700_v47 = vmax.f32 %v548_v43, 0.0  ;;  %v412_v48 = vadd.f32 %v1569_v39, %v411_v44  ;;  %v540_v49 = vadd.f32 %v1569_v39, %v539_v45 }
  0xd8   :  { %v1299_v50 = vpop.f32.mrf.mxu0  ;;  %v1331_v51 = vpop.f32.mrf.mxu1 }
  0xd9   :  { %v1190_v52 = vpack.c.bf16 %v668_v46, %v668_v46  ;;  %v1222_v53 = vpack.c.bf16 %v700_v47, %v700_v47  ;;  %v666_v54 = vmax.f32 %v412_v48, 0.0  ;;  %v698_v55 = vmax.f32 %v540_v49, 0.0 }
  0xda   :  { %v423_v56 = vadd.f32 %v1299_v50, %v1569_v39  ;;  %v551_v57 = vadd.f32 %v1331_v51, %v1569_v39  ;;  %v414_v58 = vpop.f32.mrf.mxu0  ;;  %v542_v59 = vpop.f32.mrf.mxu1 }
  0xdb   :  { %989 = vst.msk [vmem:[%s1894_s3 + $0x8] sm:$0xf] %vm986_vm2, %v1190_v52  ;;  %1021 = vst.msk [vmem:[%s1894_s3 + $0x88] sm:$0xf] %vm986_vm2, %v1222_v53  ;;  %v1188_v60 = vpack.c.bf16 %v666_v54, %v666_v54  ;;  %v1220_v61 = vpack.c.bf16 %v698_v55, %v698_v55  ;;  %v415_v62 = vadd.f32 %v1569_v39, %v414_v58 }
  0xdc   :  { %v543_v63 = vadd.f32 %v1569_v39, %v542_v59  ;;  %v669_v0 = vmax.f32 %v423_v56, 0.0  ;;  %v701_v1 = vmax.f32 %v551_v57, 0.0  ;;  %v1302_v2 = vpop.f32.mrf.mxu0  ;;  %v1334_v3 = vpop.f32.mrf.mxu1 }
  0xdd   :  { %987 = vst.msk [vmem:[%s1894_s3] sm:$0xf] %vm986_vm2, %v1188_v60  ;;  %1019 = vst.msk [vmem:[%s1894_s3 + $0x80] sm:$0xf] %vm986_vm2, %v1220_v61  ;;  %v667_v4 = vmax.f32 %v415_v62, 0.0  ;;  %v436_v6 = vadd.f32 %v1302_v2, %v1569_v39  ;;  %v564_v7 = vadd.f32 %v1334_v3, %v1569_v39 }
  0xde   :  { %v699_v5 = vmax.f32 %v543_v63, 0.0  ;;  %v1191_v8 = vpack.c.bf16 %v669_v0, %v669_v0  ;;  %v1223_v9 = vpack.c.bf16 %v701_v1, %v701_v1  ;;  %v427_v10 = vpop.f32.mrf.mxu0  ;;  %v555_v11 = vpop.f32.mrf.mxu1 }
  0xdf   :  { %v1189_v12 = vpack.c.bf16 %v667_v4, %v667_v4  ;;  %v672_v14 = vmax.f32 %v436_v6, 0.0  ;;  %v704_v15 = vmax.f32 %v564_v7, 0.0  ;;  %v428_v16 = vadd.f32 %v1569_v39, %v427_v10 }
  0xe0   :  { %v1221_v13 = vpack.c.bf16 %v699_v5, %v699_v5  ;;  %990 = vst.msk [vmem:[%s1894_s3 + $0xc] sm:$0xf] %vm986_vm2, %v1191_v8  ;;  %1022 = vst.msk [vmem:[%s1894_s3 + $0x8c] sm:$0xf] %vm986_vm2, %v1223_v9  ;;  %v556_v17 = vadd.f32 %v1569_v39, %v555_v11  ;;  %v1303_v18 = vpop.f32.mrf.mxu0  ;;  %v1335_v19 = vpop.f32.mrf.mxu1 }
  0xe1   :  { %988 = vst.msk [vmem:[%s1894_s3 + $0x4] sm:$0xf] %vm986_vm2, %v1189_v12  ;;  %v1194_v20 = vpack.c.bf16 %v672_v14, %v672_v14  ;;  %v1226_v21 = vpack.c.bf16 %v704_v15, %v704_v15  ;;  %v439_v22 = vadd.f32 %v1303_v18, %v1569_v39  ;;  %v567_v23 = vadd.f32 %v1335_v19, %v1569_v39 }
  0xe2   :  { %1020 = vst.msk [vmem:[%s1894_s3 + $0x84] sm:$0xf] %vm986_vm2, %v1221_v13  ;;  %v670_v24 = vmax.f32 %v428_v16, 0.0  ;;  %v702_v25 = vmax.f32 %v556_v17, 0.0  ;;  %v430_v26 = vpop.f32.mrf.mxu0  ;;  %v558_v27 = vpop.f32.mrf.mxu1 }
  0xe3   :  { %993 = vst.msk [vmem:[%s1894_s3 + $0x18] sm:$0xf] %vm986_vm2, %v1194_v20  ;;  %1025 = vst.msk [vmem:[%s1894_s3 + $0x98] sm:$0xf] %vm986_vm2, %v1226_v21  ;;  %v673_v28 = vmax.f32 %v439_v22, 0.0  ;;  %v705_v29 = vmax.f32 %v567_v23, 0.0  ;;  %v431_v30 = vadd.f32 %v1569_v39, %v430_v26  ;;  %v559_v31 = vadd.f32 %v1569_v39, %v558_v27 }
  0xe4   :  { %v1192_v32 = vpack.c.bf16 %v670_v24, %v670_v24  ;;  %v1224_v33 = vpack.c.bf16 %v702_v25, %v702_v25  ;;  %v1306_v34 = vpop.f32.mrf.mxu0  ;;  %v1338_v35 = vpop.f32.mrf.mxu1 }
  0xe5   :  { %v1195_v36 = vpack.c.bf16 %v673_v28, %v673_v28  ;;  %v1227_v37 = vpack.c.bf16 %v705_v29, %v705_v29  ;;  %v671_v38 = vmax.f32 %v431_v30, 0.0  ;;  %v703_v40 = vmax.f32 %v559_v31, 0.0 }
  0xe6   :  { %991 = vst.msk [vmem:[%s1894_s3 + $0x10] sm:$0xf] %vm986_vm2, %v1192_v32  ;;  %1023 = vst.msk [vmem:[%s1894_s3 + $0x90] sm:$0xf] %vm986_vm2, %v1224_v33  ;;  %v452_v41 = vadd.f32 %v1306_v34, %v1569_v39  ;;  %v580_v42 = vadd.f32 %v1338_v35, %v1569_v39  ;;  %v443_v43 = vpop.f32.mrf.mxu0  ;;  %v571_v44 = vpop.f32.mrf.mxu1 }
  0xe7   :  { %994 = vst.msk [vmem:[%s1894_s3 + $0x1c] sm:$0xf] %vm986_vm2, %v1195_v36  ;;  %1026 = vst.msk [vmem:[%s1894_s3 + $0x9c] sm:$0xf] %vm986_vm2, %v1227_v37  ;;  %v1193_v45 = vpack.c.bf16 %v671_v38, %v671_v38  ;;  %v1225_v46 = vpack.c.bf16 %v703_v40, %v703_v40  ;;  %v444_v47 = vadd.f32 %v1569_v39, %v443_v43 }
  0xe8   :  { %v572_v48 = vadd.f32 %v1569_v39, %v571_v44  ;;  %v676_v49 = vmax.f32 %v452_v41, 0.0  ;;  %v708_v50 = vmax.f32 %v580_v42, 0.0  ;;  %v1307_v51 = vpop.f32.mrf.mxu0  ;;  %v1339_v52 = vpop.f32.mrf.mxu1 }
  0xe9   :  { %992 = vst.msk [vmem:[%s1894_s3 + $0x14] sm:$0xf] %vm986_vm2, %v1193_v45  ;;  %1024 = vst.msk [vmem:[%s1894_s3 + $0x94] sm:$0xf] %vm986_vm2, %v1225_v46  ;;  %v674_v53 = vmax.f32 %v444_v47, 0.0  ;;  %v455_v55 = vadd.f32 %v1307_v51, %v1569_v39  ;;  %v583_v56 = vadd.f32 %v1339_v52, %v1569_v39 }
  0xea   :  { %v706_v54 = vmax.f32 %v572_v48, 0.0  ;;  %v1198_v57 = vpack.c.bf16 %v676_v49, %v676_v49  ;;  %v1230_v58 = vpack.c.bf16 %v708_v50, %v708_v50  ;;  %v446_v59 = vpop.f32.mrf.mxu0  ;;  %v574_v60 = vpop.f32.mrf.mxu1 }
  0xeb   :  { %v1196_v61 = vpack.c.bf16 %v674_v53, %v674_v53  ;;  %v677_v63 = vmax.f32 %v455_v55, 0.0  ;;  %v709_v0 = vmax.f32 %v583_v56, 0.0  ;;  %v447_v1 = vadd.f32 %v1569_v39, %v446_v59 }
  0xec   :  { %v1228_v62 = vpack.c.bf16 %v706_v54, %v706_v54  ;;  %997 = vst.msk [vmem:[%s1894_s3 + $0x28] sm:$0xf] %vm986_vm2, %v1198_v57  ;;  %1029 = vst.msk [vmem:[%s1894_s3 + $0xa8] sm:$0xf] %vm986_vm2, %v1230_v58  ;;  %v575_v2 = vadd.f32 %v1569_v39, %v574_v60  ;;  %v1310_v3 = vpop.f32.mrf.mxu0  ;;  %v1342_v4 = vpop.f32.mrf.mxu1 }
  0xed   :  { %995 = vst.msk [vmem:[%s1894_s3 + $0x20] sm:$0xf] %vm986_vm2, %v1196_v61  ;;  %v1199_v5 = vpack.c.bf16 %v677_v63, %v677_v63  ;;  %v1231_v6 = vpack.c.bf16 %v709_v0, %v709_v0  ;;  %v468_v7 = vadd.f32 %v1310_v3, %v1569_v39  ;;  %v596_v8 = vadd.f32 %v1342_v4, %v1569_v39 }
  0xee   :  { %1027 = vst.msk [vmem:[%s1894_s3 + $0xa0] sm:$0xf] %vm986_vm2, %v1228_v62  ;;  %v675_v9 = vmax.f32 %v447_v1, 0.0  ;;  %v707_v10 = vmax.f32 %v575_v2, 0.0  ;;  %v459_v11 = vpop.f32.mrf.mxu0  ;;  %v587_v12 = vpop.f32.mrf.mxu1 }
  0xef   :  { %998 = vst.msk [vmem:[%s1894_s3 + $0x2c] sm:$0xf] %vm986_vm2, %v1199_v5  ;;  %1030 = vst.msk [vmem:[%s1894_s3 + $0xac] sm:$0xf] %vm986_vm2, %v1231_v6  ;;  %v680_v13 = vmax.f32 %v468_v7, 0.0  ;;  %v712_v14 = vmax.f32 %v596_v8, 0.0  ;;  %v460_v15 = vadd.f32 %v1569_v39, %v459_v11  ;;  %v588_v16 = vadd.f32 %v1569_v39, %v587_v12 }
  0xf0   :  { %v1197_v17 = vpack.c.bf16 %v675_v9, %v675_v9  ;;  %v1229_v18 = vpack.c.bf16 %v707_v10, %v707_v10  ;;  %v1311_v19 = vpop.f32.mrf.mxu0  ;;  %v1343_v20 = vpop.f32.mrf.mxu1 }
  0xf1   :  { %v1202_v21 = vpack.c.bf16 %v680_v13, %v680_v13  ;;  %v1234_v22 = vpack.c.bf16 %v712_v14, %v712_v14  ;;  %v678_v23 = vmax.f32 %v460_v15, 0.0  ;;  %v710_v24 = vmax.f32 %v588_v16, 0.0 }
  0xf2   :  { %996 = vst.msk [vmem:[%s1894_s3 + $0x24] sm:$0xf] %vm986_vm2, %v1197_v17  ;;  %1028 = vst.msk [vmem:[%s1894_s3 + $0xa4] sm:$0xf] %vm986_vm2, %v1229_v18  ;;  %v471_v25 = vadd.f32 %v1311_v19, %v1569_v39  ;;  %v599_v26 = vadd.f32 %v1343_v20, %v1569_v39  ;;  %v462_v27 = vpop.f32.mrf.mxu0  ;;  %v590_v28 = vpop.f32.mrf.mxu1 }
  0xf3   :  { %1001 = vst.msk [vmem:[%s1894_s3 + $0x38] sm:$0xf] %vm986_vm2, %v1202_v21  ;;  %1033 = vst.msk [vmem:[%s1894_s3 + $0xb8] sm:$0xf] %vm986_vm2, %v1234_v22  ;;  %v1200_v29 = vpack.c.bf16 %v678_v23, %v678_v23  ;;  %v1232_v30 = vpack.c.bf16 %v710_v24, %v710_v24  ;;  %v463_v31 = vadd.f32 %v1569_v39, %v462_v27 }
  0xf4   :  { %v591_v32 = vadd.f32 %v1569_v39, %v590_v28  ;;  %v681_v33 = vmax.f32 %v471_v25, 0.0  ;;  %v713_v34 = vmax.f32 %v599_v26, 0.0  ;;  %v1314_v35 = vpop.f32.mrf.mxu0  ;;  %v1346_v36 = vpop.f32.mrf.mxu1 }
  0xf5   :  { %999 = vst.msk [vmem:[%s1894_s3 + $0x30] sm:$0xf] %vm986_vm2, %v1200_v29  ;;  %1031 = vst.msk [vmem:[%s1894_s3 + $0xb0] sm:$0xf] %vm986_vm2, %v1232_v30  ;;  %v679_v37 = vmax.f32 %v463_v31, 0.0  ;;  %v484_v40 = vadd.f32 %v1314_v35, %v1569_v39  ;;  %v612_v41 = vadd.f32 %v1346_v36, %v1569_v39 }
  0xf6   :  { %v711_v38 = vmax.f32 %v591_v32, 0.0  ;;  %v1203_v42 = vpack.c.bf16 %v681_v33, %v681_v33  ;;  %v1235_v43 = vpack.c.bf16 %v713_v34, %v713_v34  ;;  %v475_v44 = vpop.f32.mrf.mxu0  ;;  %v603_v45 = vpop.f32.mrf.mxu1 }
  0xf7   :  { %v1201_v46 = vpack.c.bf16 %v679_v37, %v679_v37  ;;  %v684_v48 = vmax.f32 %v484_v40, 0.0  ;;  %v716_v49 = vmax.f32 %v612_v41, 0.0  ;;  %v476_v50 = vadd.f32 %v1569_v39, %v475_v44 }
  0xf8   :  { %v1233_v47 = vpack.c.bf16 %v711_v38, %v711_v38  ;;  %1002 = vst.msk [vmem:[%s1894_s3 + $0x3c] sm:$0xf] %vm986_vm2, %v1203_v42  ;;  %1034 = vst.msk [vmem:[%s1894_s3 + $0xbc] sm:$0xf] %vm986_vm2, %v1235_v43  ;;  %v604_v51 = vadd.f32 %v1569_v39, %v603_v45  ;;  %v1315_v52 = vpop.f32.mrf.mxu0  ;;  %v1347_v53 = vpop.f32.mrf.mxu1 }
  0xf9   :  { %1000 = vst.msk [vmem:[%s1894_s3 + $0x34] sm:$0xf] %vm986_vm2, %v1201_v46  ;;  %v1206_v54 = vpack.c.bf16 %v684_v48, %v684_v48  ;;  %v1238_v55 = vpack.c.bf16 %v716_v49, %v716_v49  ;;  %v487_v56 = vadd.f32 %v1315_v52, %v1569_v39  ;;  %v615_v57 = vadd.f32 %v1347_v53, %v1569_v39 }
  0xfa   :  { %1032 = vst.msk [vmem:[%s1894_s3 + $0xb4] sm:$0xf] %vm986_vm2, %v1233_v47  ;;  %v682_v58 = vmax.f32 %v476_v50, 0.0  ;;  %v714_v59 = vmax.f32 %v604_v51, 0.0  ;;  %v478_v60 = vpop.f32.mrf.mxu0  ;;  %v606_v61 = vpop.f32.mrf.mxu1 }
  0xfb   :  { %1005 = vst.msk [vmem:[%s1894_s3 + $0x48] sm:$0xf] %vm986_vm2, %v1206_v54  ;;  %1037 = vst.msk [vmem:[%s1894_s3 + $0xc8] sm:$0xf] %vm986_vm2, %v1238_v55  ;;  %v685_v62 = vmax.f32 %v487_v56, 0.0  ;;  %v717_v63 = vmax.f32 %v615_v57, 0.0  ;;  %v479_v0 = vadd.f32 %v1569_v39, %v478_v60  ;;  %v607_v1 = vadd.f32 %v1569_v39, %v606_v61 }
  0xfc   :  { %v1204_v2 = vpack.c.bf16 %v682_v58, %v682_v58  ;;  %v1236_v3 = vpack.c.bf16 %v714_v59, %v714_v59  ;;  %v1318_v4 = vpop.f32.mrf.mxu0  ;;  %v1350_v5 = vpop.f32.mrf.mxu1 }
  0xfd   :  { %v1207_v6 = vpack.c.bf16 %v685_v62, %v685_v62  ;;  %v1239_v7 = vpack.c.bf16 %v717_v63, %v717_v63  ;;  %v683_v8 = vmax.f32 %v479_v0, 0.0  ;;  %v715_v9 = vmax.f32 %v607_v1, 0.0 }
  0xfe   :  { %1003 = vst.msk [vmem:[%s1894_s3 + $0x40] sm:$0xf] %vm986_vm2, %v1204_v2  ;;  %1035 = vst.msk [vmem:[%s1894_s3 + $0xc0] sm:$0xf] %vm986_vm2, %v1236_v3  ;;  %v500_v10 = vadd.f32 %v1318_v4, %v1569_v39  ;;  %v628_v11 = vadd.f32 %v1350_v5, %v1569_v39  ;;  %v491_v12 = vpop.f32.mrf.mxu0  ;;  %v619_v13 = vpop.f32.mrf.mxu1 }
  0xff   :  { %1006 = vst.msk [vmem:[%s1894_s3 + $0x4c] sm:$0xf] %vm986_vm2, %v1207_v6  ;;  %1038 = vst.msk [vmem:[%s1894_s3 + $0xcc] sm:$0xf] %vm986_vm2, %v1239_v7  ;;  %v1205_v14 = vpack.c.bf16 %v683_v8, %v683_v8  ;;  %v1237_v15 = vpack.c.bf16 %v715_v9, %v715_v9  ;;  %v492_v16 = vadd.f32 %v1569_v39, %v491_v12 }
 0x100   :  { %v620_v17 = vadd.f32 %v1569_v39, %v619_v13  ;;  %v688_v18 = vmax.f32 %v500_v10, 0.0  ;;  %v720_v19 = vmax.f32 %v628_v11, 0.0  ;;  %v1319_v20 = vpop.f32.mrf.mxu0  ;;  %v1351_v21 = vpop.f32.mrf.mxu1 }
 0x101   :  { %1004 = vst.msk [vmem:[%s1894_s3 + $0x44] sm:$0xf] %vm986_vm2, %v1205_v14  ;;  %1036 = vst.msk [vmem:[%s1894_s3 + $0xc4] sm:$0xf] %vm986_vm2, %v1237_v15  ;;  %v686_v22 = vmax.f32 %v492_v16, 0.0  ;;  %v503_v24 = vadd.f32 %v1319_v20, %v1569_v39  ;;  %v631_v25 = vadd.f32 %v1351_v21, %v1569_v39 }
 0x102   :  { %v718_v23 = vmax.f32 %v620_v17, 0.0  ;;  %v1210_v26 = vpack.c.bf16 %v688_v18, %v688_v18  ;;  %v1242_v27 = vpack.c.bf16 %v720_v19, %v720_v19  ;;  %v494_v28 = vpop.f32.mrf.mxu0  ;;  %v622_v29 = vpop.f32.mrf.mxu1 }
 0x103   :  { %v1208_v30 = vpack.c.bf16 %v686_v22, %v686_v22  ;;  %v689_v32 = vmax.f32 %v503_v24, 0.0  ;;  %v721_v33 = vmax.f32 %v631_v25, 0.0  ;;  %v495_v34 = vadd.f32 %v1569_v39, %v494_v28 }
 0x104   :  { %v1240_v31 = vpack.c.bf16 %v718_v23, %v718_v23  ;;  %1009 = vst.msk [vmem:[%s1894_s3 + $0x58] sm:$0xf] %vm986_vm2, %v1210_v26  ;;  %1041 = vst.msk [vmem:[%s1894_s3 + $0xd8] sm:$0xf] %vm986_vm2, %v1242_v27  ;;  %v623_v35 = vadd.f32 %v1569_v39, %v622_v29  ;;  %v1322_v36 = vpop.f32.mrf.mxu0  ;;  %v1354_v37 = vpop.f32.mrf.mxu1 }
 0x105   :  { %1007 = vst.msk [vmem:[%s1894_s3 + $0x50] sm:$0xf] %vm986_vm2, %v1208_v30  ;;  %v1211_v38 = vpack.c.bf16 %v689_v32, %v689_v32  ;;  %v1243_v40 = vpack.c.bf16 %v721_v33, %v721_v33  ;;  %v516_v41 = vadd.f32 %v1322_v36, %v1569_v39  ;;  %v644_v42 = vadd.f32 %v1354_v37, %v1569_v39 }
 0x106   :  { %1039 = vst.msk [vmem:[%s1894_s3 + $0xd0] sm:$0xf] %vm986_vm2, %v1240_v31  ;;  %v687_v43 = vmax.f32 %v495_v34, 0.0  ;;  %v719_v44 = vmax.f32 %v623_v35, 0.0  ;;  %v507_v45 = vpop.f32.mrf.mxu0  ;;  %v635_v46 = vpop.f32.mrf.mxu1 }
 0x107   :  { %1010 = vst.msk [vmem:[%s1894_s3 + $0x5c] sm:$0xf] %vm986_vm2, %v1211_v38  ;;  %1042 = vst.msk [vmem:[%s1894_s3 + $0xdc] sm:$0xf] %vm986_vm2, %v1243_v40  ;;  %v692_v47 = vmax.f32 %v516_v41, 0.0  ;;  %v724_v48 = vmax.f32 %v644_v42, 0.0  ;;  %v508_v49 = vadd.f32 %v1569_v39, %v507_v45  ;;  %v636_v50 = vadd.f32 %v1569_v39, %v635_v46 }
 0x108   :  { %v1209_v51 = vpack.c.bf16 %v687_v43, %v687_v43  ;;  %v1241_v52 = vpack.c.bf16 %v719_v44, %v719_v44  ;;  %v1323_v53 = vpop.f32.mrf.mxu0  ;;  %v1355_v54 = vpop.f32.mrf.mxu1 }
 0x109   :  { %v1214_v55 = vpack.c.bf16 %v692_v47, %v692_v47  ;;  %v1246_v56 = vpack.c.bf16 %v724_v48, %v724_v48  ;;  %v690_v57 = vmax.f32 %v508_v49, 0.0  ;;  %v722_v58 = vmax.f32 %v636_v50, 0.0 }
 0x10a   :  { %1008 = vst.msk [vmem:[%s1894_s3 + $0x54] sm:$0xf] %vm986_vm2, %v1209_v51  ;;  %1040 = vst.msk [vmem:[%s1894_s3 + $0xd4] sm:$0xf] %vm986_vm2, %v1241_v52  ;;  %v519_v59 = vadd.f32 %v1323_v53, %v1569_v39  ;;  %v647_v60 = vadd.f32 %v1355_v54, %v1569_v39  ;;  %v510_v61 = vpop.f32.mrf.mxu0  ;;  %v638_v62 = vpop.f32.mrf.mxu1 }
 0x10b   :  { %1013 = vst.msk [vmem:[%s1894_s3 + $0x68] sm:$0xf] %vm986_vm2, %v1214_v55  ;;  %1045 = vst.msk [vmem:[%s1894_s3 + $0xe8] sm:$0xf] %vm986_vm2, %v1246_v56  ;;  %v1212_v63 = vpack.c.bf16 %v690_v57, %v690_v57  ;;  %v1244_v0 = vpack.c.bf16 %v722_v58, %v722_v58  ;;  %v511_v1 = vadd.f32 %v1569_v39, %v510_v61 }
 0x10c   :  { %v639_v2 = vadd.f32 %v1569_v39, %v638_v62  ;;  %v693_v3 = vmax.f32 %v519_v59, 0.0  ;;  %v725_v4 = vmax.f32 %v647_v60, 0.0  ;;  %v1326_v5 = vpop.f32.mrf.mxu0  ;;  %v1358_v6 = vpop.f32.mrf.mxu1 }
 0x10d   :  { %1011 = vst.msk [vmem:[%s1894_s3 + $0x60] sm:$0xf] %vm986_vm2, %v1212_v63  ;;  %1043 = vst.msk [vmem:[%s1894_s3 + $0xe0] sm:$0xf] %vm986_vm2, %v1244_v0  ;;  %v691_v7 = vmax.f32 %v511_v1, 0.0  ;;  %v532_v9 = vadd.f32 %v1326_v5, %v1569_v39  ;;  %v660_v10 = vadd.f32 %v1358_v6, %v1569_v39 }
 0x10e   :  { %v723_v8 = vmax.f32 %v639_v2, 0.0  ;;  %v1215_v11 = vpack.c.bf16 %v693_v3, %v693_v3  ;;  %v1247_v12 = vpack.c.bf16 %v725_v4, %v725_v4  ;;  %v523_v13 = vpop.f32.mrf.mxu0  ;;  %v651_v14 = vpop.f32.mrf.mxu1 }
 0x10f   :  { %v1213_v15 = vpack.c.bf16 %v691_v7, %v691_v7  ;;  %v696_v17 = vmax.f32 %v532_v9, 0.0  ;;  %v728_v18 = vmax.f32 %v660_v10, 0.0  ;;  %v524_v19 = vadd.f32 %v1569_v39, %v523_v13 }
 0x110   :  { %v1245_v16 = vpack.c.bf16 %v723_v8, %v723_v8  ;;  %1014 = vst.msk [vmem:[%s1894_s3 + $0x6c] sm:$0xf] %vm986_vm2, %v1215_v11  ;;  %1046 = vst.msk [vmem:[%s1894_s3 + $0xec] sm:$0xf] %vm986_vm2, %v1247_v12  ;;  %v652_v20 = vadd.f32 %v1569_v39, %v651_v14  ;;  %v1327_v21 = vpop.f32.mrf.mxu0  ;;  %v1359_v22 = vpop.f32.mrf.mxu1 }
 0x111   :  { %1012 = vst.msk [vmem:[%s1894_s3 + $0x64] sm:$0xf] %vm986_vm2, %v1213_v15  ;;  %v1218_v23 = vpack.c.bf16 %v696_v17, %v696_v17  ;;  %v1250_v24 = vpack.c.bf16 %v728_v18, %v728_v18  ;;  %v535_v25 = vadd.f32 %v1327_v21, %v1569_v39  ;;  %v663_v26 = vadd.f32 %v1359_v22, %v1569_v39 }
 0x112   :  { %1044 = vst.msk [vmem:[%s1894_s3 + $0xe4] sm:$0xf] %vm986_vm2, %v1245_v16  ;;  %v694_v27 = vmax.f32 %v524_v19, 0.0  ;;  %v726_v28 = vmax.f32 %v652_v20, 0.0  ;;  %v526_v29 = vpop.f32.mrf.mxu0  ;;  %v654_v30 = vpop.f32.mrf.mxu1 }
 0x113   :  { %1017 = vst.msk [vmem:[%s1894_s3 + $0x78] sm:$0xf] %vm986_vm2, %v1218_v23  ;;  %1049 = vst.msk [vmem:[%s1894_s3 + $0xf8] sm:$0xf] %vm986_vm2, %v1250_v24  ;;  %v697_v31 = vmax.f32 %v535_v25, 0.0  ;;  %v729_v32 = vmax.f32 %v663_v26, 0.0  ;;  %v527_v33 = vadd.f32 %v1569_v39, %v526_v29  ;;  %v655_v34 = vadd.f32 %v1569_v39, %v654_v30 }
 0x114   :  { %v1216_v35 = vpack.c.bf16 %v694_v27, %v694_v27  ;;  %v1248_v36 = vpack.c.bf16 %v726_v28, %v726_v28 }
 0x115   :  { %v1219_v37 = vpack.c.bf16 %v697_v31, %v697_v31  ;;  %v1251_v38 = vpack.c.bf16 %v729_v32, %v729_v32  ;;  %v695_v40 = vmax.f32 %v527_v33, 0.0  ;;  %v727_v41 = vmax.f32 %v655_v34, 0.0 }
 0x116   :  { %1015 = vst.msk [vmem:[%s1894_s3 + $0x70] sm:$0xf] %vm986_vm2, %v1216_v35  ;;  %1047 = vst.msk [vmem:[%s1894_s3 + $0xf0] sm:$0xf] %vm986_vm2, %v1248_v36 }
 0x117   :  { %1018 = vst.msk [vmem:[%s1894_s3 + $0x7c] sm:$0xf] %vm986_vm2, %v1219_v37  ;;  %1050 = vst.msk [vmem:[%s1894_s3 + $0xfc] sm:$0xf] %vm986_vm2, %v1251_v38  ;;  %v1217_v39 = vpack.c.bf16 %v695_v40, %v695_v40  ;;  %v1249_v42 = vpack.c.bf16 %v727_v41, %v727_v41 }
 0x119   :  { %1016 = vst.msk [vmem:[%s1894_s3 + $0x74] sm:$0xf] %vm986_vm2, %v1217_v39  ;;  %1048 = vst.msk [vmem:[%s1894_s3 + $0xf4] sm:$0xf] %vm986_vm2, %v1249_v42 }

// kernel: extractor_forward.13
= control target key start
LH: loop header
LB: loop body
LE: loop exit
PB: predicated region body
PF: predicated region fallthrough
CT: control target
= control target key end

     0   :  { %vm135_vm0 = vsmask.f32 3328  ;;  %vm136_vm1 = vsmask.f32 7440  ;;  %vm760_vm3 = vcmask 519168   ;;  %s1470_s0 = inlined_call_operand.vmem [shape: bf16[2,9,9,64], index: 0, kind: input, shape index: {}]   ;;  %s1471_s1 = inlined_call_operand.vmem [shape: bf16[2,9,9,64], index: 1, kind: input, shape index: {}]   ;;  %s1472_s2 = inlined_call_operand.vmem [shape: bf16[2,9,9,64], index: 2, kind: input, shape index: {}]   ;;  %s1473_s3 = inlined_call_operand.vmem [shape: bf16[2,9,9,64], index: 3, kind: input, shape index: {}]   ;;  %s1474_s4 = inlined_call_operand.vmem [shape: bf16[2,8,8,64], index: 4, kind: output, shape index: {}]  }
   0x1   :  { %v17_v0 = vld [vmem:[%s1470_s0] sm:$0xf]  ;;  %v18_v1 = vld [vmem:[%s1470_s0 + $0x4] sm:$0x1]  ;;  %v815_v2 = vld [vmem:[%s1470_s0 + $0x8] sm:$0xf] }
   0x2   :  { %v20_v3 = vld [vmem:[%s1470_s0 + $0xc] sm:$0x1]  ;;  %v53_v4 = vld [vmem:[%s1471_s1] sm:$0xf]  ;;  %v826_v5 = vld [vmem:[%s1471_s1 + $0x8] sm:$0xf] }
   0x3   :  { %v831_v6 = vld [vmem:[%s1472_s2] sm:$0xf]  ;;  %v72_v7 = vld [vmem:[%s1472_s2 + $0x4] sm:$0x1]  ;;  %v119_v8 = vmax.bf16 %v53_v4, %v17_v0  ;;  %v120_v9 = vmax.bf16 %v826_v5, %v815_v2  ;;  %v139_v10 = vshrl.u32 %v17_v0, 16  ;;  %v142_v11 = vshll.u32 %v17_v0, 16  ;;  %vm859_vm2 = vmor %vm135_vm0, %vm136_vm1 }
   0x4   :  { %v841_v12 = vld [vmem:[%s1472_s2 + $0x8] sm:$0xf]  ;;  %v148_v13 = vshll.u32 %v18_v1, 16  ;;  %v153_v14 = vshrl.u32 %v815_v2, 16  ;;  %v156_v15 = vshll.u32 %v815_v2, 16  ;;  %v162_v16 = vshll.u32 %v20_v3, 16 }
   0x5   :  { %v141_v17 = vrot.slane %v139_v10, 4  ;;  %v144_v18 = vrot.slane %v142_v11, 5  ;;  %v427_v19 = vshrl.u32 %v831_v6, 16  ;;  %v430_v20 = vshll.u32 %v831_v6, 16  ;;  %v850_v21 = vld [vmem:[%s1470_s0 + $0x10] sm:$0xf] }
   0x6   :  { %v150_v22 = vrot.slane %v148_v13, 5  ;;  %v155_v23 = vrot.slane %v153_v14, 4  ;;  %v158_v24 = vrot.slane %v156_v15, 5  ;;  %v164_v25 = vrot.slane %v162_v16, 5  ;;  %v855_v26 = vld [vmem:[%s1471_s1 + $0x10] sm:$0xf] }
   0x7   :  { %v145_v27 = vor.u32 %v144_v18, %v141_v17  ;;  %v429_v28 = vrot.slane %v427_v19, 4  ;;  %v432_v29 = vrot.slane %v430_v20, 5  ;;  %v436_v30 = vshll.u32 %v72_v7, 16  ;;  %v22_v35 = vld [vmem:[%s1470_s0 + $0x14] sm:$0x1] }
   0x8   :  { %v159_v32 = vor.u32 %v158_v24, %v155_v23  ;;  %v441_v33 = vshrl.u32 %v841_v12, 16  ;;  %v444_v34 = vshll.u32 %v841_v12, 16  ;;  %v121_v36 = vmax.bf16 %v855_v26, %v850_v21  ;;  %v74_v44 = vld [vmem:[%s1472_s2 + $0xc] sm:$0x1]  ;;  %v75_v48 = vld [vmem:[%s1472_s2 + $0x10] sm:$0xf] }
   0x9   :  { %v146_v37 = vrot.slane %v145_v27, 4  ;;  %v433_v38 = vor.u32 %v432_v29, %v429_v28  ;;  %v438_v39 = vrot.slane %v436_v30, 5  ;;  %v167_v40 = vshrl.u32 %v850_v21, 16  ;;  %v887_v55 = vld [vmem:[%s1471_s1 + $0x18] sm:$0xf] }
   0xa   :  { %v160_v41 = vrot.slane %v159_v32, 4  ;;  %v443_v42 = vrot.slane %v441_v33, 4  ;;  %v446_v43 = vrot.slane %v444_v34, 5  ;;  %v170_v45 = vshll.u32 %v850_v21, 16  ;;  %v103_v56 = vld [vmem:[%s1473_s3] sm:$0xf] }
   0xb   :  { %v151_v46 = vsel %vm859_vm2, %v146_v37, %v150_v22  ;;  %v434_v47 = vrot.slane %v433_v38, 4  ;;  %v169_v49 = vrot.slane %v167_v40, 4  ;;  %v176_v50 = vshll.u32 %v22_v35, 16  ;;  %v898_v61 = vld [vmem:[%s1470_s0 + $0x18] sm:$0xf] }
   0xc   :  { %v882_v51 = vsel %vm859_vm2, %v160_v41, %v164_v25  ;;  %v378_v52 = vmax.bf16 %v151_v46, %v119_v8  ;;  %v447_v53 = vor.u32 %v446_v43, %v443_v42  ;;  %v172_v54 = vrot.slane %v170_v45, 5  ;;  %v104_v62 = vld [vmem:[%s1473_s3 + $0x8] sm:$0xf]  ;;  %v76_v17 = vld [vmem:[%s1472_s2 + $0x14] sm:$0x1] }
   0xd   :  { %v379_v57 = vmax.bf16 %v882_v51, %v120_v9  ;;  %v439_v58 = vsel %vm859_vm2, %v434_v47, %v438_v39  ;;  %v178_v59 = vrot.slane %v176_v50, 5  ;;  %v450_v60 = vshll.u32 %v74_v44, 16  ;;  %v24_v9 = vld [vmem:[%s1470_s0 + $0x1c] sm:$0x1]  ;;  %v919_v18 = vld [vmem:[%s1472_s2 + $0x18] sm:$0xf] }
   0xe   :  { %v394_v63 = vmax.bf16 %v378_v52, %v831_v6  ;;  %v173_v0 = vor.u32 %v172_v54, %v169_v49  ;;  %v448_v1 = vrot.slane %v447_v53, 4  ;;  %v455_v3 = vshrl.u32 %v75_v48, 16  ;;  %v105_v25 = vld [vmem:[%s1473_s3 + $0x10] sm:$0xf]  ;;  %v932_v37 = vld [vmem:[%s1471_s1 + $0x20] sm:$0xf] }
   0xf   :  { %v395_v4 = vmax.bf16 %v379_v57, %v841_v12  ;;  %v452_v7 = vrot.slane %v450_v60, 5  ;;  %v458_v8 = vshll.u32 %v75_v48, 16  ;;  %v122_v10 = vmax.bf16 %v887_v55, %v898_v61  ;;  %v78_v52 = vld [vmem:[%s1472_s2 + $0x1c] sm:$0x1] }
  0x10   :  { %v410_v11 = vmax.bf16 %v394_v63, %v103_v56  ;;  %v174_v13 = vrot.slane %v173_v0, 4  ;;  %v457_v14 = vrot.slane %v455_v3, 4  ;;  %v181_v6 = vshrl.u32 %v898_v61, 16  ;;  %v973_v0 = vld [vmem:[%s1470_s0 + $0x28] sm:$0xf] }
  0x11   :  { %v411_v15 = vmax.bf16 %v395_v4, %v104_v62  ;;  %v453_v16 = vsel %vm859_vm2, %v448_v1, %v452_v7  ;;  %v460_v12 = vrot.slane %v458_v8, 5  ;;  %v184_v19 = vshll.u32 %v898_v61, 16  ;;  %v984_v8 = vld [vmem:[%s1471_s1 + $0x28] sm:$0xf] }
  0x12   :  { %v666_v20 = vmax.bf16 %v439_v58, %v410_v11  ;;  %v179_v22 = vsel %vm859_vm2, %v174_v13, %v178_v59  ;;  %v183_v23 = vrot.slane %v181_v6, 4  ;;  %v190_v24 = vshll.u32 %v24_v9, 16  ;;  %v106_v58 = vld [vmem:[%s1473_s3 + $0x18] sm:$0xf] }
  0x13   :  { %v380_v27 = vmax.bf16 %v179_v22, %v121_v36  ;;  %v461_v28 = vor.u32 %v460_v12, %v457_v14  ;;  %v667_v29 = vmax.bf16 %v453_v16, %v411_v15  ;;  %v186_v30 = vrot.slane %v184_v19, 5  ;;  %v938_v36 = vld [vmem:[%s1470_s0 + $0x20] sm:$0xf]  ;;  %v28_v16 = vld [vmem:[%s1470_s0 + $0x2c] sm:$0x1] }
  0x14   :  { %v682_v32 = vmax.bf16 %v666_v20, %v815_v2  ;;  %v192_v33 = vrot.slane %v190_v24, 5  ;;  %v464_v34 = vshll.u32 %v76_v17, 16  ;;  %v469_v35 = vshrl.u32 %v919_v18, 16  ;;  %v80_v19 = vld [vmem:[%s1472_s2 + $0x24] sm:$0x1] }
  0x15   :  { %v396_v38 = vmax.bf16 %v380_v27, %v75_v48  ;;  %v683_v39 = vmax.bf16 %v667_v29, %v850_v21  ;;  %v187_v40 = vor.u32 %v186_v30, %v183_v23  ;;  %v462_v41 = vrot.slane %v461_v28, 4  ;;  %v26_v21 = vld [vmem:[%s1470_s0 + $0x24] sm:$0x1] }
  0x16   :  { %v698_v2 = vmax.bf16 %v682_v32, %v826_v5  ;;  %v466_v42 = vrot.slane %v464_v34, 5  ;;  %v471_v43 = vrot.slane %v469_v35, 4  ;;  %v472_v44 = vshll.u32 %v919_v18, 16  ;;  %v1009_v32 = vld [vmem:[%s1470_s0 + $0x30] sm:$0xf] }
  0x17   :  { %v412_v45 = vmax.bf16 %v396_v38, %v105_v25  ;;  %v699_v46 = vmax.bf16 %v683_v39, %v855_v26  ;;  %v188_v47 = vrot.slane %v187_v40, 4  ;;  %v123_v48 = vmax.bf16 %v932_v37, %v938_v36  ;;  %v957_v26 = vld [vmem:[%s1472_s2 + $0x20] sm:$0xf]  ;;  %v1021_v39 = vld [vmem:[%s1471_s1 + $0x30] sm:$0xf] }
  0x18   :  { %v744_v49 = vmax.bf16 %v698_v2, %v882_v51  ;;  %v467_v5 = vsel %vm859_vm2, %v462_v41, %v466_v42  ;;  %v474_v50 = vrot.slane %v472_v44, 5  ;;  %v195_v53 = vshrl.u32 %v938_v36, 16  ;;  %v107_v40 = vld [vmem:[%s1473_s3 + $0x20] sm:$0xf] }
  0x19   :  { %v745_v54 = vmax.bf16 %v699_v46, %v179_v22  ;;  %v193_v56 = vsel %vm859_vm2, %v188_v47, %v192_v33  ;;  %v668_v51 = vmax.bf16 %v467_v5, %v412_v45  ;;  %v198_v57 = vshll.u32 %v938_v36, 16 }
  0x1a   :  { %761 = vst.msk [vmem:[%s1474_s4] sm:$0xf] %vm760_vm3, %v744_v49  ;;  %v381_v59 = vmax.bf16 %v193_v56, %v122_v10  ;;  %v475_v60 = vor.u32 %v474_v50, %v471_v43  ;;  %v197_v62 = vrot.slane %v195_v53, 4  ;;  %v204_v63 = vshll.u32 %v26_v21, 16  ;;  %v30_v21 = vld [vmem:[%s1470_s0 + $0x34] sm:$0x1] }
  0x1b   :  { %762 = vst.msk [vmem:[%s1474_s4 + $0x4] sm:$0xf] %vm760_vm3, %v745_v54  ;;  %v684_v1 = vmax.bf16 %v668_v51, %v898_v61  ;;  %v200_v3 = vrot.slane %v198_v57, 5  ;;  %v478_v4 = vshll.u32 %v78_v52, 16  ;;  %v483_v7 = vshrl.u32 %v957_v26, 16 }
  0x1c   :  { %v397_v9 = vmax.bf16 %v381_v59, %v919_v18  ;;  %v206_v10 = vrot.slane %v204_v63, 5  ;;  %v476_v11 = vrot.slane %v475_v60, 4  ;;  %v486_v13 = vshll.u32 %v957_v26, 16  ;;  %v998_v18 = vld [vmem:[%s1472_s2 + $0x28] sm:$0xf] }
  0x1d   :  { %v700_v14 = vmax.bf16 %v684_v1, %v887_v55  ;;  %v201_v6 = vor.u32 %v200_v3, %v197_v62  ;;  %v480_v15 = vrot.slane %v478_v4, 5  ;;  %v485_v61 = vrot.slane %v483_v7, 4  ;;  %v1052_v1 = vld [vmem:[%s1471_s1 + $0x38] sm:$0xf]  ;;  %v108_v3 = vld [vmem:[%s1473_s3 + $0x28] sm:$0xf] }
  0x1e   :  { %v413_v12 = vmax.bf16 %v397_v9, %v106_v58  ;;  %v488_v17 = vrot.slane %v486_v13, 5  ;;  %v124_v55 = vmax.bf16 %v984_v8, %v973_v0  ;;  %v209_v20 = vshrl.u32 %v973_v0, 16 }
  0x1f   :  { %v746_v22 = vmax.bf16 %v700_v14, %v193_v56  ;;  %v202_v23 = vrot.slane %v201_v6, 4  ;;  %v481_v24 = vsel %vm859_vm2, %v476_v11, %v480_v15  ;;  %v212_v25 = vshll.u32 %v973_v0, 16  ;;  %v1065_v11 = vld [vmem:[%s1470_s0 + $0x38] sm:$0xf] }
  0x20   :  { %v489_v27 = vor.u32 %v488_v17, %v485_v61  ;;  %v669_v28 = vmax.bf16 %v481_v24, %v413_v12  ;;  %v211_v29 = vrot.slane %v209_v20, 4  ;;  %v218_v30 = vshll.u32 %v28_v16, 16  ;;  %v32_v61 = vld [vmem:[%s1470_s0 + $0x3c] sm:$0x1] }
  0x21   :  { %763 = vst.msk [vmem:[%s1474_s4 + $0x8] sm:$0xf] %vm760_vm3, %v746_v22  ;;  %v207_v33 = vsel %vm859_vm2, %v202_v23, %v206_v10  ;;  %v214_v34 = vrot.slane %v212_v25, 5  ;;  %v492_v35 = vshll.u32 %v80_v19, 16  ;;  %v497_v38 = vshrl.u32 %v998_v18, 16 }
  0x22   :  { %v382_v41 = vmax.bf16 %v207_v33, %v123_v48  ;;  %v685_v2 = vmax.bf16 %v669_v28, %v938_v36  ;;  %v220_v42 = vrot.slane %v218_v30, 5  ;;  %v490_v43 = vrot.slane %v489_v27, 4  ;;  %v82_v48 = vld [vmem:[%s1472_s2 + $0x2c] sm:$0x1]  ;;  %v84_v19 = vld [vmem:[%s1472_s2 + $0x34] sm:$0x1] }
  0x23   :  { %v215_v44 = vor.u32 %v214_v34, %v211_v29  ;;  %v494_v45 = vrot.slane %v492_v35, 5  ;;  %v499_v46 = vrot.slane %v497_v38, 4  ;;  %v500_v47 = vshll.u32 %v998_v18, 16 }
  0x24   :  { %v398_v49 = vmax.bf16 %v382_v41, %v957_v26  ;;  %v701_v5 = vmax.bf16 %v685_v2, %v932_v37  ;;  %v125_v36 = vmax.bf16 %v1021_v39, %v1009_v32  ;;  %v223_v50 = vshrl.u32 %v1009_v32, 16  ;;  %v1044_v26 = vld [vmem:[%s1472_s2 + $0x30] sm:$0xf]  ;;  %v86_v2 = vld [vmem:[%s1472_s2 + $0x3c] sm:$0x1] }
  0x25   :  { %v216_v52 = vrot.slane %v215_v44, 4  ;;  %v495_v53 = vsel %vm859_vm2, %v490_v43, %v494_v45  ;;  %v502_v54 = vrot.slane %v500_v47, 5  ;;  %v226_v37 = vshll.u32 %v1009_v32, 16 }
  0x26   :  { %v414_v56 = vmax.bf16 %v398_v49, %v107_v40  ;;  %v747_v51 = vmax.bf16 %v701_v5, %v207_v33  ;;  %v225_v57 = vrot.slane %v223_v50, 4  ;;  %v232_v58 = vshll.u32 %v30_v21, 16 }
  0x27   :  { %v221_v59 = vsel %vm859_vm2, %v216_v52, %v220_v42  ;;  %v503_v60 = vor.u32 %v502_v54, %v499_v46  ;;  %v228_v62 = vrot.slane %v226_v37, 5  ;;  %v506_v63 = vshll.u32 %v82_v48, 16  ;;  %v109_v42 = vld [vmem:[%s1473_s3 + $0x30] sm:$0xf]  ;;  %v34_v48 = vld [vmem:[%s1470_s0 + $0x44] sm:$0x1] }
  0x28   :  { %764 = vst.msk [vmem:[%s1474_s4 + $0xc] sm:$0xf] %vm760_vm3, %v747_v51  ;;  %v383_v4 = vmax.bf16 %v221_v59, %v124_v55  ;;  %v670_v7 = vmax.bf16 %v495_v53, %v414_v56  ;;  %v234_v9 = vrot.slane %v232_v58, 5  ;;  %v511_v10 = vshrl.u32 %v1044_v26, 16  ;;  %v1124_v51 = vld [vmem:[%s1471_s1 + $0x48] sm:$0xf] }
  0x29   :  { %v229_v13 = vor.u32 %v228_v62, %v225_v57  ;;  %v504_v14 = vrot.slane %v503_v60, 4  ;;  %v508_v6 = vrot.slane %v506_v63, 5  ;;  %v514_v15 = vshll.u32 %v1044_v26, 16 }
  0x2a   :  { %v399_v16 = vmax.bf16 %v383_v4, %v998_v18  ;;  %v686_v12 = vmax.bf16 %v670_v7, %v973_v0  ;;  %v513_v17 = vrot.slane %v511_v10, 4  ;;  %v126_v55 = vmax.bf16 %v1052_v1, %v1065_v11  ;;  %v1085_v0 = vld [vmem:[%s1472_s2 + $0x38] sm:$0xf]  ;;  %v36_v7 = vld [vmem:[%s1470_s0 + $0x4c] sm:$0x1] }
  0x2b   :  { %v230_v20 = vrot.slane %v229_v13, 4  ;;  %v509_v22 = vsel %vm859_vm2, %v504_v14, %v508_v6  ;;  %v516_v23 = vrot.slane %v514_v15, 5  ;;  %v237_v24 = vshrl.u32 %v1065_v11, 16  ;;  %v1140_v14 = vld [vmem:[%s1470_s0 + $0x50] sm:$0xf] }
  0x2c   :  { %v415_v25 = vmax.bf16 %v399_v16, %v108_v3  ;;  %v702_v18 = vmax.bf16 %v686_v12, %v984_v8  ;;  %v240_v27 = vshll.u32 %v1065_v11, 16  ;;  %v246_v28 = vshll.u32 %v32_v61, 16  ;;  %v1093_v8 = vld [vmem:[%s1470_s0 + $0x40] sm:$0xf]  ;;  %v110_v15 = vld [vmem:[%s1473_s3 + $0x38] sm:$0xf] }
  0x2d   :  { %v235_v29 = vsel %vm859_vm2, %v230_v20, %v234_v9  ;;  %v517_v30 = vor.u32 %v516_v23, %v513_v17  ;;  %v239_v33 = vrot.slane %v237_v24, 4  ;;  %v520_v34 = vshll.u32 %v84_v19, 16  ;;  %v38_v20 = vld [vmem:[%s1470_s0 + $0x54] sm:$0x1] }
  0x2e   :  { %v748_v35 = vmax.bf16 %v702_v18, %v221_v59  ;;  %v384_v38 = vmax.bf16 %v235_v29, %v125_v36  ;;  %v671_v40 = vmax.bf16 %v509_v22, %v415_v25  ;;  %v242_v41 = vrot.slane %v240_v27, 5  ;;  %v87_v25 = vld [vmem:[%s1472_s2 + $0x48] sm:$0xf] }
  0x2f   :  { %v248_v43 = vrot.slane %v246_v28, 5  ;;  %v518_v44 = vrot.slane %v517_v30, 4  ;;  %v522_v45 = vrot.slane %v520_v34, 5  ;;  %v525_v46 = vshrl.u32 %v1085_v0, 16 }
  0x30   :  { %765 = vst.msk [vmem:[%s1474_s4 + $0x10] sm:$0xf] %vm760_vm3, %v748_v35  ;;  %v400_v47 = vmax.bf16 %v384_v38, %v1044_v26  ;;  %v687_v21 = vmax.bf16 %v671_v40, %v1009_v32  ;;  %v243_v49 = vor.u32 %v242_v41, %v239_v33  ;;  %v528_v5 = vshll.u32 %v1085_v0, 16  ;;  %v1119_v32 = vld [vmem:[%s1470_s0 + $0x48] sm:$0xf] }
  0x31   :  { %v523_v36 = vsel %vm859_vm2, %v518_v44, %v522_v45  ;;  %v527_v50 = vrot.slane %v525_v46, 4  ;;  %v534_v52 = vshll.u32 %v86_v2, 16  ;;  %v715_v53 = vshrl.u32 %v1093_v8, 16  ;;  %v61_v41 = vld [vmem:[%s1471_s1 + $0x40] sm:$0xf] }
  0x32   :  { %v416_v54 = vmax.bf16 %v400_v47, %v109_v42  ;;  %v703_v37 = vmax.bf16 %v687_v21, %v1021_v39  ;;  %v244_v26 = vrot.slane %v243_v49, 4  ;;  %v530_v56 = vrot.slane %v528_v5, 5  ;;  %v1130_v39 = vld [vmem:[%s1471_s1 + $0x50] sm:$0xf]  ;;  %v1188_v49 = vld [vmem:[%s1471_s1 + $0x58] sm:$0xf] }
  0x33   :  { %v536_v57 = vrot.slane %v534_v52, 5  ;;  %v717_v58 = vrot.slane %v715_v53, 4  ;;  %v718_v59 = vshll.u32 %v1093_v8, 16  ;;  %v724_v60 = vshll.u32 %v34_v48, 16  ;;  %v1195_v52 = vld [vmem:[%s1470_s0 + $0x58] sm:$0xf] }
  0x34   :  { %v749_v62 = vmax.bf16 %v703_v37, %v235_v29  ;;  %v249_v63 = vsel %vm859_vm2, %v244_v26, %v248_v43  ;;  %v531_v3 = vor.u32 %v530_v56, %v527_v50  ;;  %v672_v4 = vmax.bf16 %v523_v36, %v416_v54  ;;  %v88_v29 = vld [vmem:[%s1472_s2 + $0x4c] sm:$0x1]  ;;  %v40_v56 = vld [vmem:[%s1470_s0 + $0x5c] sm:$0x1] }
  0x35   :  { %v385_v9 = vmax.bf16 %v249_v63, %v126_v55  ;;  %v720_v10 = vrot.slane %v718_v59, 5  ;;  %v726_v13 = vrot.slane %v724_v60, 5  ;;  %v127_v6 = vmax.bf16 %v1124_v51, %v1119_v32 }
  0x36   :  { %766 = vst.msk [vmem:[%s1474_s4 + $0x14] sm:$0xf] %vm760_vm3, %v749_v62  ;;  %v688_v61 = vmax.bf16 %v672_v4, %v1065_v11  ;;  %v532_v16 = vrot.slane %v531_v3, 4  ;;  %v128_v12 = vmax.bf16 %v1130_v39, %v1140_v14  ;;  %v251_v17 = vshrl.u32 %v1119_v32, 16  ;;  %v90_v4 = vld [vmem:[%s1472_s2 + $0x54] sm:$0x1] }
  0x37   :  { %v401_v19 = vmax.bf16 %v385_v9, %v1085_v0  ;;  %v721_v55 = vor.u32 %v720_v10, %v717_v58  ;;  %v254_v22 = vshll.u32 %v1119_v32, 16  ;;  %v260_v23 = vshll.u32 %v36_v7, 16  ;;  %v111_v58 = vld [vmem:[%s1473_s3 + $0x48] sm:$0xf] }
  0x38   :  { %v704_v24 = vmax.bf16 %v688_v61, %v1052_v1  ;;  %v537_v11 = vsel %vm859_vm2, %v532_v16, %v536_v57  ;;  %v253_v18 = vrot.slane %v251_v17, 4  ;;  %v265_v0 = vshrl.u32 %v1140_v14, 16  ;;  %v1173_v1 = vld [vmem:[%s1472_s2 + $0x50] sm:$0xf]  ;;  %v1221_v17 = vld [vmem:[%s1470_s0 + $0x60] sm:$0xf] }
  0x39   :  { %v417_v27 = vmax.bf16 %v401_v19, %v110_v15  ;;  %v722_v28 = vrot.slane %v721_v55, 4  ;;  %v256_v30 = vrot.slane %v254_v22, 5  ;;  %v262_v33 = vrot.slane %v260_v23, 5  ;;  %v1233_v23 = vld [vmem:[%s1471_s1 + $0x60] sm:$0xf] }
  0x3a   :  { %v750_v34 = vmax.bf16 %v704_v24, %v249_v63  ;;  %v267_v35 = vrot.slane %v265_v0, 4  ;;  %v268_v38 = vshll.u32 %v1140_v14, 16  ;;  %v274_v40 = vshll.u32 %v38_v20, 16  ;;  %v112_v24 = vld [vmem:[%s1473_s3 + $0x50] sm:$0xf] }
  0x3b   :  { %v673_v2 = vmax.bf16 %v537_v11, %v417_v27  ;;  %v727_v42 = vsel %vm859_vm2, %v722_v28, %v726_v13  ;;  %v257_v43 = vor.u32 %v256_v30, %v253_v18  ;;  %v539_v44 = vshrl.u32 %v87_v25, 16 }
  0x3c   :  { %767 = vst.msk [vmem:[%s1474_s4 + $0x18] sm:$0xf] %vm760_vm3, %v750_v34  ;;  %v270_v45 = vrot.slane %v268_v38, 5  ;;  %v276_v46 = vrot.slane %v274_v40, 5  ;;  %v542_v47 = vshll.u32 %v87_v25, 16  ;;  %v548_v21 = vshll.u32 %v88_v29, 16 }
  0x3d   :  { %v689_v5 = vmax.bf16 %v673_v2, %v1093_v8  ;;  %v258_v48 = vrot.slane %v257_v43, 4  ;;  %v541_v36 = vrot.slane %v539_v44, 4  ;;  %v553_v50 = vshrl.u32 %v1173_v1, 16  ;;  %v42_v34 = vld [vmem:[%s1470_s0 + $0x64] sm:$0x1] }
  0x3e   :  { %v271_v53 = vor.u32 %v270_v45, %v267_v35  ;;  %v544_v54 = vrot.slane %v542_v47, 5  ;;  %v550_v37 = vrot.slane %v548_v21, 5  ;;  %v556_v26 = vshll.u32 %v1173_v1, 16  ;;  %v1256_v45 = vld [vmem:[%s1472_s2 + $0x60] sm:$0xf] }
  0x3f   :  { %v705_v32 = vmax.bf16 %v689_v5, %v61_v41  ;;  %v263_v8 = vsel %vm859_vm2, %v258_v48, %v262_v33  ;;  %v555_v51 = vrot.slane %v553_v50, 4  ;;  %v129_v57 = vmax.bf16 %v1188_v49, %v1195_v52 }
  0x40   :  { %v272_v59 = vrot.slane %v271_v53, 4  ;;  %v386_v60 = vmax.bf16 %v263_v8, %v127_v6  ;;  %v545_v62 = vor.u32 %v544_v54, %v541_v36  ;;  %v558_v63 = vrot.slane %v556_v26, 5  ;;  %v91_v6 = vld [vmem:[%s1472_s2 + $0x58] sm:$0xf]  ;;  %v1268_v26 = vld [vmem:[%s1471_s1 + $0x68] sm:$0xf] }
  0x41   :  { %v751_v3 = vmax.bf16 %v727_v42, %v705_v32  ;;  %v279_v7 = vshrl.u32 %v1195_v52, 16  ;;  %v282_v9 = vshll.u32 %v1195_v52, 16  ;;  %v288_v10 = vshll.u32 %v40_v56, 16 }
  0x42   :  { %v277_v13 = vsel %vm859_vm2, %v272_v59, %v276_v46  ;;  %v402_v15 = vmax.bf16 %v386_v60, %v87_v25  ;;  %v546_v61 = vrot.slane %v545_v62, 4  ;;  %v559_v16 = vor.u32 %v558_v63, %v555_v51  ;;  %v44_v62 = vld [vmem:[%s1470_s0 + $0x6c] sm:$0x1] }
  0x43   :  { %768 = vst.msk [vmem:[%s1474_s4 + $0x1c] sm:$0xf] %vm760_vm3, %v751_v3  ;;  %v387_v19 = vmax.bf16 %v277_v13, %v128_v12  ;;  %v281_v55 = vrot.slane %v279_v7, 4  ;;  %v284_v20 = vrot.slane %v282_v9, 5  ;;  %v290_v22 = vrot.slane %v288_v10, 5 }
  0x44   :  { %v418_v11 = vmax.bf16 %v402_v15, %v111_v58  ;;  %v551_v25 = vsel %vm859_vm2, %v546_v61, %v550_v37  ;;  %v560_v18 = vrot.slane %v559_v16, 4  ;;  %v562_v0 = vshll.u32 %v90_v4, 16  ;;  %v94_v4 = vld [vmem:[%s1472_s2 + $0x64] sm:$0x1]  ;;  %v1297_v16 = vld [vmem:[%s1472_s2 + $0x68] sm:$0xf] }
  0x45   :  { %v403_v12 = vmax.bf16 %v387_v19, %v1173_v1  ;;  %v285_v27 = vor.u32 %v284_v20, %v281_v55  ;;  %v567_v28 = vshrl.u32 %v91_v6, 16  ;;  %v570_v29 = vshll.u32 %v91_v6, 16  ;;  %v92_v1 = vld [vmem:[%s1472_s2 + $0x5c] sm:$0x1] }
  0x46   :  { %v674_v30 = vmax.bf16 %v551_v25, %v418_v11  ;;  %v564_v33 = vrot.slane %v562_v0, 5  ;;  %v130_v35 = vmax.bf16 %v1233_v23, %v1221_v17  ;;  %v293_v38 = vshrl.u32 %v1221_v17, 16  ;;  %v1305_v11 = vld [vmem:[%s1471_s1 + $0x70] sm:$0xf] }
  0x47   :  { %v419_v40 = vmax.bf16 %v403_v12, %v112_v24  ;;  %v286_v41 = vrot.slane %v285_v27, 4  ;;  %v569_v2 = vrot.slane %v567_v28, 4  ;;  %v572_v42 = vrot.slane %v570_v29, 5  ;;  %v1314_v27 = vld [vmem:[%s1470_s0 + $0x70] sm:$0xf] }
  0x48   :  { %v690_v43 = vmax.bf16 %v674_v30, %v1140_v14  ;;  %v565_v44 = vsel %vm859_vm2, %v560_v18, %v564_v33  ;;  %v295_v46 = vrot.slane %v293_v38, 4  ;;  %v296_v47 = vshll.u32 %v1221_v17, 16  ;;  %v113_v14 = vld [vmem:[%s1473_s3 + $0x58] sm:$0xf]  ;;  %v114_v28 = vld [vmem:[%s1473_s3 + $0x60] sm:$0xf] }
  0x49   :  { %v291_v21 = vsel %vm859_vm2, %v286_v41, %v290_v22  ;;  %v573_v5 = vor.u32 %v572_v42, %v569_v2  ;;  %v675_v48 = vmax.bf16 %v565_v44, %v419_v40  ;;  %v302_v36 = vshll.u32 %v42_v34, 16  ;;  %v46_v41 = vld [vmem:[%s1470_s0 + $0x74] sm:$0x1] }
  0x4a   :  { %v706_v50 = vmax.bf16 %v690_v43, %v1130_v39  ;;  %v388_v53 = vmax.bf16 %v291_v21, %v129_v57  ;;  %v298_v54 = vrot.slane %v296_v47, 5  ;;  %v576_v37 = vshll.u32 %v92_v1, 16  ;;  %v1275_v39 = vld [vmem:[%s1470_s0 + $0x68] sm:$0xf]  ;;  %v96_v43 = vld [vmem:[%s1472_s2 + $0x6c] sm:$0x1] }
  0x4b   :  { %v691_v56 = vmax.bf16 %v675_v48, %v1195_v52  ;;  %v304_v32 = vrot.slane %v302_v36, 5  ;;  %v574_v8 = vrot.slane %v573_v5, 4  ;;  %v581_v51 = vshrl.u32 %v1256_v45, 16 }
  0x4c   :  { %v752_v58 = vmax.bf16 %v706_v50, %v277_v13  ;;  %v404_v57 = vmax.bf16 %v388_v53, %v91_v6  ;;  %v299_v59 = vor.u32 %v298_v54, %v295_v46  ;;  %v578_v60 = vrot.slane %v576_v37, 5 }
  0x4d   :  { %v707_v63 = vmax.bf16 %v691_v56, %v1188_v49  ;;  %v583_v52 = vrot.slane %v581_v51, 4  ;;  %v584_v3 = vshll.u32 %v1256_v45, 16  ;;  %v131_v7 = vmax.bf16 %v1268_v26, %v1275_v39  ;;  %v1346_v56 = vld [vmem:[%s1470_s0 + $0x78] sm:$0xf] }
  0x4e   :  { %769 = vst.msk [vmem:[%s1474_s4 + $0x20] sm:$0xf] %vm760_vm3, %v752_v58  ;;  %v420_v9 = vmax.bf16 %v404_v57, %v113_v14  ;;  %v300_v10 = vrot.slane %v299_v59, 4  ;;  %v579_v49 = vsel %vm859_vm2, %v574_v8, %v578_v60  ;;  %v307_v13 = vshrl.u32 %v1275_v39, 16  ;;  %v115_v59 = vld [vmem:[%s1473_s3 + $0x68] sm:$0xf] }
  0x4f   :  { %v753_v15 = vmax.bf16 %v707_v63, %v291_v21  ;;  %v586_v61 = vrot.slane %v584_v3, 5  ;;  %v310_v6 = vshll.u32 %v1275_v39, 16  ;;  %v316_v19 = vshll.u32 %v44_v62, 16  ;;  %v1338_v21 = vld [vmem:[%s1472_s2 + $0x70] sm:$0xf] }
  0x50   :  { %v305_v55 = vsel %vm859_vm2, %v300_v10, %v304_v32  ;;  %v676_v20 = vmax.bf16 %v579_v49, %v420_v9  ;;  %v309_v22 = vrot.slane %v307_v13, 4  ;;  %v590_v24 = vshll.u32 %v94_v4, 16  ;;  %v1351_v32 = vld [vmem:[%s1471_s1 + $0x78] sm:$0xf]  ;;  %v48_v3 = vld [vmem:[%s1470_s0 + $0x7c] sm:$0x1] }
  0x51   :  { %770 = vst.msk [vmem:[%s1474_s4 + $0x24] sm:$0xf] %vm760_vm3, %v753_v15  ;;  %v389_v25 = vmax.bf16 %v305_v55, %v130_v35  ;;  %v587_v18 = vor.u32 %v586_v61, %v583_v52  ;;  %v312_v0 = vrot.slane %v310_v6, 5  ;;  %v318_v12 = vrot.slane %v316_v19, 5  ;;  %v98_v9 = vld [vmem:[%s1472_s2 + $0x74] sm:$0x1] }
  0x52   :  { %v692_v29 = vmax.bf16 %v676_v20, %v1221_v17  ;;  %v592_v30 = vrot.slane %v590_v24, 5  ;;  %v595_v33 = vshrl.u32 %v1297_v16, 16  ;;  %v598_v34 = vshll.u32 %v1297_v16, 16 }
  0x53   :  { %v405_v35 = vmax.bf16 %v389_v25, %v1256_v45  ;;  %v313_v38 = vor.u32 %v312_v0, %v309_v22  ;;  %v588_v40 = vrot.slane %v587_v18, 4  ;;  %v132_v2 = vmax.bf16 %v1305_v11, %v1314_v27  ;;  %v1387_v18 = vld [vmem:[%s1471_s1 + $0x80] sm:$0xf] }
  0x54   :  { %v708_v42 = vmax.bf16 %v692_v29, %v1233_v23  ;;  %v597_v1 = vrot.slane %v595_v33, 4  ;;  %v600_v17 = vrot.slane %v598_v34, 5  ;;  %v321_v44 = vshrl.u32 %v1314_v27, 16  ;;  %v116_v33 = vld [vmem:[%s1473_s3 + $0x70] sm:$0xf] }
  0x55   :  { %v421_v45 = vmax.bf16 %v405_v35, %v114_v28  ;;  %v314_v46 = vrot.slane %v313_v38, 4  ;;  %v593_v47 = vsel %vm859_vm2, %v588_v40, %v592_v30  ;;  %v324_v23 = vshll.u32 %v1314_v27, 16  ;;  %v1392_v30 = vld [vmem:[%s1470_s0 + $0x80] sm:$0xf] }
  0x56   :  { %v754_v5 = vmax.bf16 %v708_v42, %v305_v55  ;;  %v601_v48 = vor.u32 %v600_v17, %v597_v1  ;;  %v323_v36 = vrot.slane %v321_v44, 4  ;;  %v330_v50 = vshll.u32 %v46_v41, 16  ;;  %v50_v1 = vld [vmem:[%s1470_s0 + $0x84] sm:$0x1]  ;;  %v100_v17 = vld [vmem:[%s1472_s2 + $0x7c] sm:$0x1] }
  0x57   :  { %v319_v14 = vsel %vm859_vm2, %v314_v46, %v318_v12  ;;  %v677_v53 = vmax.bf16 %v593_v47, %v421_v45  ;;  %v326_v54 = vrot.slane %v324_v23, 5  ;;  %v604_v37 = vshll.u32 %v96_v43, 16 }
  0x58   :  { %771 = vst.msk [vmem:[%s1474_s4 + $0x28] sm:$0xf] %vm760_vm3, %v754_v5  ;;  %v390_v8 = vmax.bf16 %v319_v14, %v131_v7  ;;  %v332_v51 = vrot.slane %v330_v50, 5  ;;  %v602_v58 = vrot.slane %v601_v48, 4  ;;  %v609_v57 = vshrl.u32 %v1338_v21, 16 }
  0x59   :  { %v693_v60 = vmax.bf16 %v677_v53, %v1275_v39  ;;  %v327_v62 = vor.u32 %v326_v54, %v323_v36  ;;  %v606_v63 = vrot.slane %v604_v37, 5  ;;  %v612_v52 = vshll.u32 %v1338_v21, 16  ;;  %v101_v36 = vld [vmem:[%s1472_s2 + $0x80] sm:$0xf] }
  0x5a   :  { %v406_v4 = vmax.bf16 %v390_v8, %v1297_v16  ;;  %v611_v7 = vrot.slane %v609_v57, 4  ;;  %v133_v10 = vmax.bf16 %v1351_v32, %v1346_v56  ;;  %v335_v39 = vshrl.u32 %v1346_v56, 16  ;;  %v1379_v16 = vld [vmem:[%s1472_s2 + $0x78] sm:$0xf] }
  0x5b   :  { %v709_v49 = vmax.bf16 %v693_v60, %v1268_v26  ;;  %v328_v13 = vrot.slane %v327_v62, 4  ;;  %v607_v15 = vsel %vm859_vm2, %v602_v58, %v606_v63  ;;  %v614_v61 = vrot.slane %v612_v52, 5  ;;  %v102_v58 = vld [vmem:[%s1472_s2 + $0x84] sm:$0x1]  ;;  %v117_v63 = vld [vmem:[%s1473_s3 + $0x78] sm:$0xf] }
  0x5c   :  { %v422_v6 = vmax.bf16 %v406_v4, %v115_v59  ;;  %v337_v19 = vrot.slane %v335_v39, 4  ;;  %v338_v55 = vshll.u32 %v1346_v56, 16  ;;  %v344_v20 = vshll.u32 %v48_v3, 16 }
  0x5d   :  { %v755_v22 = vmax.bf16 %v709_v49, %v319_v14  ;;  %v333_v24 = vsel %vm859_vm2, %v328_v13, %v332_v51  ;;  %v615_v26 = vor.u32 %v614_v61, %v611_v7  ;;  %v618_v25 = vshll.u32 %v98_v9, 16 }
  0x5e   :  { %v391_v0 = vmax.bf16 %v333_v24, %v132_v2  ;;  %v678_v12 = vmax.bf16 %v607_v15, %v422_v6  ;;  %v340_v28 = vrot.slane %v338_v55, 5  ;;  %v346_v29 = vrot.slane %v344_v20, 5 }
  0x5f   :  { %772 = vst.msk [vmem:[%s1474_s4 + $0x2c] sm:$0xf] %vm760_vm3, %v755_v22  ;;  %v616_v34 = vrot.slane %v615_v26, 4  ;;  %v620_v35 = vrot.slane %v618_v25, 5  ;;  %v623_v38 = vshrl.u32 %v1379_v16, 16  ;;  %v626_v40 = vshll.u32 %v1379_v16, 16 }
  0x60   :  { %v407_v41 = vmax.bf16 %v391_v0, %v1338_v21  ;;  %v694_v2 = vmax.bf16 %v678_v12, %v1314_v27  ;;  %v341_v42 = vor.u32 %v340_v28, %v337_v19  ;;  %v134_v43 = vmax.bf16 %v1387_v18, %v1392_v30 }
  0x61   :  { %v621_v44 = vsel %vm859_vm2, %v616_v34, %v620_v35  ;;  %v625_v45 = vrot.slane %v623_v38, 4  ;;  %v628_v46 = vrot.slane %v626_v40, 5  ;;  %v349_v47 = vshrl.u32 %v1392_v30, 16 }
  0x62   :  { %v423_v27 = vmax.bf16 %v407_v41, %v116_v33  ;;  %v710_v21 = vmax.bf16 %v694_v2, %v1305_v11  ;;  %v342_v23 = vrot.slane %v341_v42, 4  ;;  %v352_v5 = vshll.u32 %v1392_v30, 16  ;;  %v51_v11 = vld [vmem:[%s1470_s0 + $0x88] sm:$0xf] }
  0x63   :  { %v629_v48 = vor.u32 %v628_v46, %v625_v45  ;;  %v351_v50 = vrot.slane %v349_v47, 4  ;;  %v358_v14 = vshll.u32 %v50_v1, 16  ;;  %v632_v53 = vshll.u32 %v100_v17, 16 }
  0x64   :  { %v756_v54 = vmax.bf16 %v710_v21, %v333_v24  ;;  %v347_v37 = vsel %vm859_vm2, %v342_v23, %v346_v29  ;;  %v679_v8 = vmax.bf16 %v621_v44, %v423_v27  ;;  %v354_v51 = vrot.slane %v352_v5, 5 }
  0x65   :  { %v392_v57 = vmax.bf16 %v347_v37, %v133_v10  ;;  %v360_v59 = vrot.slane %v358_v14, 5  ;;  %v630_v60 = vrot.slane %v629_v48, 4  ;;  %v634_v62 = vrot.slane %v632_v53, 5 }
  0x66   :  { %773 = vst.msk [vmem:[%s1474_s4 + $0x30] sm:$0xf] %vm760_vm3, %v756_v54  ;;  %v695_v52 = vmax.bf16 %v679_v8, %v1346_v56  ;;  %v355_v3 = vor.u32 %v354_v51, %v351_v50  ;;  %v637_v4 = vshrl.u32 %v101_v36, 16  ;;  %v640_v7 = vshll.u32 %v101_v36, 16  ;;  %v52_v56 = vld [vmem:[%s1470_s0 + $0x8c] sm:$0x1] }
  0x67   :  { %v408_v9 = vmax.bf16 %v392_v57, %v1379_v16  ;;  %v635_v10 = vsel %vm859_vm2, %v630_v60, %v634_v62  ;;  %v646_v39 = vshll.u32 %v102_v58, 16  ;;  %v729_v49 = vshrl.u32 %v51_v11, 16 }
  0x68   :  { %v711_v13 = vmax.bf16 %v695_v52, %v1351_v32  ;;  %v356_v15 = vrot.slane %v355_v3, 4  ;;  %v639_v61 = vrot.slane %v637_v4, 4  ;;  %v642_v6 = vrot.slane %v640_v7, 5  ;;  %v118_v32 = vld [vmem:[%s1473_s3 + $0x80] sm:$0xf] }
  0x69   :  { %v424_v19 = vmax.bf16 %v408_v9, %v117_v63  ;;  %v731_v55 = vrot.slane %v729_v49, 4  ;;  %v732_v20 = vshll.u32 %v51_v11, 16  ;;  %v648_v26 = vrot.slane %v646_v39, 5 }
  0x6a   :  { %v757_v22 = vmax.bf16 %v711_v13, %v347_v37  ;;  %v361_v16 = vsel %vm859_vm2, %v356_v15, %v360_v59  ;;  %v643_v24 = vor.u32 %v642_v6, %v639_v61  ;;  %v738_v29 = vshll.u32 %v52_v56, 16 }
  0x6b   :  { %v393_v25 = vmax.bf16 %v361_v16, %v134_v43  ;;  %v680_v0 = vmax.bf16 %v635_v10, %v424_v19  ;;  %v734_v12 = vrot.slane %v732_v20, 5  ;;  %v70_v43 = vld [vmem:[%s1471_s1 + $0x88] sm:$0xf] }
  0x6c   :  { %774 = vst.msk [vmem:[%s1474_s4 + $0x34] sm:$0xf] %vm760_vm3, %v757_v22  ;;  %v644_v28 = vrot.slane %v643_v24, 4  ;;  %v740_v42 = vrot.slane %v738_v29, 5 }
  0x6d   :  { %v409_v33 = vmax.bf16 %v393_v25, %v101_v36  ;;  %v696_v34 = vmax.bf16 %v680_v0, %v1392_v30  ;;  %v735_v35 = vor.u32 %v734_v12, %v731_v55 }
  0x6e   :  { %v649_v38 = vsel %vm859_vm2, %v644_v28, %v648_v26 }
  0x6f   :  { %v425_v40 = vmax.bf16 %v409_v33, %v118_v32  ;;  %v712_v41 = vmax.bf16 %v696_v34, %v1387_v18  ;;  %v736_v2 = vrot.slane %v735_v35, 4 }
  0x71   :  { %v758_v1 = vmax.bf16 %v712_v41, %v361_v16  ;;  %v681_v17 = vmax.bf16 %v649_v38, %v425_v40  ;;  %v741_v44 = vsel %vm859_vm2, %v736_v2, %v740_v42 }
  0x73   :  { %775 = vst.msk [vmem:[%s1474_s4 + $0x38] sm:$0xf] %vm760_vm3, %v758_v1  ;;  %v697_v30 = vmax.bf16 %v681_v17, %v51_v11 }
  0x75   :  { %v713_v45 = vmax.bf16 %v697_v30, %v70_v43 }
  0x77   :  { %v759_v46 = vmax.bf16 %v741_v44, %v713_v45 }
  0x79   :  { %776 = vst.msk [vmem:[%s1474_s4 + $0x3c] sm:$0xf] %vm760_vm3, %v759_v46 }

// kernel: extractor_forward.14
= control target key start
LH: loop header
LB: loop body
LE: loop exit
PB: predicated region body
PF: predicated region fallthrough
CT: control target
= control target key end

     0   :  { %vm558_vm0 = vcmask 523264   ;;  %vm954_vm1 = vcmask 519168   ;;  %s1775_s1 = inlined_call_operand.vmem [shape: bf16[576,64], index: 1, kind: input, shape index: {}]   ;;  %s1776_s0 = inlined_call_operand.vmem [shape: bf16[128,576], index: 0, kind: input, shape index: {}]   ;;  %s1777_s2 = inlined_call_operand.vmem [shape: f32[1,64], index: 2, kind: input, shape index: {}]   ;;  %s1778_s3 = inlined_call_operand.vmem [shape: bf16[128,64], index: 3, kind: output, shape index: {}]  }
   0x1   :  { %v1264_v0 = vld [vmem:[%s1775_s1 + $0x78] sm:$0xff]   ;;  %v1268_v4 = vld [vmem:[%s1775_s1 + $0x70] sm:$0xff]   ;;  %v1272_v8 = vld [vmem:[%s1775_s1 + $0x68] sm:$0xff]  }
   0x2   :  { %v1265_v1 = vld [vmem:[%s1775_s1 + $0xf8] sm:$0xff]   ;;  %1092 = vmatprep.subr.bf16.mxu0 %v1264_v0  ;;  %v1269_v5 = vld [vmem:[%s1775_s1 + $0xf0] sm:$0xff]   ;;  %v1273_v9 = vld [vmem:[%s1775_s1 + $0xe8] sm:$0xff]  }
   0x3   :  { %v1266_v2 = vld [vmem:[%s1775_s1 + $0x38] sm:$0xff]   ;;  %1156 = vmatprep.subr.bf16.mxu1 %v1265_v1  ;;  %v1270_v6 = vld [vmem:[%s1775_s1 + $0x30] sm:$0xff]   ;;  %v1274_v10 = vld [vmem:[%s1775_s1 + $0x28] sm:$0xff]  }
   0x4   :  { %v1267_v3 = vld [vmem:[%s1775_s1 + $0xb8] sm:$0xff]   ;;  %1093 = vmatpush3.bf16.msra.mxu0 %v1266_v2  ;;  %v1271_v7 = vld [vmem:[%s1775_s1 + $0xb0] sm:$0xff]   ;;  %v1275_v11 = vld [vmem:[%s1775_s1 + $0xa8] sm:$0xff]  }
   0x5   :  { %1157 = vmatpush3.bf16.msra.mxu1 %v1267_v3  ;;  %1094 = vmatprep.subr.bf16.mxu0 %v1268_v4  ;;  %v1276_v12 = vld [vmem:[%s1775_s1 + $0x60] sm:$0xff]   ;;  %v1280_v16 = vld [vmem:[%s1775_s1 + $0x58] sm:$0xff]   ;;  %v1284_v20 = vld [vmem:[%s1775_s1 + $0x50] sm:$0xff]  }
   0x6   :  { %1158 = vmatprep.subr.bf16.mxu1 %v1269_v5  ;;  %v1277_v13 = vld [vmem:[%s1775_s1 + $0xe0] sm:$0xff]   ;;  %v1281_v17 = vld [vmem:[%s1775_s1 + $0xd8] sm:$0xff]   ;;  %v1285_v21 = vld [vmem:[%s1775_s1 + $0xd0] sm:$0xff]  }
   0x7   :  { %v1278_v14 = vld [vmem:[%s1775_s1 + $0x20] sm:$0xff]   ;;  %v1282_v18 = vld [vmem:[%s1775_s1 + $0x18] sm:$0xff]   ;;  %v1286_v22 = vld [vmem:[%s1775_s1 + $0x10] sm:$0xff]  }
   0x8   :  { %1095 = vmatpush3.bf16.msra.mxu0 %v1270_v6  ;;  %v1279_v15 = vld [vmem:[%s1775_s1 + $0xa0] sm:$0xff]   ;;  %v1283_v19 = vld [vmem:[%s1775_s1 + $0x98] sm:$0xff]   ;;  %v1287_v23 = vld [vmem:[%s1775_s1 + $0x90] sm:$0xff]  }
   0x9   :  { %1159 = vmatpush3.bf16.msra.mxu1 %v1271_v7  ;;  %1096 = vmatprep.subr.bf16.mxu0 %v1272_v8  ;;  %v1288_v24 = vld [vmem:[%s1775_s1 + $0x48] sm:$0xff]   ;;  %v1292_v28 = vld [vmem:[%s1775_s1 + $0x40] sm:$0xff]   ;;  %v1302_v36 = vld [vmem:[%s1775_s1 + $0x118] sm:$0xff]  }
   0xa   :  { %1160 = vmatprep.subr.bf16.mxu1 %v1273_v9  ;;  %v1289_v25 = vld [vmem:[%s1775_s1 + $0xc8] sm:$0xff]   ;;  %v1293_v29 = vld [vmem:[%s1775_s1 + $0xc0] sm:$0xff]   ;;  %v1315_v42 = vld [vmem:[%s1775_s1 + $0x110] sm:$0xff]  }
   0xb   :  { %v1290_v26 = vld [vmem:[%s1775_s1 + $0x8] sm:$0xff]   ;;  %v1294_v30 = vld [vmem:[%s1775_s1] sm:$0xff]   ;;  %v1311_v43 = vld [vmem:[%s1776_s0 + $0x5c] ss:$20 sps:$4 sm:$0xff]  }
   0xc   :  { %1097 = vmatpush3.bf16.msra.mxu0 %v1274_v10  ;;  %v1291_v27 = vld [vmem:[%s1775_s1 + $0x88] sm:$0xff]   ;;  %v1295_v31 = vld [vmem:[%s1775_s1 + $0x80] sm:$0xff]   ;;  %v1316_v47 = vld [vmem:[%s1776_s0 + $0x7c] ss:$20 sps:$4 sm:$0xff]  }
   0xd   :  { %1161 = vmatpush3.bf16.msra.mxu1 %v1275_v11  ;;  %1098 = vmatprep.subr.bf16.mxu0 %v1276_v12  ;;  %v1296_v32 = vld [vmem:[%s1776_s0] ss:$20 sps:$4 sm:$0xff]   ;;  %v1298_v33 = vld [vmem:[%s1776_s0 + $0x4] ss:$20 sps:$4 sm:$0xff]   ;;  %v1299_v34 = vld [vmem:[%s1776_s0 + $0x8] ss:$20 sps:$4 sm:$0xff]  }
   0xe   :  { %1162 = vmatprep.subr.bf16.mxu1 %v1277_v13  ;;  %v1301_v35 = vld [vmem:[%s1776_s0 + $0xc] ss:$20 sps:$4 sm:$0xff]   ;;  %615 = vmatprep.mubr.bf16.mxu0 %v1298_v33  ;;  %v1305_v38 = vld [vmem:[%s1776_s0 + $0x34] ss:$20 sps:$4 sm:$0xff]   ;;  %v1308_v40 = vld [vmem:[%s1776_s0 + $0x30] ss:$20 sps:$4 sm:$0xff]  }
   0xf   :  { %712 = vmatprep.mubr.bf16.mxu1 %v1301_v35  ;;  %v1303_v37 = vld [vmem:[%s1776_s0 + $0x2c] ss:$20 sps:$4 sm:$0xff]   ;;  %v1307_v39 = vld [vmem:[%s1776_s0 + $0x28] ss:$20 sps:$4 sm:$0xff]   ;;  %v1313_v44 = vld [vmem:[%s1776_s0 + $0x50] ss:$20 sps:$4 sm:$0xff]  }
  0x10   :  { %1099 = vmatpush3.bf16.msra.mxu0 %v1278_v14  ;;  %v1309_v41 = vld [vmem:[%s1776_s0 + $0x54] ss:$20 sps:$4 sm:$0xff]   ;;  %v1314_v45 = vld [vmem:[%s1776_s0 + $0x58] ss:$20 sps:$4 sm:$0xff]   ;;  %v1341_v49 = vld [vmem:[%s1775_s1 + $0x100] sm:$0xff]  }
  0x11   :  { %1163 = vmatpush3.bf16.msra.mxu1 %v1279_v15  ;;  %1100 = vmatprep.subr.bf16.mxu0 %v1280_v16  ;;  %v1328_v46 = vld [vmem:[%s1775_s1 + $0x108] sm:$0xff]   ;;  %v1318_v48 = vld [vmem:[%s1776_s0 + $0x84] ss:$20 sps:$4 sm:$0xff]   ;;  %v1321_v51 = vld [vmem:[%s1776_s0 + $0x80] ss:$20 sps:$4 sm:$0xff]  }
  0x12   :  { %1164 = vmatprep.subr.bf16.mxu1 %v1281_v17  ;;  %v1320_v50 = vld [vmem:[%s1776_s0 + $0x78] ss:$20 sps:$4 sm:$0xff]   ;;  %v1326_v54 = vld [vmem:[%s1776_s0 + $0xa0] ss:$20 sps:$4 sm:$0xff]   ;;  %v1327_v55 = vld [vmem:[%s1776_s0 + $0xa8] ss:$20 sps:$4 sm:$0xff]  }
  0x13   :  { %v1322_v52 = vld [vmem:[%s1776_s0 + $0xa4] ss:$20 sps:$4 sm:$0xff]   ;;  %v1324_v53 = vld [vmem:[%s1776_s0 + $0xac] ss:$20 sps:$4 sm:$0xff]   ;;  %v1331_v57 = vld [vmem:[%s1776_s0 + $0xd4] ss:$20 sps:$4 sm:$0xff]  }
  0x14   :  { %1101 = vmatpush3.bf16.msra.mxu0 %v1282_v18  ;;  %v1329_v56 = vld [vmem:[%s1776_s0 + $0xcc] ss:$20 sps:$4 sm:$0xff]   ;;  %v1333_v58 = vld [vmem:[%s1776_s0 + $0xc8] ss:$20 sps:$4 sm:$0xff]   ;;  %v1334_v59 = vld [vmem:[%s1776_s0 + $0xd0] ss:$20 sps:$4 sm:$0xff]  }
  0x15   :  { %1165 = vmatpush3.bf16.msra.mxu1 %v1283_v19  ;;  %1102 = vmatprep.subr.bf16.mxu0 %v1284_v20  ;;  %v1335_v60 = vld [vmem:[%s1776_s0 + $0xf4] ss:$20 sps:$4 sm:$0xff]   ;;  %v1337_v61 = vld [vmem:[%s1776_s0 + $0xfc] ss:$20 sps:$4 sm:$0xff]   ;;  %v1340_v63 = vld [vmem:[%s1776_s0 + $0xf8] ss:$20 sps:$4 sm:$0xff]  }
  0x16   :  { %1166 = vmatprep.subr.bf16.mxu1 %v1285_v21  ;;  %v1339_v62 = vld [vmem:[%s1776_s0 + $0xf0] ss:$20 sps:$4 sm:$0xff]   ;;  %v1346_v2 = vld [vmem:[%s1776_s0 + $0x118] ss:$20 sps:$4 sm:$0xff]   ;;  %v1347_v3 = vld [vmem:[%s1776_s0 + $0x120] ss:$20 sps:$4 sm:$0xff]  }
  0x17   :  { %v1342_v0 = vld [vmem:[%s1776_s0 + $0x11c] ss:$20 sps:$4 sm:$0xff]   ;;  %v1344_v1 = vld [vmem:[%s1776_s0 + $0x124] ss:$20 sps:$4 sm:$0xff]   ;;  %v1352_v8 = vld [vmem:[%s1776_s0 + $0x60] ss:$20 sps:$4 sm:$0xff]  }
  0x18   :  { %1103 = vmatpush3.bf16.msra.mxu0 %v1286_v22  ;;  %v1348_v4 = vld [vmem:[%s1776_s0 + $0x10] ss:$20 sps:$4 sm:$0xff]   ;;  %v1350_v6 = vld [vmem:[%s1776_s0 + $0x38] ss:$20 sps:$4 sm:$0xff]   ;;  %v1353_v9 = vld [vmem:[%s1776_s0 + $0x100] ss:$20 sps:$4 sm:$0xff]  }
  0x19   :  { %1167 = vmatpush3.bf16.msra.mxu1 %v1287_v23  ;;  %1104 = vmatprep.subr.bf16.mxu0 %v1288_v24  ;;  %v1349_v5 = vld [vmem:[%s1776_s0 + $0xb0] ss:$20 sps:$4 sm:$0xff]   ;;  %v1351_v7 = vld [vmem:[%s1776_s0 + $0xd8] ss:$20 sps:$4 sm:$0xff]   ;;  %v1354_v10 = vld [vmem:[%s1776_s0 + $0x88] ss:$20 sps:$4 sm:$0xff]  }
  0x1a   :  { %1168 = vmatprep.subr.bf16.mxu1 %v1289_v25  ;;  %v1355_v11 = vld [vmem:[%s1776_s0 + $0x128] ss:$20 sps:$4 sm:$0xff]  }
  0x1c   :  { %1105 = vmatpush3.bf16.msra.mxu0 %v1290_v26 }
  0x1d   :  { %1169 = vmatpush3.bf16.msra.mxu1 %v1291_v27  ;;  %1106 = vmatprep.subr.bf16.mxu0 %v1292_v28 }
  0x1e   :  { %1170 = vmatprep.subr.bf16.mxu1 %v1293_v29 }
  0x20   :  { %1107 = vmatpush3.bf16.msra.mxu0 %v1294_v30 }
  0x21   :  { %1171 = vmatpush3.bf16.msra.mxu1 %v1295_v31  ;;  %1232 = vmatprep.subr.bf16.mxu0 %v1302_v36 }
  0x22   :  { %1256 = vmatprep.subr.bf16.mxu1 %v1302_v36 }
  0x23   :  { %616 = vmatmul.mubr.bf16.vlgmr.msra.gmra.mxu0 %v1296_v32 }
  0x24   :  { %713 = vmatmul.mubr.bf16.vlgmr.msra.gmra.mxu1 %v1299_v34  ;;  %1233 = vmatpush3.bf16.msra.mxu0 %v1302_v36 }
  0x25   :  { %1260 = vmatpush3.bf16.msra.mxu1 %v1302_v36  ;;  %623 = vmatprep.mubr.bf16.mxu0 %v1303_v37 }
  0x26   :  { %720 = vmatprep.mubr.bf16.mxu1 %v1305_v38  ;;  %1234 = vmatprep.subr.bf16.mxu0 %v1315_v42 }
  0x27   :  { %1257 = vmatprep.subr.bf16.mxu1 %v1315_v42 }
  0x28   :  { %1235 = vmatpush3.bf16.msra.mxu0 %v1315_v42 }
  0x29   :  { %1261 = vmatpush3.bf16.msra.mxu1 %v1315_v42  ;;  %1236 = vmatprep.subr.bf16.mxu0 %v1328_v46 }
  0x2a   :  { %1258 = vmatprep.subr.bf16.mxu1 %v1328_v46 }
  0x2b   :  { %624 = vmatmul.mubr.bf16.gmra.mxu0 %v1307_v39 }
  0x2c   :  { %721 = vmatmul.mubr.bf16.gmra.mxu1 %v1308_v40  ;;  %631 = vmatprep.mubr.bf16.mxu0 %v1309_v41 }
  0x2d   :  { %728 = vmatprep.mubr.bf16.mxu1 %v1311_v43  ;;  %1237 = vmatpush3.bf16.msra.mxu0 %v1328_v46 }
  0x2e   :  { %1262 = vmatpush3.bf16.msra.mxu1 %v1328_v46  ;;  %1238 = vmatprep.subr.bf16.mxu0 %v1341_v49 }
  0x2f   :  { %1259 = vmatprep.subr.bf16.mxu1 %v1341_v49 }
  0x31   :  { %1239 = vmatpush3.bf16.msra.mxu0 %v1341_v49 }
  0x32   :  { %1263 = vmatpush3.bf16.msra.mxu1 %v1341_v49 }
  0x33   :  { %632 = vmatmul.mubr.bf16.gmra.mxu0 %v1313_v44 }
  0x34   :  { %729 = vmatmul.mubr.bf16.gmra.mxu1 %v1314_v45  ;;  %639 = vmatprep.mubr.bf16.mxu0 %v1316_v47 }
  0x35   :  { %736 = vmatprep.mubr.bf16.mxu1 %v1318_v48 }
  0x3b   :  { %640 = vmatmul.mubr.bf16.gmra.mxu0 %v1320_v50 }
  0x3c   :  { %737 = vmatmul.mubr.bf16.gmra.mxu1 %v1321_v51  ;;  %647 = vmatprep.mubr.bf16.mxu0 %v1322_v52 }
  0x3d   :  { %744 = vmatprep.mubr.bf16.mxu1 %v1324_v53 }
  0x43   :  { %648 = vmatmul.mubr.bf16.gmra.mxu0 %v1326_v54 }
  0x44   :  { %745 = vmatmul.mubr.bf16.gmra.mxu1 %v1327_v55  ;;  %655 = vmatprep.mubr.bf16.mxu0 %v1329_v56 }
  0x45   :  { %752 = vmatprep.mubr.bf16.mxu1 %v1331_v57 }
  0x4b   :  { %656 = vmatmul.mubr.bf16.gmra.mxu0 %v1333_v58 }
  0x4c   :  { %753 = vmatmul.mubr.bf16.gmra.mxu1 %v1334_v59  ;;  %663 = vmatprep.mubr.bf16.mxu0 %v1335_v60 }
  0x4d   :  { %760 = vmatprep.mubr.bf16.mxu1 %v1337_v61 }
  0x53   :  { %664 = vmatmul.mubr.bf16.gmra.mxu0 %v1339_v62 }
  0x54   :  { %761 = vmatmul.mubr.bf16.gmra.mxu1 %v1340_v63  ;;  %671 = vmatprep.mubr.bf16.mxu0 %v1342_v0 }
  0x55   :  { %768 = vmatprep.mubr.bf16.mxu1 %v1344_v1 }
  0x5b   :  { %672 = vmatmul.mubr.bf16.gmra.mxu0 %v1346_v2 }
  0x5c   :  { %769 = vmatmul.mubr.bf16.gmra.mxu1 %v1347_v3  ;;  %1240 = vmatprep.mubr.msk.bf16.mxu0 %vm558_vm0, %v1348_v4  ;;  %v1649_v3 = vld [vmem:[%s1777_s2] ss:$0 sm:$0xff] }
  0x5d   :  { %1248 = vmatprep.mubr.msk.bf16.mxu1 %vm558_vm0, %v1349_v5 }
  0x63   :  { %1241 = vmatmul.mubr.msk.bf16.vlgmr.msra.gmra.mxu0 %vm558_vm0, %v1350_v6 }
  0x64   :  { %1249 = vmatmul.mubr.msk.bf16.vlgmr.msra.gmra.mxu1 %vm558_vm0, %v1351_v7  ;;  %1244 = vmatprep.mubr.msk.bf16.mxu0 %vm558_vm0, %v1352_v8 }
  0x65   :  { %1252 = vmatprep.mubr.msk.bf16.mxu1 %vm558_vm0, %v1353_v9 }
  0x6b   :  { %1245 = vmatmul.mubr.msk.bf16.gmra.mxu0 %vm558_vm0, %v1354_v10 }
  0x6c   :  { %1253 = vmatmul.mubr.msk.bf16.gmra.mxu1 %vm558_vm0, %v1355_v11 }
  0xe3   :  { %v1108_v12 = vpop.f32.mrf.mxu0 }
  0xe4   :  { %v1172_v13 = vpop.f32.mrf.mxu1 }
  0xe5   :  { %v1109_v14 = vpop.f32.mrf.mxu0 }
  0xe6   :  { %v1173_v15 = vpop.f32.mrf.mxu1  ;;  %v1110_v63 = vadd.f32 %v1109_v14, %v1108_v12 }
  0xe7   :  { %v1111_v16 = vpop.f32.mrf.mxu0  ;;  %v1174_v10 = vadd.f32 %v1173_v15, %v1172_v13 }
  0xe8   :  { %v1175_v17 = vpop.f32.mrf.mxu1  ;;  %v618_v9 = vadd.f32 %v1110_v63, %v1649_v3 }
  0xe9   :  { %v1112_v18 = vpop.f32.mrf.mxu0 }
  0xea   :  { %v1176_v19 = vpop.f32.mrf.mxu1  ;;  %v1113_v0 = vadd.f32 %v1112_v18, %v1111_v16 }
  0xeb   :  { %v1114_v20 = vpop.f32.mrf.mxu0  ;;  %v1177_v16 = vadd.f32 %v1176_v19, %v1175_v17  ;;  %v715_v19 = vadd.f32 %v1174_v10, %v618_v9 }
  0xec   :  { %v1612_v21 = vpop.f32.mrf.mxu1  ;;  %v621_v11 = vadd.f32 %v1113_v0, %v1649_v3 }
  0xed   :  { %v1115_v22 = vpop.f32.mrf.mxu0 }
  0xee   :  { %v1179_v23 = vpop.f32.mrf.mxu1  ;;  %v1116_v1 = vadd.f32 %v1115_v22, %v1114_v20 }
  0xef   :  { %v1117_v24 = vpop.f32.mrf.mxu0 }
  0xf0   :  { %v1614_v25 = vpop.f32.mrf.mxu1  ;;  %v626_v12 = vadd.f32 %v1116_v1, %v1649_v3 }
  0xf1   :  { %v1118_v26 = vpop.f32.mrf.mxu0 }
  0xf2   :  { %v1182_v27 = vpop.f32.mrf.mxu1  ;;  %v1119_v4 = vadd.f32 %v1118_v26, %v1117_v24  ;;  %v1180_v26 = vadd.f32 %v1179_v23, %v1612_v21 }
  0xf3   :  { %v1120_v28 = vpop.f32.mrf.mxu0  ;;  %v1183_v13 = vadd.f32 %v1182_v27, %v1614_v25 }
  0xf4   :  { %v1184_v29 = vpop.f32.mrf.mxu1  ;;  %v629_v18 = vadd.f32 %v1119_v4, %v1649_v3  ;;  %v723_v17 = vadd.f32 %v1180_v26, %v626_v12  ;;  %v718_v4 = vadd.f32 %v1177_v16, %v621_v11 }
  0xf5   :  { %v1121_v30 = vpop.f32.mrf.mxu0 }
  0xf6   :  { %v1185_v31 = vpop.f32.mrf.mxu1  ;;  %v1122_v5 = vadd.f32 %v1121_v30, %v1120_v28  ;;  %v726_v23 = vadd.f32 %v1183_v13, %v629_v18 }
  0xf7   :  { %v1616_v32 = vpop.f32.mrf.mxu0  ;;  %v1186_v15 = vadd.f32 %v1185_v31, %v1184_v29 }
  0xf8   :  { %v1618_v33 = vpop.f32.mrf.mxu1  ;;  %v634_v20 = vadd.f32 %v1122_v5, %v1649_v3 }
  0xf9   :  { %v1620_v34 = vpop.f32.mrf.mxu0 }
  0xfa   :  { %v1622_v35 = vpop.f32.mrf.mxu1 }
  0xfb   :  { %v1126_v36 = vpop.f32.mrf.mxu0  ;;  %v1673_v25 = vadd.f32 %v1622_v35, %v1618_v33 }
  0xfc   :  { %v1624_v37 = vpop.f32.mrf.mxu1 }
  0xfd   :  { %v1127_v38 = vpop.f32.mrf.mxu0 }
  0xfe   :  { %v1626_v39 = vpop.f32.mrf.mxu1  ;;  %v1128_v28 = vadd.f32 %v1127_v38, %v1126_v36  ;;  %v1669_v36 = vadd.f32 %v1186_v15, %v634_v20 }
  0xff   :  { %v1129_v40 = vpop.f32.mrf.mxu0 }
 0x100   :  { %v1628_v41 = vpop.f32.mrf.mxu1  ;;  %v642_v27 = vadd.f32 %v1128_v28, %v1649_v3 }
 0x101   :  { %v1130_v42 = vpop.f32.mrf.mxu0 }
 0x102   :  { %v1630_v43 = vpop.f32.mrf.mxu1  ;;  %v1131_v30 = vadd.f32 %v1130_v42, %v1129_v40 }
 0x103   :  { %v1132_v44 = vpop.f32.mrf.mxu0  ;;  %v1195_v33 = vadd.f32 %v1630_v43, %v1628_v41 }
 0x104   :  { %v1632_v45 = vpop.f32.mrf.mxu1  ;;  %v645_v29 = vadd.f32 %v1131_v30, %v1649_v3 }
 0x105   :  { %v1133_v46 = vpop.f32.mrf.mxu0 }
 0x106   :  { %v1634_v47 = vpop.f32.mrf.mxu1  ;;  %v1694_v41 = vadd.f32 %v1195_v33, %v645_v29 }
 0x107   :  { %v1135_v48 = vpop.f32.mrf.mxu0  ;;  %v1198_v35 = vadd.f32 %v1634_v47, %v1632_v45 }
 0x108   :  { %v1636_v49 = vpop.f32.mrf.mxu1 }
 0x109   :  { %v1136_v50 = vpop.f32.mrf.mxu0 }
 0x10a   :  { %v1638_v51 = vpop.f32.mrf.mxu1  ;;  %v1137_v0 = vadd.f32 %v1136_v50, %v1135_v48 }
 0x10b   :  { %v1138_v52 = vpop.f32.mrf.mxu0 }
 0x10c   :  { %v1202_v53 = vpop.f32.mrf.mxu1 }
 0x10d   :  { %v1139_v54 = vpop.f32.mrf.mxu0 }
 0x10e   :  { %v1203_v55 = vpop.f32.mrf.mxu1  ;;  %v1140_v22 = vadd.f32 %v1139_v54, %v1138_v52  ;;  %v1125_v52 = vadd.f32 %v1620_v34, %v1616_v32  ;;  %v653_v32 = vadd.f32 %v1137_v0, %v1649_v3 }
 0x10f   :  { %v1141_v56 = vpop.f32.mrf.mxu0  ;;  %v1204_v34 = vadd.f32 %v1203_v55, %v1202_v53  ;;  %v1201_v53 = vadd.f32 %v1638_v51, %v1636_v49 }
 0x110   :  { %v1640_v57 = vpop.f32.mrf.mxu1  ;;  %v658_v54 = vadd.f32 %v1140_v22, %v1649_v3 }
 0x111   :  { %v1142_v58 = vpop.f32.mrf.mxu0 }
 0x112   :  { %v1206_v59 = vpop.f32.mrf.mxu1  ;;  %v1143_v1 = vadd.f32 %v1142_v58, %v1141_v56  ;;  %v1689_v56 = vadd.f32 %v1125_v52, %v1649_v3 }
 0x113   :  { %v1144_v60 = vpop.f32.mrf.mxu0  ;;  %v1207_v55 = vadd.f32 %v1206_v59, %v1640_v57 }
 0x114   :  { %v1642_v61 = vpop.f32.mrf.mxu1  ;;  %v661_v40 = vadd.f32 %v1143_v1, %v1649_v3 }
 0x115   :  { %v1145_v62 = vpop.f32.mrf.mxu0 }
 0x116   :  { %v1644_v2 = vpop.f32.mrf.mxu1  ;;  %v1146_v42 = vadd.f32 %v1145_v62, %v1144_v60  ;;  %v755_v60 = vadd.f32 %v1204_v34, %v658_v54 }
 0x117   :  { %v1651_v6 = vpop.f32.mrf.mxu0  ;;  %v1210_v9 = vadd.f32 %v1644_v2, %v1642_v61 }
 0x118   :  { %v1653_v7 = vpop.f32.mrf.mxu1  ;;  %v666_v43 = vadd.f32 %v1146_v42, %v1649_v3 }
 0x119   :  { %1779 = vst [vmem:[#allocation2_spill] sm:$0xff] %v1653_v7  ;;  %v1655_v8 = vpop.f32.mrf.mxu0  ;;  %v1134_v7 = vadd.f32 %v1133_v46, %v1132_v44  ;;  %v1192_v46 = vadd.f32 %v1626_v39, %v1624_v37 }
 0x11a   :  { %1780 = vst [vmem:[#allocation3_spill] sm:$0xff] %v1655_v8  ;;  %v1660_v14 = vpop.f32.mrf.mxu1  ;;  %v763_v0 = vadd.f32 %v1210_v9, %v666_v43 }
 0x11b   :  { %1781 = vst [vmem:[#allocation4_spill] sm:$0xff] %v1660_v14  ;;  %v1150_v24 = vpop.f32.mrf.mxu0  ;;  %v650_v31 = vadd.f32 %v1134_v7, %v1649_v3  ;;  %v739_v5 = vadd.f32 %v1192_v46, %v642_v27  ;;  %v758_v7 = vadd.f32 %v1207_v55, %v661_v40 }
 0x11c   :  { %v1214_v63 = vpop.f32.mrf.mxu1 }
 0x11d   :  { %v1151_v8 = vpop.f32.mrf.mxu0  ;;  %v747_v39 = vadd.f32 %v1198_v35, %v650_v31 }
 0x11e   :  { %v1215_v14 = vpop.f32.mrf.mxu1  ;;  %v1152_v48 = vadd.f32 %v1151_v8, %v1150_v24  ;;  %v750_v8 = vadd.f32 %v1201_v53, %v653_v32 }
 0x11f   :  { %v1153_v21 = vpop.f32.mrf.mxu0  ;;  %v1216_v22 = vadd.f32 %v1215_v14, %v1214_v63 }
 0x120   :  { %v1678_v38 = vpop.f32.mrf.mxu1  ;;  %v674_v49 = vadd.f32 %v1152_v48, %v1649_v3  ;;  %v1783_v46 = vld [vmem:[#allocation2_spill] sm:$0xff] }
 0x121   :  { %v1154_v44 = vpop.f32.mrf.mxu0  ;;  %v1782_v10 = vld [vmem:[#allocation3_spill] sm:$0xff] }
 0x122   :  { %v1218_v50 = vpop.f32.mrf.mxu1  ;;  %v1149_v11 = vadd.f32 %v1782_v10, %v1651_v6  ;;  %v1155_v12 = vadd.f32 %v1154_v44, %v1153_v21  ;;  %v771_v52 = vadd.f32 %v1216_v22, %v674_v49  ;;  %v1784_v33 = vld [vmem:[#allocation4_spill] sm:$0xff] }
 0x123   :  { %v1242_v58 = vpop.f32.mrf.mxu0  ;;  %v1219_v34 = vadd.f32 %v1218_v50, %v1678_v38  ;;  %v1213_v35 = vadd.f32 %v1784_v33, %v1783_v46 }
 0x124   :  { %v820_v62 = vadd.f32 %v1242_v58, %v723_v17  ;;  %v1250_v37 = vpop.f32.mrf.mxu1  ;;  %v677_v14 = vadd.f32 %v1155_v12, %v1649_v3  ;;  %v669_v27 = vadd.f32 %v1149_v11, %v1649_v3 }
 0x125   :  { %v852_v45 = vadd.f32 %v1250_v37, %v755_v60  ;;  %v811_v47 = vpop.f32.mrf.mxu0 }
 0x126   :  { %v876_v51 = vmax.f32 %v820_v62, 0.0  ;;  %v812_v57 = vadd.f32 %v811_v47, %v715_v19  ;;  %v843_v59 = vpop.f32.mrf.mxu1  ;;  %v774_v37 = vadd.f32 %v1219_v34, %v677_v14  ;;  %v766_v49 = vadd.f32 %v1213_v35, %v669_v27 }
 0x127   :  { %v884_v16 = vmax.f32 %v852_v45, 0.0  ;;  %v844_v18 = vadd.f32 %v843_v59, %v747_v39  ;;  %v1243_v20 = vpop.f32.mrf.mxu0  ;;  %v734_v45 = vadd.f32 %v1673_v25, %v1689_v56 }
 0x128   :  { %v1078_v24 = vpack.c.bf16 %v876_v51, %v876_v51  ;;  %v874_v26 = vmax.f32 %v812_v57, 0.0  ;;  %v823_v28 = vadd.f32 %v1243_v20, %v726_v23  ;;  %v1251_v30 = vpop.f32.mrf.mxu1 }
 0x129   :  { %v1086_v13 = vpack.c.bf16 %v884_v16, %v884_v16  ;;  %v882_v15 = vmax.f32 %v844_v18, 0.0  ;;  %v855_v61 = vadd.f32 %v1251_v30, %v758_v7  ;;  %v814_v2 = vpop.f32.mrf.mxu0 }
 0x12a   :  { %957 = vst.msk [vmem:[%s1778_s3 + $0x8] sm:$0xf] %vm954_vm1, %v1078_v24  ;;  %v1076_v6 = vpack.c.bf16 %v874_v26, %v874_v26  ;;  %v877_v1 = vmax.f32 %v823_v28, 0.0  ;;  %v815_v17 = vadd.f32 %v814_v2, %v718_v4  ;;  %v846_v19 = vpop.f32.mrf.mxu1 }
 0x12b   :  { %965 = vst.msk [vmem:[%s1778_s3 + $0x28] sm:$0xf] %vm954_vm1, %v1086_v13  ;;  %v1084_v63 = vpack.c.bf16 %v882_v15, %v882_v15  ;;  %v885_v54 = vmax.f32 %v855_v61, 0.0  ;;  %v847_v21 = vadd.f32 %v846_v19, %v750_v8  ;;  %v1246_v23 = vpop.f32.mrf.mxu0 }
 0x12c   :  { %955 = vst.msk [vmem:[%s1778_s3] sm:$0xf] %vm954_vm1, %v1076_v6  ;;  %v1079_v4 = vpack.c.bf16 %v877_v1, %v877_v1  ;;  %v875_v29 = vmax.f32 %v815_v17, 0.0  ;;  %v836_v31 = vadd.f32 %v1246_v23, %v739_v5  ;;  %v1254_v32 = vpop.f32.mrf.mxu1 }
 0x12d   :  { %963 = vst.msk [vmem:[%s1778_s3 + $0x20] sm:$0xf] %vm954_vm1, %v1084_v63  ;;  %v1087_v40 = vpack.c.bf16 %v885_v54, %v885_v54  ;;  %v883_v42 = vmax.f32 %v847_v21, 0.0  ;;  %v868_v44 = vadd.f32 %v1254_v32, %v771_v52  ;;  %v827_v3 = vpop.f32.mrf.mxu0 }
 0x12e   :  { %958 = vst.msk [vmem:[%s1778_s3 + $0xc] sm:$0xf] %vm954_vm1, %v1079_v4  ;;  %v1077_v48 = vpack.c.bf16 %v875_v29, %v875_v29  ;;  %v880_v53 = vmax.f32 %v836_v31, 0.0  ;;  %v828_v38 = vadd.f32 %v827_v3, %v1669_v36  ;;  %v859_v50 = vpop.f32.mrf.mxu1 }
 0x12f   :  { %966 = vst.msk [vmem:[%s1778_s3 + $0x2c] sm:$0xf] %vm954_vm1, %v1087_v40  ;;  %v1085_v55 = vpack.c.bf16 %v883_v42, %v883_v42  ;;  %v888_v58 = vmax.f32 %v868_v44, 0.0  ;;  %v860_v60 = vadd.f32 %v859_v50, %v763_v0  ;;  %v1247_v62 = vpop.f32.mrf.mxu0 }
 0x130   :  { %956 = vst.msk [vmem:[%s1778_s3 + $0x4] sm:$0xf] %vm954_vm1, %v1077_v48  ;;  %v1082_v39 = vpack.c.bf16 %v880_v53, %v880_v53  ;;  %v878_v5 = vmax.f32 %v828_v38, 0.0  ;;  %v839_v36 = vadd.f32 %v1247_v62, %v1694_v41  ;;  %v1255_v43 = vpop.f32.mrf.mxu1 }
 0x131   :  { %964 = vst.msk [vmem:[%s1778_s3 + $0x24] sm:$0xf] %vm954_vm1, %v1085_v55  ;;  %v1090_v47 = vpack.c.bf16 %v888_v58, %v888_v58  ;;  %v886_v7 = vmax.f32 %v860_v60, 0.0  ;;  %v871_v8 = vadd.f32 %v1255_v43, %v774_v37  ;;  %v830_v9 = vpop.f32.mrf.mxu0 }
 0x132   :  { %961 = vst.msk [vmem:[%s1778_s3 + $0x18] sm:$0xf] %vm954_vm1, %v1082_v39  ;;  %v1080_v41 = vpack.c.bf16 %v878_v5, %v878_v5  ;;  %v881_v51 = vmax.f32 %v839_v36, 0.0  ;;  %v831_v57 = vadd.f32 %v830_v9, %v734_v45  ;;  %v862_v59 = vpop.f32.mrf.mxu1 }
 0x133   :  { %969 = vst.msk [vmem:[%s1778_s3 + $0x38] sm:$0xf] %vm954_vm1, %v1090_v47  ;;  %v1088_v25 = vpack.c.bf16 %v886_v7, %v886_v7  ;;  %v889_v56 = vmax.f32 %v871_v8, 0.0  ;;  %v863_v10 = vadd.f32 %v862_v59, %v766_v49 }
 0x134   :  { %959 = vst.msk [vmem:[%s1778_s3 + $0x10] sm:$0xf] %vm954_vm1, %v1080_v41  ;;  %v1083_v11 = vpack.c.bf16 %v881_v51, %v881_v51  ;;  %v879_v12 = vmax.f32 %v831_v57, 0.0 }
 0x135   :  { %967 = vst.msk [vmem:[%s1778_s3 + $0x30] sm:$0xf] %vm954_vm1, %v1088_v25  ;;  %v1091_v16 = vpack.c.bf16 %v889_v56, %v889_v56  ;;  %v887_v18 = vmax.f32 %v863_v10, 0.0 }
 0x136   :  { %962 = vst.msk [vmem:[%s1778_s3 + $0x1c] sm:$0xf] %vm954_vm1, %v1083_v11  ;;  %v1081_v20 = vpack.c.bf16 %v879_v12, %v879_v12 }
 0x137   :  { %970 = vst.msk [vmem:[%s1778_s3 + $0x3c] sm:$0xf] %vm954_vm1, %v1091_v16  ;;  %v1089_v22 = vpack.c.bf16 %v887_v18, %v887_v18 }
 0x138   :  { %960 = vst.msk [vmem:[%s1778_s3 + $0x14] sm:$0xf] %vm954_vm1, %v1081_v20 }
 0x139   :  { %968 = vst.msk [vmem:[%s1778_s3 + $0x34] sm:$0xf] %vm954_vm1, %v1089_v22 }

// kernel: extractor_forward.15
= control target key start
LH: loop header
LB: loop body
LE: loop exit
PB: predicated region body
PF: predicated region fallthrough
CT: control target
= control target key end

     0   :  { %vm561_vm0 = vcmask 523264   ;;  %vm1005_vm1 = vcmask 519168   ;;  %s2009_s1 = inlined_call_operand.vmem [shape: bf16[576,64], index: 1, kind: input, shape index: {}]   ;;  %s2010_s0 = inlined_call_operand.vmem [shape: bf16[128,576], index: 0, kind: input, shape index: {}]   ;;  %s2011_s3 = inlined_call_operand.vmem [shape: bf16[128,64], index: 3, kind: input, shape index: {}]   ;;  %s2012_s2 = inlined_call_operand.vmem [shape: f32[1,64], index: 2, kind: input, shape index: {}]   ;;  %s2013_s4 = inlined_call_operand.vmem [shape: bf16[128,64], index: 4, kind: output, shape index: {}]  }
   0x1   :  { %v1354_v0 = vld [vmem:[%s2009_s1 + $0x78] sm:$0xff]   ;;  %v1358_v4 = vld [vmem:[%s2009_s1 + $0x70] sm:$0xff]   ;;  %v1362_v8 = vld [vmem:[%s2009_s1 + $0x68] sm:$0xff]  }
   0x2   :  { %v1355_v1 = vld [vmem:[%s2009_s1 + $0xf8] sm:$0xff]   ;;  %1182 = vmatprep.subr.bf16.mxu0 %v1354_v0  ;;  %v1359_v5 = vld [vmem:[%s2009_s1 + $0xf0] sm:$0xff]   ;;  %v1363_v9 = vld [vmem:[%s2009_s1 + $0xe8] sm:$0xff]  }
   0x3   :  { %v1356_v2 = vld [vmem:[%s2009_s1 + $0x38] sm:$0xff]   ;;  %1246 = vmatprep.subr.bf16.mxu1 %v1355_v1  ;;  %v1360_v6 = vld [vmem:[%s2009_s1 + $0x30] sm:$0xff]   ;;  %v1364_v10 = vld [vmem:[%s2009_s1 + $0x28] sm:$0xff]  }
   0x4   :  { %v1357_v3 = vld [vmem:[%s2009_s1 + $0xb8] sm:$0xff]   ;;  %1183 = vmatpush3.bf16.msra.mxu0 %v1356_v2  ;;  %v1361_v7 = vld [vmem:[%s2009_s1 + $0xb0] sm:$0xff]   ;;  %v1365_v11 = vld [vmem:[%s2009_s1 + $0xa8] sm:$0xff]  }
   0x5   :  { %1247 = vmatpush3.bf16.msra.mxu1 %v1357_v3  ;;  %1184 = vmatprep.subr.bf16.mxu0 %v1358_v4  ;;  %v1366_v12 = vld [vmem:[%s2009_s1 + $0x60] sm:$0xff]   ;;  %v1370_v16 = vld [vmem:[%s2009_s1 + $0x58] sm:$0xff]   ;;  %v1374_v20 = vld [vmem:[%s2009_s1 + $0x50] sm:$0xff]  }
   0x6   :  { %1248 = vmatprep.subr.bf16.mxu1 %v1359_v5  ;;  %v1367_v13 = vld [vmem:[%s2009_s1 + $0xe0] sm:$0xff]   ;;  %v1371_v17 = vld [vmem:[%s2009_s1 + $0xd8] sm:$0xff]   ;;  %v1375_v21 = vld [vmem:[%s2009_s1 + $0xd0] sm:$0xff]  }
   0x7   :  { %v1368_v14 = vld [vmem:[%s2009_s1 + $0x20] sm:$0xff]   ;;  %v1372_v18 = vld [vmem:[%s2009_s1 + $0x18] sm:$0xff]   ;;  %v1376_v22 = vld [vmem:[%s2009_s1 + $0x10] sm:$0xff]  }
   0x8   :  { %1185 = vmatpush3.bf16.msra.mxu0 %v1360_v6  ;;  %v1369_v15 = vld [vmem:[%s2009_s1 + $0xa0] sm:$0xff]   ;;  %v1373_v19 = vld [vmem:[%s2009_s1 + $0x98] sm:$0xff]   ;;  %v1377_v23 = vld [vmem:[%s2009_s1 + $0x90] sm:$0xff]  }
   0x9   :  { %1249 = vmatpush3.bf16.msra.mxu1 %v1361_v7  ;;  %1186 = vmatprep.subr.bf16.mxu0 %v1362_v8  ;;  %v1378_v24 = vld [vmem:[%s2009_s1 + $0x48] sm:$0xff]   ;;  %v1382_v28 = vld [vmem:[%s2009_s1 + $0x40] sm:$0xff]   ;;  %v1392_v36 = vld [vmem:[%s2009_s1 + $0x118] sm:$0xff]  }
   0xa   :  { %1250 = vmatprep.subr.bf16.mxu1 %v1363_v9  ;;  %v1379_v25 = vld [vmem:[%s2009_s1 + $0xc8] sm:$0xff]   ;;  %v1383_v29 = vld [vmem:[%s2009_s1 + $0xc0] sm:$0xff]   ;;  %v1405_v42 = vld [vmem:[%s2009_s1 + $0x110] sm:$0xff]  }
   0xb   :  { %v1380_v26 = vld [vmem:[%s2009_s1 + $0x8] sm:$0xff]   ;;  %v1384_v30 = vld [vmem:[%s2009_s1] sm:$0xff]   ;;  %v1401_v43 = vld [vmem:[%s2010_s0 + $0x5c] ss:$20 sps:$4 sm:$0xff]  }
   0xc   :  { %1187 = vmatpush3.bf16.msra.mxu0 %v1364_v10  ;;  %v1381_v27 = vld [vmem:[%s2009_s1 + $0x88] sm:$0xff]   ;;  %v1385_v31 = vld [vmem:[%s2009_s1 + $0x80] sm:$0xff]   ;;  %v1406_v47 = vld [vmem:[%s2010_s0 + $0x7c] ss:$20 sps:$4 sm:$0xff]  }
   0xd   :  { %1251 = vmatpush3.bf16.msra.mxu1 %v1365_v11  ;;  %1188 = vmatprep.subr.bf16.mxu0 %v1366_v12  ;;  %v1386_v32 = vld [vmem:[%s2010_s0] ss:$20 sps:$4 sm:$0xff]   ;;  %v1388_v33 = vld [vmem:[%s2010_s0 + $0x4] ss:$20 sps:$4 sm:$0xff]   ;;  %v1389_v34 = vld [vmem:[%s2010_s0 + $0x8] ss:$20 sps:$4 sm:$0xff]  }
   0xe   :  { %1252 = vmatprep.subr.bf16.mxu1 %v1367_v13  ;;  %v1391_v35 = vld [vmem:[%s2010_s0 + $0xc] ss:$20 sps:$4 sm:$0xff]   ;;  %618 = vmatprep.mubr.bf16.mxu0 %v1388_v33  ;;  %v1395_v38 = vld [vmem:[%s2010_s0 + $0x34] ss:$20 sps:$4 sm:$0xff]   ;;  %v1398_v40 = vld [vmem:[%s2010_s0 + $0x30] ss:$20 sps:$4 sm:$0xff]  }
   0xf   :  { %715 = vmatprep.mubr.bf16.mxu1 %v1391_v35  ;;  %v1393_v37 = vld [vmem:[%s2010_s0 + $0x2c] ss:$20 sps:$4 sm:$0xff]   ;;  %v1397_v39 = vld [vmem:[%s2010_s0 + $0x28] ss:$20 sps:$4 sm:$0xff]   ;;  %v1403_v44 = vld [vmem:[%s2010_s0 + $0x50] ss:$20 sps:$4 sm:$0xff]  }
  0x10   :  { %1189 = vmatpush3.bf16.msra.mxu0 %v1368_v14  ;;  %v1399_v41 = vld [vmem:[%s2010_s0 + $0x54] ss:$20 sps:$4 sm:$0xff]   ;;  %v1404_v45 = vld [vmem:[%s2010_s0 + $0x58] ss:$20 sps:$4 sm:$0xff]   ;;  %v1431_v49 = vld [vmem:[%s2009_s1 + $0x100] sm:$0xff]  }
  0x11   :  { %1253 = vmatpush3.bf16.msra.mxu1 %v1369_v15  ;;  %1190 = vmatprep.subr.bf16.mxu0 %v1370_v16  ;;  %v1418_v46 = vld [vmem:[%s2009_s1 + $0x108] sm:$0xff]   ;;  %v1408_v48 = vld [vmem:[%s2010_s0 + $0x84] ss:$20 sps:$4 sm:$0xff]   ;;  %v1411_v51 = vld [vmem:[%s2010_s0 + $0x80] ss:$20 sps:$4 sm:$0xff]  }
  0x12   :  { %1254 = vmatprep.subr.bf16.mxu1 %v1371_v17  ;;  %v1410_v50 = vld [vmem:[%s2010_s0 + $0x78] ss:$20 sps:$4 sm:$0xff]   ;;  %v1416_v54 = vld [vmem:[%s2010_s0 + $0xa0] ss:$20 sps:$4 sm:$0xff]   ;;  %v1417_v55 = vld [vmem:[%s2010_s0 + $0xa8] ss:$20 sps:$4 sm:$0xff]  }
  0x13   :  { %v1412_v52 = vld [vmem:[%s2010_s0 + $0xa4] ss:$20 sps:$4 sm:$0xff]   ;;  %v1414_v53 = vld [vmem:[%s2010_s0 + $0xac] ss:$20 sps:$4 sm:$0xff]   ;;  %v1421_v57 = vld [vmem:[%s2010_s0 + $0xd4] ss:$20 sps:$4 sm:$0xff]  }
  0x14   :  { %1191 = vmatpush3.bf16.msra.mxu0 %v1372_v18  ;;  %v1419_v56 = vld [vmem:[%s2010_s0 + $0xcc] ss:$20 sps:$4 sm:$0xff]   ;;  %v1423_v58 = vld [vmem:[%s2010_s0 + $0xc8] ss:$20 sps:$4 sm:$0xff]   ;;  %v1424_v59 = vld [vmem:[%s2010_s0 + $0xd0] ss:$20 sps:$4 sm:$0xff]  }
  0x15   :  { %1255 = vmatpush3.bf16.msra.mxu1 %v1373_v19  ;;  %1192 = vmatprep.subr.bf16.mxu0 %v1374_v20  ;;  %v1425_v60 = vld [vmem:[%s2010_s0 + $0xf4] ss:$20 sps:$4 sm:$0xff]   ;;  %v1427_v61 = vld [vmem:[%s2010_s0 + $0xfc] ss:$20 sps:$4 sm:$0xff]   ;;  %v1430_v63 = vld [vmem:[%s2010_s0 + $0xf8] ss:$20 sps:$4 sm:$0xff]  }
  0x16   :  { %1256 = vmatprep.subr.bf16.mxu1 %v1375_v21  ;;  %v1429_v62 = vld [vmem:[%s2010_s0 + $0xf0] ss:$20 sps:$4 sm:$0xff]   ;;  %v1436_v2 = vld [vmem:[%s2010_s0 + $0x118] ss:$20 sps:$4 sm:$0xff]   ;;  %v1437_v3 = vld [vmem:[%s2010_s0 + $0x120] ss:$20 sps:$4 sm:$0xff]  }
  0x17   :  { %v1432_v0 = vld [vmem:[%s2010_s0 + $0x11c] ss:$20 sps:$4 sm:$0xff]   ;;  %v1434_v1 = vld [vmem:[%s2010_s0 + $0x124] ss:$20 sps:$4 sm:$0xff]   ;;  %v1442_v8 = vld [vmem:[%s2010_s0 + $0x60] ss:$20 sps:$4 sm:$0xff]  }
  0x18   :  { %1193 = vmatpush3.bf16.msra.mxu0 %v1376_v22  ;;  %v1438_v4 = vld [vmem:[%s2010_s0 + $0x10] ss:$20 sps:$4 sm:$0xff]   ;;  %v1440_v6 = vld [vmem:[%s2010_s0 + $0x38] ss:$20 sps:$4 sm:$0xff]   ;;  %v1443_v9 = vld [vmem:[%s2010_s0 + $0x100] ss:$20 sps:$4 sm:$0xff]  }
  0x19   :  { %1257 = vmatpush3.bf16.msra.mxu1 %v1377_v23  ;;  %1194 = vmatprep.subr.bf16.mxu0 %v1378_v24  ;;  %v1439_v5 = vld [vmem:[%s2010_s0 + $0xb0] ss:$20 sps:$4 sm:$0xff]   ;;  %v1441_v7 = vld [vmem:[%s2010_s0 + $0xd8] ss:$20 sps:$4 sm:$0xff]   ;;  %v1444_v10 = vld [vmem:[%s2010_s0 + $0x88] ss:$20 sps:$4 sm:$0xff]  }
  0x1a   :  { %1258 = vmatprep.subr.bf16.mxu1 %v1379_v25  ;;  %v1445_v11 = vld [vmem:[%s2010_s0 + $0x128] ss:$20 sps:$4 sm:$0xff]  }
  0x1c   :  { %1195 = vmatpush3.bf16.msra.mxu0 %v1380_v26 }
  0x1d   :  { %1259 = vmatpush3.bf16.msra.mxu1 %v1381_v27  ;;  %1196 = vmatprep.subr.bf16.mxu0 %v1382_v28 }
  0x1e   :  { %1260 = vmatprep.subr.bf16.mxu1 %v1383_v29 }
  0x20   :  { %1197 = vmatpush3.bf16.msra.mxu0 %v1384_v30 }
  0x21   :  { %1261 = vmatpush3.bf16.msra.mxu1 %v1385_v31  ;;  %1322 = vmatprep.subr.bf16.mxu0 %v1392_v36 }
  0x22   :  { %1346 = vmatprep.subr.bf16.mxu1 %v1392_v36 }
  0x23   :  { %619 = vmatmul.mubr.bf16.vlgmr.msra.gmra.mxu0 %v1386_v32 }
  0x24   :  { %716 = vmatmul.mubr.bf16.vlgmr.msra.gmra.mxu1 %v1389_v34  ;;  %1323 = vmatpush3.bf16.msra.mxu0 %v1392_v36 }
  0x25   :  { %1350 = vmatpush3.bf16.msra.mxu1 %v1392_v36  ;;  %626 = vmatprep.mubr.bf16.mxu0 %v1393_v37 }
  0x26   :  { %723 = vmatprep.mubr.bf16.mxu1 %v1395_v38  ;;  %1324 = vmatprep.subr.bf16.mxu0 %v1405_v42 }
  0x27   :  { %1347 = vmatprep.subr.bf16.mxu1 %v1405_v42 }
  0x28   :  { %1325 = vmatpush3.bf16.msra.mxu0 %v1405_v42 }
  0x29   :  { %1351 = vmatpush3.bf16.msra.mxu1 %v1405_v42  ;;  %1326 = vmatprep.subr.bf16.mxu0 %v1418_v46 }
  0x2a   :  { %1348 = vmatprep.subr.bf16.mxu1 %v1418_v46 }
  0x2b   :  { %627 = vmatmul.mubr.bf16.gmra.mxu0 %v1397_v39 }
  0x2c   :  { %724 = vmatmul.mubr.bf16.gmra.mxu1 %v1398_v40  ;;  %634 = vmatprep.mubr.bf16.mxu0 %v1399_v41 }
  0x2d   :  { %731 = vmatprep.mubr.bf16.mxu1 %v1401_v43  ;;  %1327 = vmatpush3.bf16.msra.mxu0 %v1418_v46 }
  0x2e   :  { %1352 = vmatpush3.bf16.msra.mxu1 %v1418_v46  ;;  %1328 = vmatprep.subr.bf16.mxu0 %v1431_v49 }
  0x2f   :  { %1349 = vmatprep.subr.bf16.mxu1 %v1431_v49 }
  0x31   :  { %1329 = vmatpush3.bf16.msra.mxu0 %v1431_v49 }
  0x32   :  { %1353 = vmatpush3.bf16.msra.mxu1 %v1431_v49 }
  0x33   :  { %635 = vmatmul.mubr.bf16.gmra.mxu0 %v1403_v44 }
  0x34   :  { %732 = vmatmul.mubr.bf16.gmra.mxu1 %v1404_v45  ;;  %642 = vmatprep.mubr.bf16.mxu0 %v1406_v47 }
  0x35   :  { %739 = vmatprep.mubr.bf16.mxu1 %v1408_v48 }
  0x3b   :  { %643 = vmatmul.mubr.bf16.gmra.mxu0 %v1410_v50 }
  0x3c   :  { %740 = vmatmul.mubr.bf16.gmra.mxu1 %v1411_v51  ;;  %650 = vmatprep.mubr.bf16.mxu0 %v1412_v52 }
  0x3d   :  { %747 = vmatprep.mubr.bf16.mxu1 %v1414_v53 }
  0x43   :  { %651 = vmatmul.mubr.bf16.gmra.mxu0 %v1416_v54 }
  0x44   :  { %748 = vmatmul.mubr.bf16.gmra.mxu1 %v1417_v55  ;;  %658 = vmatprep.mubr.bf16.mxu0 %v1419_v56 }
  0x45   :  { %755 = vmatprep.mubr.bf16.mxu1 %v1421_v57 }
  0x4b   :  { %659 = vmatmul.mubr.bf16.gmra.mxu0 %v1423_v58  ;;  %v1778_v58 = vld [vmem:[%s2011_s3 + $0x8] sm:$0xff]  }
  0x4c   :  { %756 = vmatmul.mubr.bf16.gmra.mxu1 %v1424_v59  ;;  %666 = vmatprep.mubr.bf16.mxu0 %v1425_v60  ;;  %2019 = vst [vmem:[#allocation3_spill] sm:$0xff] %v1778_v58  ;;  %v1783_v59 = vld [vmem:[%s2011_s3 + $0x28] sm:$0xff]   ;;  %v1788_v60 = vld [vmem:[%s2011_s3] sm:$0xff]  }
  0x4d   :  { %763 = vmatprep.mubr.bf16.mxu1 %v1427_v61  ;;  %2020 = vst [vmem:[#allocation4_spill] sm:$0xff] %v1783_v59 }
  0x53   :  { %667 = vmatmul.mubr.bf16.gmra.mxu0 %v1429_v62  ;;  %v1793_v62 = vld [vmem:[%s2011_s3 + $0x20] sm:$0xff]  }
  0x54   :  { %764 = vmatmul.mubr.bf16.gmra.mxu1 %v1430_v63  ;;  %674 = vmatprep.mubr.bf16.mxu0 %v1432_v0 }
  0x55   :  { %771 = vmatprep.mubr.bf16.mxu1 %v1434_v1  ;;  %v1800_v1 = vld [vmem:[%s2012_s2] ss:$0 sm:$0xff] }
  0x5b   :  { %675 = vmatmul.mubr.bf16.gmra.mxu0 %v1436_v2 }
  0x5c   :  { %772 = vmatmul.mubr.bf16.gmra.mxu1 %v1437_v3  ;;  %1330 = vmatprep.mubr.msk.bf16.mxu0 %vm561_vm0, %v1438_v4  ;;  %v1146_v3 = vunpack.c.h.bf16 %v1788_v60 }
  0x5d   :  { %1338 = vmatprep.mubr.msk.bf16.mxu1 %vm561_vm0, %v1439_v5  ;;  %v1828_v5 = vld [vmem:[%s2011_s3 + $0x30] sm:$0xff]  }
  0x63   :  { %1331 = vmatmul.mubr.msk.bf16.vlgmr.msra.gmra.mxu0 %vm561_vm0, %v1440_v6  ;;  %v1808_v6 = vld [vmem:[%s2011_s3 + $0x18] sm:$0xff]  }
  0x64   :  { %1339 = vmatmul.mubr.msk.bf16.vlgmr.msra.gmra.mxu1 %vm561_vm0, %v1441_v7  ;;  %1334 = vmatprep.mubr.msk.bf16.mxu0 %vm561_vm0, %v1442_v8  ;;  %v1813_v7 = vld [vmem:[%s2011_s3 + $0x38] sm:$0xff]  }
  0x65   :  { %1342 = vmatprep.mubr.msk.bf16.mxu1 %vm561_vm0, %v1443_v9 }
  0x6b   :  { %1335 = vmatmul.mubr.msk.bf16.gmra.mxu0 %vm561_vm0, %v1444_v10  ;;  %v1162_v10 = vunpack.c.h.bf16 %v1793_v62 }
  0x6c   :  { %1343 = vmatmul.mubr.msk.bf16.gmra.mxu1 %vm561_vm0, %v1445_v11 }
  0xe3   :  { %v1198_v12 = vpop.f32.mrf.mxu0 }
  0xe4   :  { %v1707_v13 = vpop.f32.mrf.mxu1 }
  0xe5   :  { %v1199_v14 = vpop.f32.mrf.mxu0 }
  0xe6   :  { %v1709_v15 = vpop.f32.mrf.mxu1  ;;  %v1200_v63 = vadd.f32 %v1199_v14, %v1198_v12  ;;  %v1823_v14 = vld [vmem:[%s2011_s3 + $0x10] sm:$0xff]  }
  0xe7   :  { %v1201_v16 = vpop.f32.mrf.mxu0 }
  0xe8   :  { %v1711_v17 = vpop.f32.mrf.mxu1  ;;  %v621_v11 = vadd.f32 %v1200_v63, %v1800_v1 }
  0xe9   :  { %v1202_v18 = vpop.f32.mrf.mxu0 }
  0xea   :  { %v1713_v19 = vpop.f32.mrf.mxu1  ;;  %v1203_v8 = vadd.f32 %v1202_v18, %v1201_v16 }
  0xeb   :  { %v1204_v20 = vpop.f32.mrf.mxu0 }
  0xec   :  { %v1715_v21 = vpop.f32.mrf.mxu1 }
  0xed   :  { %v1205_v22 = vpop.f32.mrf.mxu0 }
  0xee   :  { %v1717_v23 = vpop.f32.mrf.mxu1  ;;  %v1206_v4 = vadd.f32 %v1205_v22, %v1204_v20 }
  0xef   :  { %v1207_v24 = vpop.f32.mrf.mxu0 }
  0xf0   :  { %v1719_v25 = vpop.f32.mrf.mxu1 }
  0xf1   :  { %v1208_v26 = vpop.f32.mrf.mxu0 }
  0xf2   :  { %v1721_v27 = vpop.f32.mrf.mxu1  ;;  %v1209_v16 = vadd.f32 %v1208_v26, %v1207_v24  ;;  %v1264_v26 = vadd.f32 %v1709_v15, %v1707_v13  ;;  %v1267_v13 = vadd.f32 %v1713_v19, %v1711_v17 }
  0xf3   :  { %v1210_v28 = vpop.f32.mrf.mxu0 }
  0xf4   :  { %v1723_v29 = vpop.f32.mrf.mxu1  ;;  %v632_v20 = vadd.f32 %v1209_v16, %v1800_v1  ;;  %v1273_v16 = vadd.f32 %v1721_v27, %v1719_v25 }
  0xf5   :  { %v1211_v30 = vpop.f32.mrf.mxu0 }
  0xf6   :  { %v1725_v31 = vpop.f32.mrf.mxu1  ;;  %v1212_v12 = vadd.f32 %v1211_v30, %v1210_v28  ;;  %v624_v28 = vadd.f32 %v1203_v8, %v1800_v1  ;;  %v718_v8 = vadd.f32 %v1264_v26, %v621_v11 }
  0xf7   :  { %v1727_v32 = vpop.f32.mrf.mxu0  ;;  %v1276_v17 = vadd.f32 %v1725_v31, %v1723_v29 }
  0xf8   :  { %v1729_v33 = vpop.f32.mrf.mxu1  ;;  %v637_v15 = vadd.f32 %v1212_v12, %v1800_v1  ;;  %v1870_v11 = vadd.f32 %v1267_v13, %v624_v28 }
  0xf9   :  { %v1731_v34 = vpop.f32.mrf.mxu0 }
  0xfa   :  { %v1733_v35 = vpop.f32.mrf.mxu1  ;;  %v1215_v30 = vadd.f32 %v1731_v34, %v1727_v32 }
  0xfb   :  { %v1735_v36 = vpop.f32.mrf.mxu0 }
  0xfc   :  { %v1737_v37 = vpop.f32.mrf.mxu1  ;;  %v640_v19 = vadd.f32 %v1215_v30, %v1800_v1 }
  0xfd   :  { %v1739_v38 = vpop.f32.mrf.mxu0 }
  0xfe   :  { %v1741_v39 = vpop.f32.mrf.mxu1  ;;  %v1218_v22 = vadd.f32 %v1739_v38, %v1735_v36 }
  0xff   :  { %v1743_v40 = vpop.f32.mrf.mxu0 }
 0x100   :  { %v1745_v41 = vpop.f32.mrf.mxu1 }
 0x101   :  { %v1747_v42 = vpop.f32.mrf.mxu0 }
 0x102   :  { %v1749_v43 = vpop.f32.mrf.mxu1  ;;  %v1221_v32 = vadd.f32 %v1747_v42, %v1743_v40 }
 0x103   :  { %v1751_v44 = vpop.f32.mrf.mxu0 }
 0x104   :  { %v1753_v45 = vpop.f32.mrf.mxu1  ;;  %v648_v29 = vadd.f32 %v1221_v32, %v1800_v1 }
 0x105   :  { %v1755_v46 = vpop.f32.mrf.mxu0 }
 0x106   :  { %v1757_v47 = vpop.f32.mrf.mxu1  ;;  %v1224_v36 = vadd.f32 %v1755_v46, %v1751_v44  ;;  %v729_v44 = vadd.f32 %v1273_v16, %v632_v20  ;;  %v1279_v46 = vadd.f32 %v1733_v35, %v1729_v33 }
 0x107   :  { %v1759_v48 = vpop.f32.mrf.mxu0 }
 0x108   :  { %v1761_v49 = vpop.f32.mrf.mxu1 }
 0x109   :  { %v1763_v50 = vpop.f32.mrf.mxu0 }
 0x10a   :  { %v1765_v51 = vpop.f32.mrf.mxu1  ;;  %v1227_v40 = vadd.f32 %v1763_v50, %v1759_v48  ;;  %v1282_v48 = vadd.f32 %v1741_v39, %v1737_v37  ;;  %v653_v50 = vadd.f32 %v1224_v36, %v1800_v1 }
 0x10b   :  { %v1228_v52 = vpop.f32.mrf.mxu0 }
 0x10c   :  { %v1767_v53 = vpop.f32.mrf.mxu1  ;;  %v656_v33 = vadd.f32 %v1227_v40, %v1800_v1 }
 0x10d   :  { %v1229_v54 = vpop.f32.mrf.mxu0 }
 0x10e   :  { %v1769_v55 = vpop.f32.mrf.mxu1  ;;  %v1230_v38 = vadd.f32 %v1229_v54, %v1228_v52  ;;  %v1877_v54 = vadd.f32 %v1276_v17, %v637_v15 }
 0x10f   :  { %v1771_v56 = vpop.f32.mrf.mxu0  ;;  %v1294_v37 = vadd.f32 %v1769_v55, %v1767_v53 }
 0x110   :  { %v1773_v57 = vpop.f32.mrf.mxu1  ;;  %v661_v12 = vadd.f32 %v1230_v38, %v1800_v1 }
 0x111   :  { %2018 = vst [vmem:[#allocation2_spill] sm:$0xff] %v1773_v57  ;;  %v1232_v61 = vpop.f32.mrf.mxu0  ;;  %v629_v57 = vadd.f32 %v1206_v4, %v1800_v1  ;;  %v1270_v4 = vadd.f32 %v1717_v23, %v1715_v21  ;;  %v645_v21 = vadd.f32 %v1218_v22, %v1800_v1 }
 0x112   :  { %v1795_v0 = vpop.f32.mrf.mxu1  ;;  %v1233_v23 = vadd.f32 %v1232_v61, %v1771_v56  ;;  %v758_v55 = vadd.f32 %v1294_v37, %v661_v12 }
 0x113   :  { %2021 = vst [vmem:[#allocation5_spill] sm:$0xff] %v1795_v0  ;;  %v1234_v2 = vpop.f32.mrf.mxu0  ;;  %v726_v27 = vadd.f32 %v1270_v4, %v629_v57  ;;  %v1285_v57 = vadd.f32 %v1749_v43, %v1745_v41  ;;  %v1291_v41 = vadd.f32 %v1765_v51, %v1761_v49 }
 0x114   :  { %v1815_v9 = vpop.f32.mrf.mxu1  ;;  %v664_v39 = vadd.f32 %v1233_v23, %v1800_v1  ;;  %v2026_v23 = vld [vmem:[#allocation3_spill] sm:$0xff] }
 0x115   :  { %2022 = vst [vmem:[#allocation6_spill] sm:$0xff] %v1815_v9  ;;  %v1235_v18 = vpop.f32.mrf.mxu0  ;;  %v1154_v9 = vunpack.c.h.bf16 %v1823_v14  ;;  %v1896_v26 = vadd.f32 %v1285_v57, %v648_v29  ;;  %v753_v16 = vadd.f32 %v1291_v41, %v656_v33 }
 0x116   :  { %v1833_v59 = vpop.f32.mrf.mxu1  ;;  %v1236_v31 = vadd.f32 %v1235_v18, %v1234_v2  ;;  %v1886_v2 = vadd.f32 %v1279_v46, %v640_v19  ;;  %v1288_v18 = vadd.f32 %v1757_v47, %v1753_v45 }
 0x117   :  { %v1237_v0 = vpop.f32.mrf.mxu0 }
 0x118   :  { %v1846_v63 = vpop.f32.mrf.mxu1  ;;  %v669_v43 = vadd.f32 %v1236_v31, %v1800_v1  ;;  %v2023_v28 = vld [vmem:[#allocation2_spill] sm:$0xff]  ;;  %v750_v13 = vadd.f32 %v1288_v18, %v653_v50  ;;  %v2028_v50 = vld [vmem:[#allocation4_spill] sm:$0xff] }
 0x119   :  { %v1238_v24 = vpop.f32.mrf.mxu0  ;;  %v2029_v12 = vunpack.c.l.bf16 %v2028_v50 }
 0x11a   :  { %v1302_v34 = vpop.f32.mrf.mxu1  ;;  %v1239_v56 = vadd.f32 %v1238_v24, %v1237_v0  ;;  %v742_v0 = vadd.f32 %v1282_v48, %v645_v21  ;;  %v2024_v30 = vld [vmem:[#allocation5_spill] sm:$0xff] }
 0x11b   :  { %v1240_v58 = vpop.f32.mrf.mxu0  ;;  %v1297_v45 = vadd.f32 %v2024_v30, %v2023_v28  ;;  %v1303_v36 = vadd.f32 %v1302_v34, %v1846_v63 }
 0x11c   :  { %v1304_v42 = vpop.f32.mrf.mxu1  ;;  %v672_v47 = vadd.f32 %v1239_v56, %v1800_v1  ;;  %v2025_v15 = vld [vmem:[#allocation6_spill] sm:$0xff] }
 0x11d   :  { %v1241_v25 = vpop.f32.mrf.mxu0  ;;  %v1300_v32 = vadd.f32 %v1833_v59, %v2025_v15  ;;  %v761_v40 = vadd.f32 %v1297_v45, %v664_v39 }
 0x11e   :  { %v1305_v52 = vpop.f32.mrf.mxu1  ;;  %v1242_v35 = vadd.f32 %v1241_v25, %v1240_v58  ;;  %v2027_v25 = vunpack.c.l.bf16 %v2026_v23  ;;  %v1910_v57 = vadd.f32 %v1303_v36, %v672_v47 }
 0x11f   :  { %v1243_v61 = vpop.f32.mrf.mxu0  ;;  %v1306_v21 = vadd.f32 %v1305_v52, %v1304_v42  ;;  %v766_v48 = vadd.f32 %v1300_v32, %v669_v43  ;;  %v2032_v43 = vunpack.c.h.bf16 %v2026_v23 }
 0x120   :  { %v1307_v20 = vpop.f32.mrf.mxu1  ;;  %v677_v4 = vadd.f32 %v1242_v35, %v1800_v1 }
 0x121   :  { %v1244_v22 = vpop.f32.mrf.mxu0 }
 0x122   :  { %v1245_v58 = vadd.f32 %v1244_v22, %v1243_v61  ;;  %v1308_v24 = vpop.f32.mrf.mxu1  ;;  %v774_v52 = vadd.f32 %v1306_v21, %v677_v4  ;;  %v2035_v21 = vunpack.c.l.bf16 %v1813_v7 }
 0x123   :  { %v1332_v53 = vpop.f32.mrf.mxu0  ;;  %v1309_v59 = vadd.f32 %v1308_v24, %v1307_v20 }
 0x124   :  { %v823_v49 = vadd.f32 %v1332_v53, %v726_v27  ;;  %v1340_v51 = vpop.f32.mrf.mxu1  ;;  %v680_v38 = vadd.f32 %v1245_v58, %v1800_v1  ;;  %v2030_v1 = vunpack.c.l.bf16 %v1788_v60 }
 0x125   :  { %v855_v17 = vadd.f32 %v1340_v51, %v758_v55  ;;  %v814_v19 = vpop.f32.mrf.mxu0 }
 0x126   :  { %v911_v46 = vadd.f32 %v2027_v25, %v823_v49  ;;  %v815_v29 = vadd.f32 %v814_v19, %v718_v8  ;;  %v846_v31 = vpop.f32.mrf.mxu1  ;;  %v2031_v8 = vunpack.c.l.bf16 %v1793_v62  ;;  %v777_v39 = vadd.f32 %v1309_v59, %v680_v38 }
 0x127   :  { %v919_v27 = vadd.f32 %v2029_v12, %v855_v17  ;;  %v847_v56 = vadd.f32 %v846_v31, %v750_v13  ;;  %v1333_v61 = vpop.f32.mrf.mxu0  ;;  %v2036_v31 = vunpack.c.l.bf16 %v1823_v14 }
 0x128   :  { %v927_v63 = vmax.f32 %v911_v46, 0.0  ;;  %v909_v34 = vadd.f32 %v2030_v1, %v815_v29  ;;  %v826_v33 = vadd.f32 %v1333_v61, %v729_v44  ;;  %v1341_v42 = vpop.f32.mrf.mxu1  ;;  %v2033_v44 = vunpack.c.h.bf16 %v2028_v50 }
 0x129   :  { %v935_v35 = vmax.f32 %v919_v27, 0.0  ;;  %v917_v18 = vadd.f32 %v2031_v8, %v847_v56  ;;  %v858_v37 = vadd.f32 %v1341_v42, %v761_v40  ;;  %v817_v20 = vpop.f32.mrf.mxu0  ;;  %v2037_v56 = vunpack.c.l.bf16 %v1828_v5 }
 0x12a   :  { %v1129_v22 = vpack.c.bf16 %v927_v63, %v927_v63  ;;  %v925_v41 = vmax.f32 %v909_v34, 0.0  ;;  %v912_v58 = vadd.f32 %v2032_v43, %v826_v33  ;;  %v818_v24 = vadd.f32 %v817_v20, %v1870_v11  ;;  %v849_v28 = vpop.f32.mrf.mxu1 }
 0x12b   :  { %v1137_v30 = vpack.c.bf16 %v935_v35, %v935_v35  ;;  %v933_v45 = vmax.f32 %v917_v18, 0.0  ;;  %v920_v47 = vadd.f32 %v2033_v44, %v858_v37  ;;  %v850_v53 = vadd.f32 %v849_v28, %v753_v16  ;;  %v1336_v55 = vpop.f32.mrf.mxu0 }
 0x12c   :  { %1008 = vst.msk [vmem:[%s2013_s4 + $0x8] sm:$0xf] %vm1005_vm1, %v1129_v22  ;;  %v1127_v13 = vpack.c.bf16 %v925_v41, %v925_v41  ;;  %v928_v15 = vmax.f32 %v912_v58, 0.0  ;;  %v910_v32 = vadd.f32 %v1146_v3, %v818_v24  ;;  %v839_v4 = vadd.f32 %v1336_v55, %v742_v0  ;;  %v1344_v11 = vpop.f32.mrf.mxu1 }
 0x12d   :  { %1016 = vst.msk [vmem:[%s2013_s4 + $0x28] sm:$0xf] %vm1005_vm1, %v1137_v30  ;;  %v1135_v49 = vpack.c.bf16 %v933_v45, %v933_v45  ;;  %v936_v51 = vmax.f32 %v920_v47, 0.0  ;;  %v918_v16 = vadd.f32 %v1162_v10, %v850_v53  ;;  %v871_v36 = vadd.f32 %v1344_v11, %v774_v52  ;;  %v830_v38 = vpop.f32.mrf.mxu0 }
 0x12e   :  { %1006 = vst.msk [vmem:[%s2013_s4] sm:$0xf] %vm1005_vm1, %v1127_v13  ;;  %v1130_v60 = vpack.c.bf16 %v928_v15, %v928_v15  ;;  %v926_v3 = vmax.f32 %v910_v32, 0.0  ;;  %v2034_v0 = vunpack.c.l.bf16 %v1808_v6  ;;  %v831_v19 = vadd.f32 %v830_v38, %v1877_v54  ;;  %v862_v40 = vpop.f32.mrf.mxu1 }
 0x12f   :  { %1014 = vst.msk [vmem:[%s2013_s4 + $0x20] sm:$0xf] %vm1005_vm1, %v1135_v49  ;;  %v1138_v62 = vpack.c.bf16 %v936_v51, %v936_v51  ;;  %v934_v10 = vmax.f32 %v918_v16, 0.0  ;;  %v923_v23 = vadd.f32 %v2035_v21, %v871_v36  ;;  %v863_v25 = vadd.f32 %v862_v40, %v766_v48  ;;  %v1337_v46 = vpop.f32.mrf.mxu0 }
 0x130   :  { %v915_v17 = vadd.f32 %v2034_v0, %v839_v4  ;;  %1009 = vst.msk [vmem:[%s2013_s4 + $0xc] sm:$0xf] %vm1005_vm1, %v1130_v60  ;;  %v1128_v29 = vpack.c.bf16 %v926_v3, %v926_v3  ;;  %v913_v59 = vadd.f32 %v2036_v31, %v831_v19  ;;  %v842_v50 = vadd.f32 %v1337_v46, %v1896_v26  ;;  %v1345_v12 = vpop.f32.mrf.mxu1 }
 0x131   :  { %1017 = vst.msk [vmem:[%s2013_s4 + $0x2c] sm:$0xf] %vm1005_vm1, %v1138_v62  ;;  %v1136_v48 = vpack.c.bf16 %v934_v10, %v934_v10  ;;  %v939_v27 = vmax.f32 %v923_v23, 0.0  ;;  %v921_v61 = vadd.f32 %v2037_v56, %v863_v25  ;;  %v874_v63 = vadd.f32 %v1345_v12, %v777_v39  ;;  %v833_v1 = vpop.f32.mrf.mxu0 }
 0x132   :  { %v931_v54 = vmax.f32 %v915_v17, 0.0  ;;  %1007 = vst.msk [vmem:[%s2013_s4 + $0x4] sm:$0xf] %vm1005_vm1, %v1128_v29  ;;  %v929_v26 = vmax.f32 %v913_v59, 0.0  ;;  %v2038_v33 = vunpack.c.h.bf16 %v1808_v6  ;;  %v834_v52 = vadd.f32 %v833_v1, %v1886_v2  ;;  %v865_v35 = vpop.f32.mrf.mxu1 }
 0x133   :  { %1015 = vst.msk [vmem:[%s2013_s4 + $0x24] sm:$0xf] %vm1005_vm1, %v1136_v48  ;;  %v1141_v8 = vpack.c.bf16 %v939_v27, %v939_v27  ;;  %v937_v18 = vmax.f32 %v921_v61, 0.0  ;;  %v2039_v37 = vunpack.c.h.bf16 %v1813_v7  ;;  %v866_v39 = vadd.f32 %v865_v35, %v1910_v57 }
 0x134   :  { %v1133_v34 = vpack.c.bf16 %v931_v54, %v931_v54  ;;  %v916_v42 = vadd.f32 %v2038_v33, %v842_v50  ;;  %v1131_v6 = vpack.c.bf16 %v929_v26, %v929_v26  ;;  %v914_v22 = vadd.f32 %v1154_v9, %v834_v52 }
 0x135   :  { %v924_v20 = vadd.f32 %v2039_v37, %v874_v63  ;;  %1020 = vst.msk [vmem:[%s2013_s4 + $0x38] sm:$0xf] %vm1005_vm1, %v1141_v8  ;;  %v1139_v41 = vpack.c.bf16 %v937_v18, %v937_v18  ;;  %v2040_v43 = vunpack.c.h.bf16 %v1828_v5 }
 0x136   :  { %1012 = vst.msk [vmem:[%s2013_s4 + $0x18] sm:$0xf] %vm1005_vm1, %v1133_v34  ;;  %v932_v2 = vmax.f32 %v916_v42, 0.0  ;;  %1010 = vst.msk [vmem:[%s2013_s4 + $0x10] sm:$0xf] %vm1005_vm1, %v1131_v6  ;;  %v930_v24 = vmax.f32 %v914_v22, 0.0 }
 0x137   :  { %v940_v7 = vmax.f32 %v924_v20, 0.0  ;;  %v922_v57 = vadd.f32 %v2040_v43, %v866_v39  ;;  %1018 = vst.msk [vmem:[%s2013_s4 + $0x30] sm:$0xf] %vm1005_vm1, %v1139_v41 }
 0x138   :  { %v1134_v58 = vpack.c.bf16 %v932_v2, %v932_v2  ;;  %v1132_v5 = vpack.c.bf16 %v930_v24, %v930_v24 }
 0x139   :  { %v1142_v9 = vpack.c.bf16 %v940_v7, %v940_v7  ;;  %v938_v14 = vmax.f32 %v922_v57, 0.0 }
 0x13a   :  { %1013 = vst.msk [vmem:[%s2013_s4 + $0x1c] sm:$0xf] %vm1005_vm1, %v1134_v58  ;;  %1011 = vst.msk [vmem:[%s2013_s4 + $0x14] sm:$0xf] %vm1005_vm1, %v1132_v5 }
 0x13b   :  { %1021 = vst.msk [vmem:[%s2013_s4 + $0x3c] sm:$0xf] %vm1005_vm1, %v1142_v9  ;;  %v1140_v28 = vpack.c.bf16 %v938_v14, %v938_v14 }
 0x13d   :  { %1019 = vst.msk [vmem:[%s2013_s4 + $0x34] sm:$0xf] %vm1005_vm1, %v1140_v28 }

// kernel: extractor_forward.19
= control target key start
LH: loop header
LB: loop body
LE: loop exit
PB: predicated region body
PF: predicated region fallthrough
CT: control target
= control target key end

     0   :  { %vm372_vm0 = vcmask 523264   ;;  %s913_s1 = inlined_call_operand.vmem [shape: bf16[576,128], index: 1, kind: input, shape index: {}]   ;;  %s914_s0 = inlined_call_operand.vmem [shape: bf16[32,576], index: 0, kind: input, shape index: {}]   ;;  %s915_s2 = inlined_call_operand.vmem [shape: f32[1,128], index: 2, kind: input, shape index: {}]   ;;  %s916_s3 = inlined_call_operand.vmem [shape: bf16[32,128], index: 3, kind: output, shape index: {}]  }
   0x1   :  { %v696_v0 = vld [vmem:[%s913_s1 + $0x78] sm:$0xff]   ;;  %v700_v4 = vld [vmem:[%s913_s1 + $0x70] sm:$0xff]   ;;  %v704_v8 = vld [vmem:[%s913_s1 + $0x68] sm:$0xff]  }
   0x2   :  { %v697_v1 = vld [vmem:[%s913_s1 + $0xf8] sm:$0xff]   ;;  %622 = vmatprep.subr.bf16.mxu0 %v696_v0  ;;  %v701_v5 = vld [vmem:[%s913_s1 + $0xf0] sm:$0xff]   ;;  %v705_v9 = vld [vmem:[%s913_s1 + $0xe8] sm:$0xff]  }
   0x3   :  { %v698_v2 = vld [vmem:[%s913_s1 + $0x38] sm:$0xff]   ;;  %650 = vmatprep.subr.bf16.mxu1 %v697_v1  ;;  %v702_v6 = vld [vmem:[%s913_s1 + $0x30] sm:$0xff]   ;;  %v706_v10 = vld [vmem:[%s913_s1 + $0x28] sm:$0xff]  }
   0x4   :  { %v699_v3 = vld [vmem:[%s913_s1 + $0xb8] sm:$0xff]   ;;  %623 = vmatpush3.bf16.msra.mxu0 %v698_v2  ;;  %v703_v7 = vld [vmem:[%s913_s1 + $0xb0] sm:$0xff]   ;;  %v707_v11 = vld [vmem:[%s913_s1 + $0xa8] sm:$0xff]  }
   0x5   :  { %651 = vmatpush3.bf16.msra.mxu1 %v699_v3  ;;  %624 = vmatprep.subr.bf16.mxu0 %v700_v4  ;;  %v708_v12 = vld [vmem:[%s913_s1 + $0x60] sm:$0xff]   ;;  %v712_v16 = vld [vmem:[%s913_s1 + $0x58] sm:$0xff]   ;;  %v716_v20 = vld [vmem:[%s913_s1 + $0x50] sm:$0xff]  }
   0x6   :  { %652 = vmatprep.subr.bf16.mxu1 %v701_v5  ;;  %v709_v13 = vld [vmem:[%s913_s1 + $0xe0] sm:$0xff]   ;;  %v713_v17 = vld [vmem:[%s913_s1 + $0xd8] sm:$0xff]   ;;  %v717_v21 = vld [vmem:[%s913_s1 + $0xd0] sm:$0xff]  }
   0x7   :  { %v710_v14 = vld [vmem:[%s913_s1 + $0x20] sm:$0xff]   ;;  %v714_v18 = vld [vmem:[%s913_s1 + $0x18] sm:$0xff]   ;;  %v718_v22 = vld [vmem:[%s913_s1 + $0x10] sm:$0xff]  }
   0x8   :  { %625 = vmatpush3.bf16.msra.mxu0 %v702_v6  ;;  %v711_v15 = vld [vmem:[%s913_s1 + $0xa0] sm:$0xff]   ;;  %v715_v19 = vld [vmem:[%s913_s1 + $0x98] sm:$0xff]   ;;  %v719_v23 = vld [vmem:[%s913_s1 + $0x90] sm:$0xff]  }
   0x9   :  { %653 = vmatpush3.bf16.msra.mxu1 %v703_v7  ;;  %626 = vmatprep.subr.bf16.mxu0 %v704_v8  ;;  %v720_v24 = vld [vmem:[%s913_s1 + $0x48] sm:$0xff]   ;;  %v724_v28 = vld [vmem:[%s913_s1 + $0x40] sm:$0xff]   ;;  %v734_v36 = vld [vmem:[%s913_s1 + $0x118] sm:$0xff]  }
   0xa   :  { %654 = vmatprep.subr.bf16.mxu1 %v705_v9  ;;  %v721_v25 = vld [vmem:[%s913_s1 + $0xc8] sm:$0xff]   ;;  %v725_v29 = vld [vmem:[%s913_s1 + $0xc0] sm:$0xff]   ;;  %v735_v37 = vld [vmem:[%s913_s1 + $0x110] sm:$0xff]  }
   0xb   :  { %v722_v26 = vld [vmem:[%s913_s1 + $0x8] sm:$0xff]   ;;  %v726_v30 = vld [vmem:[%s913_s1] sm:$0xff]  }
   0xc   :  { %627 = vmatpush3.bf16.msra.mxu0 %v706_v10  ;;  %v723_v27 = vld [vmem:[%s913_s1 + $0x88] sm:$0xff]   ;;  %v727_v31 = vld [vmem:[%s913_s1 + $0x80] sm:$0xff]  }
   0xd   :  { %655 = vmatpush3.bf16.msra.mxu1 %v707_v11  ;;  %628 = vmatprep.subr.bf16.mxu0 %v708_v12  ;;  %v728_v32 = vld [vmem:[%s914_s0] ss:$20 sps:$4 sm:$0xff]   ;;  %v730_v33 = vld [vmem:[%s914_s0 + $0x4] ss:$20 sps:$4 sm:$0xff]   ;;  %v731_v34 = vld [vmem:[%s914_s0 + $0x8] ss:$20 sps:$4 sm:$0xff]  }
   0xe   :  { %656 = vmatprep.subr.bf16.mxu1 %v709_v13  ;;  %v733_v35 = vld [vmem:[%s914_s0 + $0xc] ss:$20 sps:$4 sm:$0xff]   ;;  %411 = vmatprep.mubr.bf16.mxu0 %v730_v33  ;;  %v738_v39 = vld [vmem:[%s914_s0 + $0x34] ss:$20 sps:$4 sm:$0xff]   ;;  %v741_v42 = vld [vmem:[%s914_s0 + $0x30] ss:$20 sps:$4 sm:$0xff]  }
   0xf   :  { %460 = vmatprep.mubr.bf16.mxu1 %v733_v35  ;;  %v736_v38 = vld [vmem:[%s914_s0 + $0x2c] ss:$20 sps:$4 sm:$0xff]   ;;  %v740_v40 = vld [vmem:[%s914_s0 + $0x28] ss:$20 sps:$4 sm:$0xff]   ;;  %v744_v43 = vld [vmem:[%s914_s0 + $0x10] ss:$20 sps:$4 sm:$0xff]  }
  0x10   :  { %629 = vmatpush3.bf16.msra.mxu0 %v710_v14  ;;  %v742_v41 = vld [vmem:[%s913_s1 + $0x108] sm:$0xff]   ;;  %v743_v44 = vld [vmem:[%s913_s1 + $0x100] sm:$0xff]  }
  0x11   :  { %657 = vmatpush3.bf16.msra.mxu1 %v711_v15  ;;  %630 = vmatprep.subr.bf16.mxu0 %v712_v16  ;;  %v745_v45 = vld [vmem:[%s914_s0 + $0x38] ss:$20 sps:$4 sm:$0xff]   ;;  %v554_v59 = vld [vmem:[%s915_s2] ss:$0 sm:$0xff] }
  0x12   :  { %658 = vmatprep.subr.bf16.mxu1 %v713_v17 }
  0x14   :  { %631 = vmatpush3.bf16.msra.mxu0 %v714_v18 }
  0x15   :  { %659 = vmatpush3.bf16.msra.mxu1 %v715_v19  ;;  %632 = vmatprep.subr.bf16.mxu0 %v716_v20 }
  0x16   :  { %660 = vmatprep.subr.bf16.mxu1 %v717_v21 }
  0x18   :  { %633 = vmatpush3.bf16.msra.mxu0 %v718_v22 }
  0x19   :  { %661 = vmatpush3.bf16.msra.mxu1 %v719_v23  ;;  %634 = vmatprep.subr.bf16.mxu0 %v720_v24 }
  0x1a   :  { %662 = vmatprep.subr.bf16.mxu1 %v721_v25 }
  0x1c   :  { %635 = vmatpush3.bf16.msra.mxu0 %v722_v26 }
  0x1d   :  { %663 = vmatpush3.bf16.msra.mxu1 %v723_v27  ;;  %636 = vmatprep.subr.bf16.mxu0 %v724_v28 }
  0x1e   :  { %664 = vmatprep.subr.bf16.mxu1 %v725_v29 }
  0x20   :  { %637 = vmatpush3.bf16.msra.mxu0 %v726_v30 }
  0x21   :  { %665 = vmatpush3.bf16.msra.mxu1 %v727_v31  ;;  %684 = vmatprep.subr.bf16.mxu0 %v734_v36 }
  0x23   :  { %412 = vmatmul.mubr.bf16.vlgmr.msra.gmra.mxu0 %v728_v32 }
  0x24   :  { %461 = vmatmul.mubr.bf16.vlgmr.msra.gmra.mxu1 %v731_v34  ;;  %685 = vmatpush3.bf16.msra.mxu0 %v734_v36 }
  0x25   :  { %686 = vmatprep.subr.bf16.mxu0 %v735_v37  ;;  %419 = vmatprep.mubr.bf16.mxu0 %v736_v38 }
  0x26   :  { %468 = vmatprep.mubr.bf16.mxu1 %v738_v39 }
  0x28   :  { %687 = vmatpush3.bf16.msra.mxu0 %v735_v37 }
  0x29   :  { %688 = vmatprep.subr.bf16.mxu0 %v742_v41 }
  0x2b   :  { %420 = vmatmul.mubr.bf16.gmra.mxu0 %v740_v40 }
  0x2c   :  { %469 = vmatmul.mubr.bf16.gmra.mxu1 %v741_v42  ;;  %692 = vmatprep.mubr.msk.bf16.mxu0 %vm372_vm0, %v744_v43 }
  0x2d   :  { %689 = vmatpush3.bf16.msra.mxu0 %v742_v41 }
  0x2e   :  { %690 = vmatprep.subr.bf16.mxu0 %v743_v44 }
  0x31   :  { %691 = vmatpush3.bf16.msra.mxu0 %v743_v44 }
  0x34   :  { %693 = vmatmul.mubr.msk.bf16.vlgmr.msra.gmra.mxu0 %vm372_vm0, %v745_v45 }
  0xe3   :  { %v638_v46 = vpop.f32.mrf.mxu0 }
  0xe4   :  { %v666_v47 = vpop.f32.mrf.mxu1 }
  0xe5   :  { %v639_v48 = vpop.f32.mrf.mxu0 }
  0xe6   :  { %v667_v49 = vpop.f32.mrf.mxu1  ;;  %v640_v60 = vadd.f32 %v639_v48, %v638_v46 }
  0xe7   :  { %v641_v50 = vpop.f32.mrf.mxu0  ;;  %v668_v6 = vadd.f32 %v667_v49, %v666_v47 }
  0xe8   :  { %v669_v51 = vpop.f32.mrf.mxu1  ;;  %v414_v5 = vadd.f32 %v640_v60, %v554_v59 }
  0xe9   :  { %v642_v52 = vpop.f32.mrf.mxu0 }
  0xea   :  { %v670_v53 = vpop.f32.mrf.mxu1  ;;  %v643_v1 = vadd.f32 %v642_v52, %v641_v50  ;;  %v463_v16 = vadd.f32 %v668_v6, %v414_v5 }
  0xeb   :  { %v644_v54 = vpop.f32.mrf.mxu0  ;;  %v671_v14 = vadd.f32 %v670_v53, %v669_v51 }
  0xec   :  { %v672_v55 = vpop.f32.mrf.mxu1  ;;  %v417_v11 = vadd.f32 %v643_v1, %v554_v59 }
  0xed   :  { %v645_v56 = vpop.f32.mrf.mxu0 }
  0xee   :  { %v646_v57 = vadd.f32 %v645_v56, %v644_v54  ;;  %v673_v58 = vpop.f32.mrf.mxu1  ;;  %v466_v20 = vadd.f32 %v671_v14, %v417_v11 }
  0xef   :  { %v674_v61 = vadd.f32 %v673_v58, %v672_v55  ;;  %v647_v62 = vpop.f32.mrf.mxu0 }
  0xf0   :  { %v422_v63 = vadd.f32 %v646_v57, %v554_v59  ;;  %v675_v0 = vpop.f32.mrf.mxu1 }
  0xf1   :  { %v648_v2 = vpop.f32.mrf.mxu0 }
  0xf2   :  { %v649_v3 = vadd.f32 %v648_v2, %v647_v62  ;;  %v676_v4 = vpop.f32.mrf.mxu1  ;;  %v471_v7 = vadd.f32 %v674_v61, %v422_v63 }
  0xf3   :  { %v677_v9 = vadd.f32 %v676_v4, %v675_v0 }
  0xf4   :  { %v425_v8 = vadd.f32 %v649_v3, %v554_v59  ;;  %v694_v10 = vpop.f32.mrf.mxu0 }
  0xf5   :  { %v520_v15 = vadd.f32 %v694_v10, %v471_v7 }
  0xf6   :  { %v511_v12 = vpop.f32.mrf.mxu0  ;;  %v474_v13 = vadd.f32 %v677_v9, %v425_v8 }
  0xf7   :  { %v512_v18 = vadd.f32 %v511_v12, %v463_v16  ;;  %v528_v22 = vmax.f32 %v520_v15, 0.0 }
  0xf8   :  { %v695_v17 = vpop.f32.mrf.mxu0 }
  0xf9   :  { %v523_v19 = vadd.f32 %v695_v17, %v474_v13  ;;  %v526_v25 = vmax.f32 %v512_v18, 0.0 }
  0xfa   :  { %v514_v21 = vpop.f32.mrf.mxu0 }
  0xfb   :  { %v529_v23 = vmax.f32 %v523_v19, 0.0  ;;  %v515_v24 = vadd.f32 %v514_v21, %v466_v20 }
  0xfd   :  { %v619_v26 = vpack.c.bf16 %v529_v23, %v528_v22  ;;  %v527_v27 = vmax.f32 %v515_v24, 0.0 }
  0xff   :  { %621 = vst [vmem:[%s916_s3 + $0x8] sm:$0xff] %v619_v26   ;;  %v614_v28 = vpack.c.bf16 %v527_v27, %v526_v25 }
 0x101   :  { %615 = vst [vmem:[%s916_s3] sm:$0xff] %v614_v28  }

// kernel: extractor_forward.18
= control target key start
LH: loop header
LB: loop body
LE: loop exit
PB: predicated region body
PF: predicated region fallthrough
CT: control target
= control target key end

     0   :  { %vm68_vm0 = vcmask 523264   ;;  %s247_s1 = inlined_call_operand.vmem [shape: bf16[64,128], index: 1, kind: input, shape index: {}]   ;;  %s248_s0 = inlined_call_operand.vmem [shape: bf16[32,64], index: 0, kind: input, shape index: {}]   ;;  %s249_s2 = inlined_call_operand.vmem [shape: f32[1,128], index: 2, kind: input, shape index: {}]   ;;  %s250_s3 = inlined_call_operand.vmem [shape: bf16[32,128], index: 3, kind: output, shape index: {}]  }
   0x1   :  { %v194_v0 = vld [vmem:[%s247_s1 + $0x18] sm:$0xff]   ;;  %v195_v1 = vld [vmem:[%s247_s1 + $0x10] sm:$0xff]   ;;  %v196_v2 = vld [vmem:[%s247_s1 + $0x8] sm:$0xff]  }
   0x2   :  { %182 = vmatprep.subr.bf16.mxu0 %v194_v0  ;;  %v198_v3 = vld [vmem:[%s248_s0] sm:$0xff]   ;;  %v199_v5 = vld [vmem:[%s248_s0 + $0x8] sm:$0xff]  }
   0x3   :  { %183 = vmatpush3.bf16.msra.mxu0 %v194_v0  ;;  %190 = vmatprep.mubr.msk.bf16.mxu0 %vm68_vm0, %v198_v3  ;;  %v197_v4 = vld [vmem:[%s247_s1] sm:$0xff]  }
   0x4   :  { %184 = vmatprep.subr.bf16.mxu0 %v195_v1  ;;  %v148_v7 = vld [vmem:[%s249_s2] ss:$0 sm:$0xff] }
   0x7   :  { %185 = vmatpush3.bf16.msra.mxu0 %v195_v1 }
   0x8   :  { %186 = vmatprep.subr.bf16.mxu0 %v196_v2 }
   0xb   :  { %187 = vmatpush3.bf16.msra.mxu0 %v196_v2 }
   0xc   :  { %188 = vmatprep.subr.bf16.mxu0 %v197_v4 }
   0xf   :  { %189 = vmatpush3.bf16.msra.mxu0 %v197_v4 }
  0x12   :  { %191 = vmatmul.mubr.msk.bf16.vlgmr.msra.gmra.mxu0 %vm68_vm0, %v199_v5 }
  0xd2   :  { %v192_v6 = vpop.f32.mrf.mxu0 }
  0xd3   :  { %v118_v10 = vadd.f32 %v192_v6, %v148_v7 }
  0xd4   :  { %v109_v8 = vpop.f32.mrf.mxu0 }
  0xd5   :  { %v110_v13 = vadd.f32 %v148_v7, %v109_v8 }
  0xd6   :  { %v193_v9 = vpop.f32.mrf.mxu0 }
  0xd7   :  { %v121_v11 = vadd.f32 %v193_v9, %v148_v7 }
  0xd8   :  { %v112_v12 = vpop.f32.mrf.mxu0 }
  0xd9   :  { %v173_v14 = vpack.c.bf16 %v121_v11, %v118_v10  ;;  %v113_v15 = vadd.f32 %v148_v7, %v112_v12 }
  0xdb   :  { %175 = vst [vmem:[%s250_s3 + $0x8] sm:$0xff] %v173_v14   ;;  %v168_v16 = vpack.c.bf16 %v113_v15, %v110_v13 }
  0xdd   :  { %169 = vst [vmem:[%s250_s3] sm:$0xff] %v168_v16  }

// kernel: extractor_forward.23
= control target key start
LH: loop header
LB: loop body
LE: loop exit
PB: predicated region body
PF: predicated region fallthrough
CT: control target
= control target key end

     0   :  { %vm142_vm0 = vcmask 130048   ;;  %vm352_vm1 = vcmask 523264   ;;  %s745_s1 = inlined_call_operand.vmem [shape: bf16[16,64], index: 1, kind: input, shape index: {}]   ;;  %s746_s0 = inlined_call_operand.vmem [shape: bf16[256,16], index: 0, kind: input, shape index: {}]   ;;  %s747_s2 = inlined_call_operand.vmem [shape: f32[1,64], index: 2, kind: input, shape index: {}]   ;;  %s748_s3 = inlined_call_operand.vmem [shape: f32[256,64], index: 3, kind: output, shape index: {}]  }
   0x1   :  { %v476_v0 = vld [vmem:[%s745_s1] sm:$0xff]   ;;  %v479_v3 = vld [vmem:[%s746_s0 + $0x8] sm:$0xff]   ;;  %v481_v5 = vld [vmem:[%s746_s0 + $0x10] sm:$0xff]  }
   0x2   :  { %v477_v1 = vld [vmem:[%s746_s0] sm:$0xff]   ;;  %440 = vmatprep.subr.bf16.mxu0 %v476_v0  ;;  %474 = vmatprep.subr.bf16.mxu1 %v476_v0  ;;  %v480_v4 = vld [vmem:[%s746_s0 + $0x48] sm:$0xff]   ;;  %v482_v6 = vld [vmem:[%s746_s0 + $0x50] sm:$0xff]  }
   0x3   :  { %v478_v2 = vld [vmem:[%s746_s0 + $0x40] sm:$0xff]   ;;  %441 = vmatpush3.bf16.msra.mxu0 %v476_v0  ;;  %475 = vmatpush3.bf16.msra.mxu1 %v476_v0  ;;  %v483_v7 = vld [vmem:[%s746_s0 + $0x18] sm:$0xff]   ;;  %v487_v11 = vld [vmem:[%s746_s0 + $0x28] sm:$0xff]  }
   0x4   :  { %442 = vmatprep.mubr.msk.bf16.mxu0 %vm142_vm0, %v477_v1  ;;  %458 = vmatprep.mubr.msk.bf16.mxu1 %vm142_vm0, %v478_v2  ;;  %v484_v8 = vld [vmem:[%s746_s0 + $0x58] sm:$0xff]   ;;  %v485_v9 = vld [vmem:[%s746_s0 + $0x20] sm:$0xff]   ;;  %v488_v12 = vld [vmem:[%s746_s0 + $0x68] sm:$0xff]  }
   0x5   :  { %v486_v10 = vld [vmem:[%s746_s0 + $0x60] sm:$0xff]   ;;  %v489_v13 = vld [vmem:[%s746_s0 + $0x30] sm:$0xff]   ;;  %v491_v15 = vld [vmem:[%s746_s0 + $0x38] sm:$0xff]  }
   0x6   :  { %443 = vmatmul.mubr.msk.bf16.vlgmr.msra.gmra.mxu0 %vm142_vm0, %v479_v3  ;;  %459 = vmatmul.mubr.msk.bf16.vlgmr.msra.gmra.mxu1 %vm142_vm0, %v480_v4  ;;  %v490_v14 = vld [vmem:[%s746_s0 + $0x70] sm:$0xff]   ;;  %v492_v16 = vld [vmem:[%s746_s0 + $0x78] sm:$0xff]   ;;  %v583_v17 = vld [vmem:[%s747_s2] ss:$0 sm:$0xff] }
   0x7   :  { %446 = vmatprep.mubr.msk.bf16.mxu0 %vm142_vm0, %v481_v5  ;;  %462 = vmatprep.mubr.msk.bf16.mxu1 %vm142_vm0, %v482_v6 }
   0xe   :  { %447 = vmatmul.mubr.msk.bf16.gmra.mxu0 %vm142_vm0, %v483_v7  ;;  %463 = vmatmul.mubr.msk.bf16.gmra.mxu1 %vm142_vm0, %v484_v8 }
   0xf   :  { %450 = vmatprep.mubr.msk.bf16.mxu0 %vm142_vm0, %v485_v9  ;;  %466 = vmatprep.mubr.msk.bf16.mxu1 %vm142_vm0, %v486_v10 }
  0x16   :  { %451 = vmatmul.mubr.msk.bf16.gmra.mxu0 %vm142_vm0, %v487_v11  ;;  %467 = vmatmul.mubr.msk.bf16.gmra.mxu1 %vm142_vm0, %v488_v12 }
  0x17   :  { %454 = vmatprep.mubr.msk.bf16.mxu0 %vm142_vm0, %v489_v13  ;;  %470 = vmatprep.mubr.msk.bf16.mxu1 %vm142_vm0, %v490_v14 }
  0x1e   :  { %455 = vmatmul.mubr.msk.bf16.gmra.mxu0 %vm142_vm0, %v491_v15  ;;  %471 = vmatmul.mubr.msk.bf16.gmra.mxu1 %vm142_vm0, %v492_v16 }
  0xc6   :  { %v444_v18 = vpop.f32.mrf.mxu0  ;;  %v460_v19 = vpop.f32.mrf.mxu1 }
  0xc7   :  { %v234_v20 = vadd.f32 %v444_v18, %v583_v17  ;;  %v298_v21 = vadd.f32 %v460_v19, %v583_v17 }
  0xc8   :  { %v225_v22 = vpop.f32.mrf.mxu0  ;;  %v289_v23 = vpop.f32.mrf.mxu1 }
  0xc9   :  { %355 = vst.msk [vmem:[%s748_s3 + $0x10] sm:$0xff] %vm352_vm1, %v234_v20  ;;  %371 = vst.msk [vmem:[%s748_s3 + $0x90] sm:$0xff] %vm352_vm1, %v298_v21  ;;  %v226_v24 = vadd.f32 %v583_v17, %v225_v22  ;;  %v290_v25 = vadd.f32 %v583_v17, %v289_v23 }
  0xca   :  { %v445_v26 = vpop.f32.mrf.mxu0  ;;  %v461_v27 = vpop.f32.mrf.mxu1 }
  0xcb   :  { %353 = vst.msk [vmem:[%s748_s3] sm:$0xff] %vm352_vm1, %v226_v24  ;;  %369 = vst.msk [vmem:[%s748_s3 + $0x80] sm:$0xff] %vm352_vm1, %v290_v25  ;;  %v237_v28 = vadd.f32 %v445_v26, %v583_v17  ;;  %v301_v29 = vadd.f32 %v461_v27, %v583_v17 }
  0xcc   :  { %v228_v30 = vpop.f32.mrf.mxu0  ;;  %v292_v31 = vpop.f32.mrf.mxu1 }
  0xcd   :  { %356 = vst.msk [vmem:[%s748_s3 + $0x18] sm:$0xff] %vm352_vm1, %v237_v28  ;;  %372 = vst.msk [vmem:[%s748_s3 + $0x98] sm:$0xff] %vm352_vm1, %v301_v29  ;;  %v229_v32 = vadd.f32 %v583_v17, %v228_v30  ;;  %v293_v33 = vadd.f32 %v583_v17, %v292_v31 }
  0xce   :  { %v448_v34 = vpop.f32.mrf.mxu0  ;;  %v464_v35 = vpop.f32.mrf.mxu1 }
  0xcf   :  { %354 = vst.msk [vmem:[%s748_s3 + $0x8] sm:$0xff] %vm352_vm1, %v229_v32  ;;  %370 = vst.msk [vmem:[%s748_s3 + $0x88] sm:$0xff] %vm352_vm1, %v293_v33  ;;  %v250_v36 = vadd.f32 %v448_v34, %v583_v17  ;;  %v314_v37 = vadd.f32 %v464_v35, %v583_v17 }
  0xd0   :  { %v241_v38 = vpop.f32.mrf.mxu0  ;;  %v305_v39 = vpop.f32.mrf.mxu1 }
  0xd1   :  { %359 = vst.msk [vmem:[%s748_s3 + $0x30] sm:$0xff] %vm352_vm1, %v250_v36  ;;  %375 = vst.msk [vmem:[%s748_s3 + $0xb0] sm:$0xff] %vm352_vm1, %v314_v37  ;;  %v242_v40 = vadd.f32 %v583_v17, %v241_v38  ;;  %v306_v41 = vadd.f32 %v583_v17, %v305_v39 }
  0xd2   :  { %v449_v42 = vpop.f32.mrf.mxu0  ;;  %v465_v43 = vpop.f32.mrf.mxu1 }
  0xd3   :  { %357 = vst.msk [vmem:[%s748_s3 + $0x20] sm:$0xff] %vm352_vm1, %v242_v40  ;;  %373 = vst.msk [vmem:[%s748_s3 + $0xa0] sm:$0xff] %vm352_vm1, %v306_v41  ;;  %v253_v44 = vadd.f32 %v449_v42, %v583_v17  ;;  %v317_v45 = vadd.f32 %v465_v43, %v583_v17 }
  0xd4   :  { %v244_v46 = vpop.f32.mrf.mxu0  ;;  %v308_v47 = vpop.f32.mrf.mxu1 }
  0xd5   :  { %360 = vst.msk [vmem:[%s748_s3 + $0x38] sm:$0xff] %vm352_vm1, %v253_v44  ;;  %376 = vst.msk [vmem:[%s748_s3 + $0xb8] sm:$0xff] %vm352_vm1, %v317_v45  ;;  %v245_v48 = vadd.f32 %v583_v17, %v244_v46  ;;  %v309_v49 = vadd.f32 %v583_v17, %v308_v47 }
  0xd6   :  { %v452_v50 = vpop.f32.mrf.mxu0  ;;  %v468_v51 = vpop.f32.mrf.mxu1 }
  0xd7   :  { %358 = vst.msk [vmem:[%s748_s3 + $0x28] sm:$0xff] %vm352_vm1, %v245_v48  ;;  %374 = vst.msk [vmem:[%s748_s3 + $0xa8] sm:$0xff] %vm352_vm1, %v309_v49  ;;  %v266_v52 = vadd.f32 %v452_v50, %v583_v17  ;;  %v330_v53 = vadd.f32 %v468_v51, %v583_v17 }
  0xd8   :  { %v257_v54 = vpop.f32.mrf.mxu0  ;;  %v321_v55 = vpop.f32.mrf.mxu1 }
  0xd9   :  { %363 = vst.msk [vmem:[%s748_s3 + $0x50] sm:$0xff] %vm352_vm1, %v266_v52  ;;  %379 = vst.msk [vmem:[%s748_s3 + $0xd0] sm:$0xff] %vm352_vm1, %v330_v53  ;;  %v258_v56 = vadd.f32 %v583_v17, %v257_v54  ;;  %v322_v57 = vadd.f32 %v583_v17, %v321_v55 }
  0xda   :  { %v453_v58 = vpop.f32.mrf.mxu0  ;;  %v469_v59 = vpop.f32.mrf.mxu1 }
  0xdb   :  { %361 = vst.msk [vmem:[%s748_s3 + $0x40] sm:$0xff] %vm352_vm1, %v258_v56  ;;  %377 = vst.msk [vmem:[%s748_s3 + $0xc0] sm:$0xff] %vm352_vm1, %v322_v57  ;;  %v269_v60 = vadd.f32 %v453_v58, %v583_v17  ;;  %v333_v61 = vadd.f32 %v469_v59, %v583_v17 }
  0xdc   :  { %v260_v62 = vpop.f32.mrf.mxu0  ;;  %v324_v63 = vpop.f32.mrf.mxu1 }
  0xdd   :  { %364 = vst.msk [vmem:[%s748_s3 + $0x58] sm:$0xff] %vm352_vm1, %v269_v60  ;;  %380 = vst.msk [vmem:[%s748_s3 + $0xd8] sm:$0xff] %vm352_vm1, %v333_v61  ;;  %v261_v0 = vadd.f32 %v583_v17, %v260_v62  ;;  %v325_v1 = vadd.f32 %v583_v17, %v324_v63 }
  0xde   :  { %v456_v2 = vpop.f32.mrf.mxu0  ;;  %v472_v3 = vpop.f32.mrf.mxu1 }
  0xdf   :  { %362 = vst.msk [vmem:[%s748_s3 + $0x48] sm:$0xff] %vm352_vm1, %v261_v0  ;;  %378 = vst.msk [vmem:[%s748_s3 + $0xc8] sm:$0xff] %vm352_vm1, %v325_v1  ;;  %v282_v4 = vadd.f32 %v456_v2, %v583_v17  ;;  %v346_v5 = vadd.f32 %v472_v3, %v583_v17 }
  0xe0   :  { %v273_v6 = vpop.f32.mrf.mxu0  ;;  %v337_v7 = vpop.f32.mrf.mxu1 }
  0xe1   :  { %367 = vst.msk [vmem:[%s748_s3 + $0x70] sm:$0xff] %vm352_vm1, %v282_v4  ;;  %383 = vst.msk [vmem:[%s748_s3 + $0xf0] sm:$0xff] %vm352_vm1, %v346_v5  ;;  %v274_v8 = vadd.f32 %v583_v17, %v273_v6  ;;  %v338_v9 = vadd.f32 %v583_v17, %v337_v7 }
  0xe2   :  { %v457_v10 = vpop.f32.mrf.mxu0  ;;  %v473_v11 = vpop.f32.mrf.mxu1 }
  0xe3   :  { %365 = vst.msk [vmem:[%s748_s3 + $0x60] sm:$0xff] %vm352_vm1, %v274_v8  ;;  %381 = vst.msk [vmem:[%s748_s3 + $0xe0] sm:$0xff] %vm352_vm1, %v338_v9  ;;  %v285_v12 = vadd.f32 %v457_v10, %v583_v17  ;;  %v349_v13 = vadd.f32 %v473_v11, %v583_v17 }
  0xe4   :  { %v276_v14 = vpop.f32.mrf.mxu0  ;;  %v340_v15 = vpop.f32.mrf.mxu1 }
  0xe5   :  { %368 = vst.msk [vmem:[%s748_s3 + $0x78] sm:$0xff] %vm352_vm1, %v285_v12  ;;  %384 = vst.msk [vmem:[%s748_s3 + $0xf8] sm:$0xff] %vm352_vm1, %v349_v13  ;;  %v277_v16 = vadd.f32 %v583_v17, %v276_v14  ;;  %v341_v18 = vadd.f32 %v583_v17, %v340_v15 }
  0xe7   :  { %366 = vst.msk [vmem:[%s748_s3 + $0x68] sm:$0xff] %vm352_vm1, %v277_v16  ;;  %382 = vst.msk [vmem:[%s748_s3 + $0xe8] sm:$0xff] %vm352_vm1, %v341_v18 }

// kernel: extractor_forward.21
= control target key start
LH: loop header
LB: loop body
LE: loop exit
PB: predicated region body
PF: predicated region fallthrough
CT: control target
= control target key end

     0   :  { %s1632_s1 = inlined_call_operand.vmem [shape: bf16[1152,128], index: 1, kind: input, shape index: {}]   ;;  %s1633_s0 = inlined_call_operand.vmem [shape: bf16[32,1152], index: 0, kind: input, shape index: {}]   ;;  %s1634_s2 = inlined_call_operand.vmem [shape: f32[1,128], index: 2, kind: input, shape index: {}]   ;;  %s1635_s3 = inlined_call_operand.vmem [shape: bf16[32,128], index: 3, kind: output, shape index: {}]  }
   0x1   :  { %v1235_v0 = vld [vmem:[%s1632_s1 + $0x78] sm:$0xff]   ;;  %v1239_v4 = vld [vmem:[%s1632_s1 + $0x70] sm:$0xff]   ;;  %v1243_v8 = vld [vmem:[%s1632_s1 + $0x68] sm:$0xff]  }
   0x2   :  { %v1236_v1 = vld [vmem:[%s1632_s1 + $0x38] sm:$0xff]   ;;  %1093 = vmatprep.subr.bf16.mxu0 %v1235_v0  ;;  %v1240_v5 = vld [vmem:[%s1632_s1 + $0x30] sm:$0xff]   ;;  %v1244_v9 = vld [vmem:[%s1632_s1 + $0x28] sm:$0xff]  }
   0x3   :  { %v1237_v2 = vld [vmem:[%s1632_s1 + $0xf8] sm:$0xff]   ;;  %1094 = vmatpush3.bf16.msra.mxu0 %v1236_v1  ;;  %v1241_v6 = vld [vmem:[%s1632_s1 + $0xf0] sm:$0xff]   ;;  %v1245_v10 = vld [vmem:[%s1632_s1 + $0xe8] sm:$0xff]  }
   0x4   :  { %v1238_v3 = vld [vmem:[%s1632_s1 + $0xb8] sm:$0xff]   ;;  %1121 = vmatprep.subr.bf16.mxu1 %v1237_v2  ;;  %1095 = vmatprep.subr.bf16.mxu0 %v1239_v4  ;;  %v1242_v7 = vld [vmem:[%s1632_s1 + $0xb0] sm:$0xff]   ;;  %v1246_v11 = vld [vmem:[%s1632_s1 + $0xa8] sm:$0xff]  }
   0x5   :  { %1122 = vmatpush3.bf16.msra.mxu1 %v1238_v3  ;;  %v1247_v12 = vld [vmem:[%s1632_s1 + $0x60] sm:$0xff]   ;;  %v1251_v16 = vld [vmem:[%s1632_s1 + $0x58] sm:$0xff]   ;;  %v1255_v20 = vld [vmem:[%s1632_s1 + $0x50] sm:$0xff]  }
   0x6   :  { %1123 = vmatprep.subr.bf16.mxu1 %v1241_v6  ;;  %v1248_v13 = vld [vmem:[%s1632_s1 + $0x20] sm:$0xff]   ;;  %v1252_v17 = vld [vmem:[%s1632_s1 + $0x18] sm:$0xff]   ;;  %v1256_v21 = vld [vmem:[%s1632_s1 + $0x10] sm:$0xff]  }
   0x7   :  { %1096 = vmatpush3.bf16.msra.mxu0 %v1240_v5  ;;  %v1249_v14 = vld [vmem:[%s1632_s1 + $0xe0] sm:$0xff]   ;;  %v1253_v18 = vld [vmem:[%s1632_s1 + $0xd8] sm:$0xff]   ;;  %v1257_v22 = vld [vmem:[%s1632_s1 + $0xd0] sm:$0xff]  }
   0x8   :  { %1097 = vmatprep.subr.bf16.mxu0 %v1243_v8  ;;  %v1250_v15 = vld [vmem:[%s1632_s1 + $0xa0] sm:$0xff]   ;;  %v1254_v19 = vld [vmem:[%s1632_s1 + $0x98] sm:$0xff]   ;;  %v1258_v23 = vld [vmem:[%s1632_s1 + $0x90] sm:$0xff]  }
   0x9   :  { %1124 = vmatpush3.bf16.msra.mxu1 %v1242_v7  ;;  %v1259_v24 = vld [vmem:[%s1632_s1 + $0x48] sm:$0xff]   ;;  %v1263_v28 = vld [vmem:[%s1632_s1 + $0x40] sm:$0xff]   ;;  %v1270_v34 = vld [vmem:[%s1632_s1 + $0x178] sm:$0xff]  }
   0xa   :  { %1125 = vmatprep.subr.bf16.mxu1 %v1245_v10  ;;  %v1260_v25 = vld [vmem:[%s1632_s1 + $0x8] sm:$0xff]   ;;  %v1264_v29 = vld [vmem:[%s1632_s1] sm:$0xff]   ;;  %v1274_v37 = vld [vmem:[%s1632_s1 + $0x138] sm:$0xff]  }
   0xb   :  { %1098 = vmatpush3.bf16.msra.mxu0 %v1244_v9  ;;  %v1261_v26 = vld [vmem:[%s1632_s1 + $0xc8] sm:$0xff]   ;;  %v1265_v30 = vld [vmem:[%s1632_s1 + $0xc0] sm:$0xff]   ;;  %v1275_v38 = vld [vmem:[%s1632_s1 + $0x1f8] sm:$0xff]  }
   0xc   :  { %1099 = vmatprep.subr.bf16.mxu0 %v1247_v12  ;;  %v1262_v27 = vld [vmem:[%s1632_s1 + $0x88] sm:$0xff]   ;;  %v1266_v31 = vld [vmem:[%s1633_s0] ss:$36 sps:$4 sm:$0xff]   ;;  %v1276_v39 = vld [vmem:[%s1632_s1 + $0x1b8] sm:$0xff]  }
   0xd   :  { %1126 = vmatpush3.bf16.msra.mxu1 %v1246_v11  ;;  %v1268_v32 = vld [vmem:[%s1633_s0 + $0x4] ss:$36 sps:$4 sm:$0xff]   ;;  %v1273_v36 = vld [vmem:[%s1633_s0 + $0xc] ss:$36 sps:$4 sm:$0xff]   ;;  %v1289_v52 = vld [vmem:[%s1632_s1 + $0x158] sm:$0xff]  }
   0xe   :  { %1127 = vmatprep.subr.bf16.mxu1 %v1249_v14  ;;  %v1269_v33 = vld [vmem:[%s1632_s1 + $0x80] sm:$0xff]   ;;  %742 = vmatprep.mubr.bf16.mxu0 %v1268_v32  ;;  %v1271_v35 = vld [vmem:[%s1633_s0 + $0x8] ss:$36 sps:$4 sm:$0xff]   ;;  %v1277_v40 = vld [vmem:[%s1632_s1 + $0x170] sm:$0xff]  }
   0xf   :  { %1100 = vmatpush3.bf16.msra.mxu0 %v1248_v13  ;;  %791 = vmatprep.mubr.bf16.mxu1 %v1273_v36  ;;  %v1278_v41 = vld [vmem:[%s1632_s1 + $0x130] sm:$0xff]   ;;  %v1281_v44 = vld [vmem:[%s1632_s1 + $0x168] sm:$0xff]   ;;  %v1285_v48 = vld [vmem:[%s1632_s1 + $0x160] sm:$0xff]  }
  0x10   :  { %1101 = vmatprep.subr.bf16.mxu0 %v1251_v16  ;;  %v1279_v42 = vld [vmem:[%s1632_s1 + $0x1f0] sm:$0xff]   ;;  %v1282_v45 = vld [vmem:[%s1632_s1 + $0x128] sm:$0xff]   ;;  %v1286_v49 = vld [vmem:[%s1632_s1 + $0x120] sm:$0xff]  }
  0x11   :  { %1128 = vmatpush3.bf16.msra.mxu1 %v1250_v15  ;;  %v1280_v43 = vld [vmem:[%s1632_s1 + $0x1b0] sm:$0xff]   ;;  %v1283_v46 = vld [vmem:[%s1632_s1 + $0x1e8] sm:$0xff]   ;;  %v1287_v50 = vld [vmem:[%s1632_s1 + $0x1e0] sm:$0xff]  }
  0x12   :  { %1129 = vmatprep.subr.bf16.mxu1 %v1253_v18  ;;  %v1284_v47 = vld [vmem:[%s1632_s1 + $0x1a8] sm:$0xff]   ;;  %v1288_v51 = vld [vmem:[%s1632_s1 + $0x1a0] sm:$0xff]   ;;  %v1290_v53 = vld [vmem:[%s1632_s1 + $0x118] sm:$0xff]  }
  0x13   :  { %1102 = vmatpush3.bf16.msra.mxu0 %v1252_v17  ;;  %v1291_v54 = vld [vmem:[%s1633_s0 + $0x4c] ss:$36 sps:$4 sm:$0xff]   ;;  %v1293_v55 = vld [vmem:[%s1632_s1 + $0x1d8] sm:$0xff]   ;;  %v1307_v4 = vld [vmem:[%s1632_s1 + $0x140] sm:$0xff]  }
  0x14   :  { %1103 = vmatprep.subr.bf16.mxu0 %v1255_v20  ;;  %v1294_v56 = vld [vmem:[%s1633_s0 + $0x48] ss:$36 sps:$4 sm:$0xff]   ;;  %v1295_v57 = vld [vmem:[%s1632_s1 + $0x198] sm:$0xff]   ;;  %v1298_v59 = vld [vmem:[%s1632_s1 + $0x150] sm:$0xff]  }
  0x15   :  { %1130 = vmatpush3.bf16.msra.mxu1 %v1254_v19  ;;  %v1296_v58 = vld [vmem:[%s1633_s0 + $0x54] ss:$36 sps:$4 sm:$0xff]   ;;  %v1303_v0 = vld [vmem:[%s1632_s1 + $0x148] sm:$0xff]   ;;  %v1308_v5 = vld [vmem:[%s1632_s1 + $0x100] sm:$0xff]  }
  0x16   :  { %1131 = vmatprep.subr.bf16.mxu1 %v1257_v22  ;;  %v1299_v60 = vld [vmem:[%s1633_s0 + $0x50] ss:$36 sps:$4 sm:$0xff]   ;;  %v1304_v1 = vld [vmem:[%s1632_s1 + $0x108] sm:$0xff]   ;;  %v1309_v6 = vld [vmem:[%s1632_s1 + $0x1c0] sm:$0xff]  }
  0x17   :  { %1104 = vmatpush3.bf16.msra.mxu0 %v1256_v21  ;;  %v1300_v61 = vld [vmem:[%s1632_s1 + $0x110] sm:$0xff]   ;;  %v1305_v2 = vld [vmem:[%s1632_s1 + $0x1c8] sm:$0xff]   ;;  %v1313_v9 = vld [vmem:[%s1632_s1 + $0x180] sm:$0xff]  }
  0x18   :  { %1105 = vmatprep.subr.bf16.mxu0 %v1259_v24  ;;  %v1301_v62 = vld [vmem:[%s1632_s1 + $0x1d0] sm:$0xff]   ;;  %v1306_v3 = vld [vmem:[%s1632_s1 + $0x188] sm:$0xff]   ;;  %v1314_v10 = vld [vmem:[%s1632_s1 + $0x238] sm:$0xff]  }
  0x19   :  { %1132 = vmatpush3.bf16.msra.mxu1 %v1258_v23  ;;  %v1302_v63 = vld [vmem:[%s1632_s1 + $0x190] sm:$0xff]   ;;  %v1315_v11 = vld [vmem:[%s1633_s0 + $0x18] ss:$36 sps:$4 sm:$0xff]   ;;  %v1322_v16 = vld [vmem:[%s1632_s1 + $0x228] sm:$0xff]  }
  0x1a   :  { %1133 = vmatprep.subr.bf16.mxu1 %v1261_v26  ;;  %v1310_v7 = vld [vmem:[%s1633_s0 + $0x10] ss:$36 sps:$4 sm:$0xff]   ;;  %v1317_v12 = vld [vmem:[%s1633_s0 + $0x1c] ss:$36 sps:$4 sm:$0xff]   ;;  %v1323_v17 = vld [vmem:[%s1633_s0 + $0x64] ss:$36 sps:$4 sm:$0xff]  }
  0x1b   :  { %1106 = vmatpush3.bf16.msra.mxu0 %v1260_v25  ;;  %v1312_v8 = vld [vmem:[%s1633_s0 + $0x14] ss:$36 sps:$4 sm:$0xff]   ;;  %v1319_v14 = vld [vmem:[%s1633_s0 + $0x5c] ss:$36 sps:$4 sm:$0xff]   ;;  %v1329_v23 = vld [vmem:[%s1632_s1 + $0x208] sm:$0xff]  }
  0x1c   :  { %1107 = vmatprep.subr.bf16.mxu0 %v1263_v28  ;;  %v1318_v13 = vld [vmem:[%s1632_s1 + $0x230] sm:$0xff]   ;;  %v1321_v15 = vld [vmem:[%s1633_s0 + $0x58] ss:$36 sps:$4 sm:$0xff]   ;;  %v1325_v18 = vld [vmem:[%s1633_s0 + $0x60] ss:$36 sps:$4 sm:$0xff]  }
  0x1d   :  { %1134 = vmatpush3.bf16.msra.mxu1 %v1262_v27  ;;  %v1326_v19 = vld [vmem:[%s1632_s1 + $0x220] sm:$0xff]   ;;  %v1327_v20 = vld [vmem:[%s1632_s1 + $0x218] sm:$0xff]   ;;  %v1328_v22 = vld [vmem:[%s1632_s1 + $0x210] sm:$0xff]  }
  0x1e   :  { %1135 = vmatprep.subr.bf16.mxu1 %v1265_v30  ;;  %v1331_v21 = vld [vmem:[%s1633_s0 + $0x20] ss:$36 sps:$4 sm:$0xff]   ;;  %v1332_v25 = vld [vmem:[%s1633_s0 + $0x68] ss:$36 sps:$4 sm:$0xff]  }
  0x1f   :  { %1108 = vmatpush3.bf16.msra.mxu0 %v1264_v29  ;;  %v1330_v24 = vld [vmem:[%s1632_s1 + $0x200] sm:$0xff]  }
  0x20   :  { %1149 = vmatprep.subr.bf16.mxu0 %v1270_v34 }
  0x21   :  { %1136 = vmatpush3.bf16.msra.mxu1 %v1269_v33 }
  0x22   :  { %743 = vmatmul.mubr.bf16.vlgmr.msra.gmra.mxu0 %v1266_v31  ;;  %1177 = vmatprep.subr.bf16.mxu1 %v1275_v38 }
  0x23   :  { %1150 = vmatpush3.bf16.msra.mxu0 %v1274_v37  ;;  %750 = vmatprep.mubr.bf16.mxu0 %v1291_v54 }
  0x24   :  { %792 = vmatmul.mubr.bf16.vlgmr.msra.gmra.mxu1 %v1271_v35  ;;  %1151 = vmatprep.subr.bf16.mxu0 %v1277_v40 }
  0x25   :  { %1178 = vmatpush3.bf16.msra.mxu1 %v1276_v39  ;;  %799 = vmatprep.mubr.bf16.mxu1 %v1296_v58 }
  0x26   :  { %1179 = vmatprep.subr.bf16.mxu1 %v1279_v42 }
  0x27   :  { %1152 = vmatpush3.bf16.msra.mxu0 %v1278_v41 }
  0x28   :  { %1153 = vmatprep.subr.bf16.mxu0 %v1281_v44 }
  0x29   :  { %1180 = vmatpush3.bf16.msra.mxu1 %v1280_v43 }
  0x2a   :  { %1181 = vmatprep.subr.bf16.mxu1 %v1283_v46  ;;  %751 = vmatmul.mubr.bf16.gmra.mxu0 %v1294_v56 }
  0x2b   :  { %1154 = vmatpush3.bf16.msra.mxu0 %v1282_v45  ;;  %840 = vmatprep.mubr.bf16.mxu0 %v1312_v8 }
  0x2c   :  { %1155 = vmatprep.subr.bf16.mxu0 %v1285_v48  ;;  %800 = vmatmul.mubr.bf16.gmra.mxu1 %v1299_v60 }
  0x2d   :  { %1182 = vmatpush3.bf16.msra.mxu1 %v1284_v47  ;;  %889 = vmatprep.mubr.bf16.mxu1 %v1317_v12 }
  0x2e   :  { %1183 = vmatprep.subr.bf16.mxu1 %v1287_v50 }
  0x2f   :  { %1156 = vmatpush3.bf16.msra.mxu0 %v1286_v49 }
  0x30   :  { %1157 = vmatprep.subr.bf16.mxu0 %v1289_v52 }
  0x31   :  { %1184 = vmatpush3.bf16.msra.mxu1 %v1288_v51 }
  0x32   :  { %1185 = vmatprep.subr.bf16.mxu1 %v1293_v55 }
  0x33   :  { %1158 = vmatpush3.bf16.msra.mxu0 %v1290_v53 }
  0x34   :  { %1159 = vmatprep.subr.bf16.mxu0 %v1298_v59 }
  0x35   :  { %1186 = vmatpush3.bf16.msra.mxu1 %v1295_v57  ;;  %v983_v57 = vld [vmem:[%s1634_s2] ss:$0 sm:$0xff] }
  0x36   :  { %1187 = vmatprep.subr.bf16.mxu1 %v1301_v62 }
  0x37   :  { %1160 = vmatpush3.bf16.msra.mxu0 %v1300_v61 }
  0x38   :  { %1161 = vmatprep.subr.bf16.mxu0 %v1303_v0 }
  0x39   :  { %1188 = vmatpush3.bf16.msra.mxu1 %v1302_v63 }
  0x3a   :  { %1189 = vmatprep.subr.bf16.mxu1 %v1305_v2 }
  0x3b   :  { %1162 = vmatpush3.bf16.msra.mxu0 %v1304_v1 }
  0x3c   :  { %1163 = vmatprep.subr.bf16.mxu0 %v1307_v4 }
  0x3d   :  { %1190 = vmatpush3.bf16.msra.mxu1 %v1306_v3 }
  0x3e   :  { %1191 = vmatprep.subr.bf16.mxu1 %v1309_v6 }
  0x3f   :  { %1164 = vmatpush3.bf16.msra.mxu0 %v1308_v5 }
  0x40   :  { %1215 = vmatprep.subr.bf16.mxu0 %v1314_v10 }
  0x41   :  { %1192 = vmatpush3.bf16.msra.mxu1 %v1313_v9 }
  0x42   :  { %841 = vmatmul.mubr.bf16.vlgmr.msra.gmra.mxu0 %v1310_v7 }
  0x43   :  { %1216 = vmatpush3.bf16.msra.mxu0 %v1314_v10  ;;  %848 = vmatprep.mubr.bf16.mxu0 %v1319_v14 }
  0x44   :  { %890 = vmatmul.mubr.bf16.vlgmr.msra.gmra.mxu1 %v1315_v11  ;;  %1217 = vmatprep.subr.bf16.mxu0 %v1318_v13 }
  0x45   :  { %897 = vmatprep.mubr.bf16.mxu1 %v1323_v17 }
  0x47   :  { %1218 = vmatpush3.bf16.msra.mxu0 %v1318_v13 }
  0x48   :  { %1219 = vmatprep.subr.bf16.mxu0 %v1322_v16 }
  0x4a   :  { %849 = vmatmul.mubr.bf16.gmra.mxu0 %v1321_v15 }
  0x4b   :  { %1220 = vmatpush3.bf16.msra.mxu0 %v1322_v16  ;;  %1231 = vmatprep.mubr.bf16.mxu0 %v1331_v21 }
  0x4c   :  { %898 = vmatmul.mubr.bf16.gmra.mxu1 %v1325_v18  ;;  %1221 = vmatprep.subr.bf16.mxu0 %v1326_v19 }
  0x4f   :  { %1222 = vmatpush3.bf16.msra.mxu0 %v1326_v19 }
  0x50   :  { %1223 = vmatprep.subr.bf16.mxu0 %v1327_v20 }
  0x53   :  { %1224 = vmatpush3.bf16.msra.mxu0 %v1327_v20 }
  0x54   :  { %1225 = vmatprep.subr.bf16.mxu0 %v1328_v22 }
  0x57   :  { %1226 = vmatpush3.bf16.msra.mxu0 %v1328_v22 }
  0x58   :  { %1227 = vmatprep.subr.bf16.mxu0 %v1329_v23 }
  0x5b   :  { %1228 = vmatpush3.bf16.msra.mxu0 %v1329_v23 }
  0x5c   :  { %1229 = vmatprep.subr.bf16.mxu0 %v1330_v24 }
  0x5f   :  { %1230 = vmatpush3.bf16.msra.mxu0 %v1330_v24 }
  0x62   :  { %1232 = vmatmul.mubr.bf16.vlgmr.msra.gmra.mxu0 %v1332_v25 }
  0xe2   :  { %v1109_v26 = vpop.f32.mrf.mxu0 }
  0xe4   :  { %v1137_v27 = vpop.f32.mrf.mxu1  ;;  %v1110_v28 = vpop.f32.mrf.mxu0 }
  0xe5   :  { %v1111_v54 = vadd.f32 %v1110_v28, %v1109_v26 }
  0xe6   :  { %v1138_v29 = vpop.f32.mrf.mxu1  ;;  %v1112_v30 = vpop.f32.mrf.mxu0 }
  0xe7   :  { %v745_v62 = vadd.f32 %v1111_v54, %v983_v57  ;;  %v1139_v63 = vadd.f32 %v1138_v29, %v1137_v27 }
  0xe8   :  { %v1140_v31 = vpop.f32.mrf.mxu1  ;;  %v1113_v32 = vpop.f32.mrf.mxu0 }
  0xe9   :  { %v1114_v59 = vadd.f32 %v1113_v32, %v1112_v30  ;;  %v794_v10 = vadd.f32 %v1139_v63, %v745_v62 }
  0xea   :  { %v1115_v33 = vpop.f32.mrf.mxu0  ;;  %v1141_v34 = vpop.f32.mrf.mxu1 }
  0xeb   :  { %v748_v5 = vadd.f32 %v1114_v59, %v983_v57  ;;  %v1142_v6 = vadd.f32 %v1141_v34, %v1140_v31 }
  0xec   :  { %v1143_v35 = vpop.f32.mrf.mxu1  ;;  %v1116_v36 = vpop.f32.mrf.mxu0 }
  0xed   :  { %v1117_v53 = vadd.f32 %v1116_v36, %v1115_v33  ;;  %v797_v16 = vadd.f32 %v1142_v6, %v748_v5 }
  0xee   :  { %v1144_v37 = vpop.f32.mrf.mxu1  ;;  %v1118_v38 = vpop.f32.mrf.mxu0 }
  0xef   :  { %v753_v60 = vadd.f32 %v1117_v53, %v983_v57  ;;  %v1145_v61 = vadd.f32 %v1144_v37, %v1143_v35 }
  0xf0   :  { %v1146_v39 = vpop.f32.mrf.mxu1  ;;  %v1119_v40 = vpop.f32.mrf.mxu0 }
  0xf1   :  { %v1120_v58 = vadd.f32 %v1119_v40, %v1118_v38  ;;  %v802_v7 = vadd.f32 %v1145_v61, %v753_v60 }
  0xf2   :  { %v1147_v42 = vpop.f32.mrf.mxu1 }
  0xf3   :  { %v756_v2 = vadd.f32 %v1120_v58, %v983_v57  ;;  %v1148_v3 = vadd.f32 %v1147_v42, %v1146_v39 }
  0xf5   :  { %v805_v12 = vadd.f32 %v1148_v3, %v756_v2 }
 0x102   :  { %v1165_v41 = vpop.f32.mrf.mxu0 }
 0x104   :  { %v1166_v43 = vpop.f32.mrf.mxu0  ;;  %v1193_v44 = vpop.f32.mrf.mxu1 }
 0x105   :  { %v1167_v8 = vadd.f32 %v1166_v43, %v1165_v41 }
 0x106   :  { %v1168_v45 = vpop.f32.mrf.mxu0  ;;  %v1194_v46 = vpop.f32.mrf.mxu1 }
 0x107   :  { %v843_v17 = vadd.f32 %v1167_v8, %v794_v10  ;;  %v1195_v18 = vadd.f32 %v1194_v46, %v1193_v44 }
 0x108   :  { %v1169_v47 = vpop.f32.mrf.mxu0  ;;  %v1196_v48 = vpop.f32.mrf.mxu1 }
 0x109   :  { %v1170_v13 = vadd.f32 %v1169_v47, %v1168_v45  ;;  %v892_v27 = vadd.f32 %v1195_v18, %v843_v17 }
 0x10a   :  { %v1171_v49 = vpop.f32.mrf.mxu0  ;;  %v1197_v50 = vpop.f32.mrf.mxu1 }
 0x10b   :  { %v846_v22 = vadd.f32 %v1170_v13, %v797_v16  ;;  %v1198_v23 = vadd.f32 %v1197_v50, %v1196_v48 }
 0x10c   :  { %v1172_v51 = vpop.f32.mrf.mxu0  ;;  %v1199_v52 = vpop.f32.mrf.mxu1 }
 0x10d   :  { %v1173_v4 = vadd.f32 %v1172_v51, %v1171_v49  ;;  %v895_v32 = vadd.f32 %v1198_v23, %v846_v22 }
 0x10e   :  { %v1174_v55 = vpop.f32.mrf.mxu0  ;;  %v1200_v56 = vpop.f32.mrf.mxu1 }
 0x10f   :  { %v851_v14 = vadd.f32 %v1173_v4, %v802_v7  ;;  %v1201_v15 = vadd.f32 %v1200_v56, %v1199_v52 }
 0x110   :  { %v1175_v0 = vpop.f32.mrf.mxu0  ;;  %v1202_v1 = vpop.f32.mrf.mxu1 }
 0x111   :  { %v1176_v9 = vadd.f32 %v1175_v0, %v1174_v55  ;;  %v900_v24 = vadd.f32 %v1201_v15, %v851_v14 }
 0x112   :  { %v1203_v11 = vpop.f32.mrf.mxu1 }
 0x113   :  { %v854_v19 = vadd.f32 %v1176_v9, %v805_v12  ;;  %v1204_v20 = vadd.f32 %v1203_v11, %v1202_v1 }
 0x115   :  { %v903_v28 = vadd.f32 %v1204_v20, %v854_v19 }
 0x122   :  { %v1233_v21 = vpop.f32.mrf.mxu0 }
 0x123   :  { %v949_v26 = vadd.f32 %v1233_v21, %v900_v24 }
 0x124   :  { %v940_v25 = vpop.f32.mrf.mxu0 }
 0x125   :  { %v941_v30 = vadd.f32 %v940_v25, %v892_v27  ;;  %v957_v34 = vmax.f32 %v949_v26, 0.0 }
 0x126   :  { %v1234_v29 = vpop.f32.mrf.mxu0 }
 0x127   :  { %v952_v31 = vadd.f32 %v1234_v29, %v903_v28  ;;  %v955_v37 = vmax.f32 %v941_v30, 0.0 }
 0x128   :  { %v943_v33 = vpop.f32.mrf.mxu0 }
 0x129   :  { %v958_v35 = vmax.f32 %v952_v31, 0.0  ;;  %v944_v36 = vadd.f32 %v943_v33, %v895_v32 }
 0x12b   :  { %v1090_v38 = vpack.c.bf16 %v958_v35, %v957_v34  ;;  %v956_v39 = vmax.f32 %v944_v36, 0.0 }
 0x12d   :  { %1092 = vst [vmem:[%s1635_s3 + $0x8] sm:$0xff] %v1090_v38   ;;  %v1085_v40 = vpack.c.bf16 %v956_v39, %v955_v37 }
 0x12f   :  { %1086 = vst [vmem:[%s1635_s3] sm:$0xff] %v1085_v40  }

// kernel: extractor_forward.20
= control target key start
LH: loop header
LB: loop body
LE: loop exit
PB: predicated region body
PF: predicated region fallthrough
CT: control target
= control target key end

     0   :  { %s1667_s1 = inlined_call_operand.vmem [shape: bf16[1152,128], index: 1, kind: input, shape index: {}]   ;;  %s1668_s0 = inlined_call_operand.vmem [shape: bf16[32,1152], index: 0, kind: input, shape index: {}]   ;;  %s1669_s2 = inlined_call_operand.vmem [shape: f32[1,128], index: 2, kind: input, shape index: {}]   ;;  %s1670_s3 = inlined_call_operand.vmem [shape: bf16[32,128], index: 3, kind: input, shape index: {}]   ;;  %s1671_s4 = inlined_call_operand.vmem [shape: bf16[32,128], index: 4, kind: output, shape index: {}]  }
   0x1   :  { %v1259_v0 = vld [vmem:[%s1667_s1 + $0x78] sm:$0xff]   ;;  %v1263_v4 = vld [vmem:[%s1667_s1 + $0x70] sm:$0xff]   ;;  %v1267_v8 = vld [vmem:[%s1667_s1 + $0x68] sm:$0xff]  }
   0x2   :  { %v1260_v1 = vld [vmem:[%s1667_s1 + $0x38] sm:$0xff]   ;;  %1117 = vmatprep.subr.bf16.mxu0 %v1259_v0  ;;  %v1264_v5 = vld [vmem:[%s1667_s1 + $0x30] sm:$0xff]   ;;  %v1268_v9 = vld [vmem:[%s1667_s1 + $0x28] sm:$0xff]  }
   0x3   :  { %v1261_v2 = vld [vmem:[%s1667_s1 + $0xf8] sm:$0xff]   ;;  %1118 = vmatpush3.bf16.msra.mxu0 %v1260_v1  ;;  %v1265_v6 = vld [vmem:[%s1667_s1 + $0xf0] sm:$0xff]   ;;  %v1269_v10 = vld [vmem:[%s1667_s1 + $0xe8] sm:$0xff]  }
   0x4   :  { %v1262_v3 = vld [vmem:[%s1667_s1 + $0xb8] sm:$0xff]   ;;  %1145 = vmatprep.subr.bf16.mxu1 %v1261_v2  ;;  %1119 = vmatprep.subr.bf16.mxu0 %v1263_v4  ;;  %v1266_v7 = vld [vmem:[%s1667_s1 + $0xb0] sm:$0xff]   ;;  %v1270_v11 = vld [vmem:[%s1667_s1 + $0xa8] sm:$0xff]  }
   0x5   :  { %1146 = vmatpush3.bf16.msra.mxu1 %v1262_v3  ;;  %v1271_v12 = vld [vmem:[%s1667_s1 + $0x60] sm:$0xff]   ;;  %v1275_v16 = vld [vmem:[%s1667_s1 + $0x58] sm:$0xff]   ;;  %v1279_v20 = vld [vmem:[%s1667_s1 + $0x50] sm:$0xff]  }
   0x6   :  { %1147 = vmatprep.subr.bf16.mxu1 %v1265_v6  ;;  %v1272_v13 = vld [vmem:[%s1667_s1 + $0x20] sm:$0xff]   ;;  %v1276_v17 = vld [vmem:[%s1667_s1 + $0x18] sm:$0xff]   ;;  %v1280_v21 = vld [vmem:[%s1667_s1 + $0x10] sm:$0xff]  }
   0x7   :  { %1120 = vmatpush3.bf16.msra.mxu0 %v1264_v5  ;;  %v1273_v14 = vld [vmem:[%s1667_s1 + $0xe0] sm:$0xff]   ;;  %v1277_v18 = vld [vmem:[%s1667_s1 + $0xd8] sm:$0xff]   ;;  %v1281_v22 = vld [vmem:[%s1667_s1 + $0xd0] sm:$0xff]  }
   0x8   :  { %1121 = vmatprep.subr.bf16.mxu0 %v1267_v8  ;;  %v1274_v15 = vld [vmem:[%s1667_s1 + $0xa0] sm:$0xff]   ;;  %v1278_v19 = vld [vmem:[%s1667_s1 + $0x98] sm:$0xff]   ;;  %v1282_v23 = vld [vmem:[%s1667_s1 + $0x90] sm:$0xff]  }
   0x9   :  { %1148 = vmatpush3.bf16.msra.mxu1 %v1266_v7  ;;  %v1283_v24 = vld [vmem:[%s1667_s1 + $0x48] sm:$0xff]   ;;  %v1287_v28 = vld [vmem:[%s1667_s1 + $0x40] sm:$0xff]   ;;  %v1294_v34 = vld [vmem:[%s1667_s1 + $0x178] sm:$0xff]  }
   0xa   :  { %1149 = vmatprep.subr.bf16.mxu1 %v1269_v10  ;;  %v1284_v25 = vld [vmem:[%s1667_s1 + $0x8] sm:$0xff]   ;;  %v1288_v29 = vld [vmem:[%s1667_s1] sm:$0xff]   ;;  %v1298_v37 = vld [vmem:[%s1667_s1 + $0x138] sm:$0xff]  }
   0xb   :  { %1122 = vmatpush3.bf16.msra.mxu0 %v1268_v9  ;;  %v1285_v26 = vld [vmem:[%s1667_s1 + $0xc8] sm:$0xff]   ;;  %v1289_v30 = vld [vmem:[%s1667_s1 + $0xc0] sm:$0xff]   ;;  %v1299_v38 = vld [vmem:[%s1667_s1 + $0x1f8] sm:$0xff]  }
   0xc   :  { %1123 = vmatprep.subr.bf16.mxu0 %v1271_v12  ;;  %v1286_v27 = vld [vmem:[%s1667_s1 + $0x88] sm:$0xff]   ;;  %v1290_v31 = vld [vmem:[%s1668_s0] ss:$36 sps:$4 sm:$0xff]   ;;  %v1300_v39 = vld [vmem:[%s1667_s1 + $0x1b8] sm:$0xff]  }
   0xd   :  { %1150 = vmatpush3.bf16.msra.mxu1 %v1270_v11  ;;  %v1292_v32 = vld [vmem:[%s1668_s0 + $0x4] ss:$36 sps:$4 sm:$0xff]   ;;  %v1297_v36 = vld [vmem:[%s1668_s0 + $0xc] ss:$36 sps:$4 sm:$0xff]   ;;  %v1313_v52 = vld [vmem:[%s1667_s1 + $0x158] sm:$0xff]  }
   0xe   :  { %1151 = vmatprep.subr.bf16.mxu1 %v1273_v14  ;;  %v1293_v33 = vld [vmem:[%s1667_s1 + $0x80] sm:$0xff]   ;;  %745 = vmatprep.mubr.bf16.mxu0 %v1292_v32  ;;  %v1295_v35 = vld [vmem:[%s1668_s0 + $0x8] ss:$36 sps:$4 sm:$0xff]   ;;  %v1301_v40 = vld [vmem:[%s1667_s1 + $0x170] sm:$0xff]  }
   0xf   :  { %1124 = vmatpush3.bf16.msra.mxu0 %v1272_v13  ;;  %794 = vmatprep.mubr.bf16.mxu1 %v1297_v36  ;;  %v1302_v41 = vld [vmem:[%s1667_s1 + $0x130] sm:$0xff]   ;;  %v1305_v44 = vld [vmem:[%s1667_s1 + $0x168] sm:$0xff]   ;;  %v1309_v48 = vld [vmem:[%s1667_s1 + $0x160] sm:$0xff]  }
  0x10   :  { %1125 = vmatprep.subr.bf16.mxu0 %v1275_v16  ;;  %v1303_v42 = vld [vmem:[%s1667_s1 + $0x1f0] sm:$0xff]   ;;  %v1306_v45 = vld [vmem:[%s1667_s1 + $0x128] sm:$0xff]   ;;  %v1310_v49 = vld [vmem:[%s1667_s1 + $0x120] sm:$0xff]  }
  0x11   :  { %1152 = vmatpush3.bf16.msra.mxu1 %v1274_v15  ;;  %v1304_v43 = vld [vmem:[%s1667_s1 + $0x1b0] sm:$0xff]   ;;  %v1307_v46 = vld [vmem:[%s1667_s1 + $0x1e8] sm:$0xff]   ;;  %v1311_v50 = vld [vmem:[%s1667_s1 + $0x1e0] sm:$0xff]  }
  0x12   :  { %1153 = vmatprep.subr.bf16.mxu1 %v1277_v18  ;;  %v1308_v47 = vld [vmem:[%s1667_s1 + $0x1a8] sm:$0xff]   ;;  %v1312_v51 = vld [vmem:[%s1667_s1 + $0x1a0] sm:$0xff]   ;;  %v1314_v53 = vld [vmem:[%s1667_s1 + $0x118] sm:$0xff]  }
  0x13   :  { %1126 = vmatpush3.bf16.msra.mxu0 %v1276_v17  ;;  %v1315_v54 = vld [vmem:[%s1668_s0 + $0x4c] ss:$36 sps:$4 sm:$0xff]   ;;  %v1317_v55 = vld [vmem:[%s1667_s1 + $0x1d8] sm:$0xff]   ;;  %v1331_v4 = vld [vmem:[%s1667_s1 + $0x140] sm:$0xff]  }
  0x14   :  { %1127 = vmatprep.subr.bf16.mxu0 %v1279_v20  ;;  %v1318_v56 = vld [vmem:[%s1668_s0 + $0x48] ss:$36 sps:$4 sm:$0xff]   ;;  %v1319_v57 = vld [vmem:[%s1667_s1 + $0x198] sm:$0xff]   ;;  %v1322_v59 = vld [vmem:[%s1667_s1 + $0x150] sm:$0xff]  }
  0x15   :  { %1154 = vmatpush3.bf16.msra.mxu1 %v1278_v19  ;;  %v1320_v58 = vld [vmem:[%s1668_s0 + $0x54] ss:$36 sps:$4 sm:$0xff]   ;;  %v1327_v0 = vld [vmem:[%s1667_s1 + $0x148] sm:$0xff]   ;;  %v1332_v5 = vld [vmem:[%s1667_s1 + $0x100] sm:$0xff]  }
  0x16   :  { %1155 = vmatprep.subr.bf16.mxu1 %v1281_v22  ;;  %v1323_v60 = vld [vmem:[%s1668_s0 + $0x50] ss:$36 sps:$4 sm:$0xff]   ;;  %v1328_v1 = vld [vmem:[%s1667_s1 + $0x108] sm:$0xff]   ;;  %v1333_v6 = vld [vmem:[%s1667_s1 + $0x1c0] sm:$0xff]  }
  0x17   :  { %1128 = vmatpush3.bf16.msra.mxu0 %v1280_v21  ;;  %v1324_v61 = vld [vmem:[%s1667_s1 + $0x110] sm:$0xff]   ;;  %v1329_v2 = vld [vmem:[%s1667_s1 + $0x1c8] sm:$0xff]   ;;  %v1337_v9 = vld [vmem:[%s1667_s1 + $0x180] sm:$0xff]  }
  0x18   :  { %1129 = vmatprep.subr.bf16.mxu0 %v1283_v24  ;;  %v1325_v62 = vld [vmem:[%s1667_s1 + $0x1d0] sm:$0xff]   ;;  %v1330_v3 = vld [vmem:[%s1667_s1 + $0x188] sm:$0xff]   ;;  %v1338_v10 = vld [vmem:[%s1667_s1 + $0x238] sm:$0xff]  }
  0x19   :  { %1156 = vmatpush3.bf16.msra.mxu1 %v1282_v23  ;;  %v1326_v63 = vld [vmem:[%s1667_s1 + $0x190] sm:$0xff]   ;;  %v1339_v11 = vld [vmem:[%s1668_s0 + $0x18] ss:$36 sps:$4 sm:$0xff]   ;;  %v1346_v16 = vld [vmem:[%s1667_s1 + $0x228] sm:$0xff]  }
  0x1a   :  { %1157 = vmatprep.subr.bf16.mxu1 %v1285_v26  ;;  %v1334_v7 = vld [vmem:[%s1668_s0 + $0x10] ss:$36 sps:$4 sm:$0xff]   ;;  %v1341_v12 = vld [vmem:[%s1668_s0 + $0x1c] ss:$36 sps:$4 sm:$0xff]   ;;  %v1347_v17 = vld [vmem:[%s1668_s0 + $0x64] ss:$36 sps:$4 sm:$0xff]  }
  0x1b   :  { %1130 = vmatpush3.bf16.msra.mxu0 %v1284_v25  ;;  %v1336_v8 = vld [vmem:[%s1668_s0 + $0x14] ss:$36 sps:$4 sm:$0xff]   ;;  %v1343_v14 = vld [vmem:[%s1668_s0 + $0x5c] ss:$36 sps:$4 sm:$0xff]   ;;  %v1353_v23 = vld [vmem:[%s1667_s1 + $0x208] sm:$0xff]  }
  0x1c   :  { %1131 = vmatprep.subr.bf16.mxu0 %v1287_v28  ;;  %v1342_v13 = vld [vmem:[%s1667_s1 + $0x230] sm:$0xff]   ;;  %v1345_v15 = vld [vmem:[%s1668_s0 + $0x58] ss:$36 sps:$4 sm:$0xff]   ;;  %v1349_v18 = vld [vmem:[%s1668_s0 + $0x60] ss:$36 sps:$4 sm:$0xff]  }
  0x1d   :  { %1158 = vmatpush3.bf16.msra.mxu1 %v1286_v27  ;;  %v1350_v19 = vld [vmem:[%s1667_s1 + $0x220] sm:$0xff]   ;;  %v1351_v20 = vld [vmem:[%s1667_s1 + $0x218] sm:$0xff]   ;;  %v1352_v22 = vld [vmem:[%s1667_s1 + $0x210] sm:$0xff]  }
  0x1e   :  { %1159 = vmatprep.subr.bf16.mxu1 %v1289_v30  ;;  %v1355_v21 = vld [vmem:[%s1668_s0 + $0x20] ss:$36 sps:$4 sm:$0xff]   ;;  %v1356_v25 = vld [vmem:[%s1668_s0 + $0x68] ss:$36 sps:$4 sm:$0xff]  }
  0x1f   :  { %1132 = vmatpush3.bf16.msra.mxu0 %v1288_v29  ;;  %v1354_v24 = vld [vmem:[%s1667_s1 + $0x200] sm:$0xff]  }
  0x20   :  { %1173 = vmatprep.subr.bf16.mxu0 %v1294_v34 }
  0x21   :  { %1160 = vmatpush3.bf16.msra.mxu1 %v1293_v33 }
  0x22   :  { %746 = vmatmul.mubr.bf16.vlgmr.msra.gmra.mxu0 %v1290_v31  ;;  %1201 = vmatprep.subr.bf16.mxu1 %v1299_v38 }
  0x23   :  { %1174 = vmatpush3.bf16.msra.mxu0 %v1298_v37  ;;  %753 = vmatprep.mubr.bf16.mxu0 %v1315_v54 }
  0x24   :  { %795 = vmatmul.mubr.bf16.vlgmr.msra.gmra.mxu1 %v1295_v35  ;;  %1175 = vmatprep.subr.bf16.mxu0 %v1301_v40 }
  0x25   :  { %1202 = vmatpush3.bf16.msra.mxu1 %v1300_v39  ;;  %802 = vmatprep.mubr.bf16.mxu1 %v1320_v58 }
  0x26   :  { %1203 = vmatprep.subr.bf16.mxu1 %v1303_v42 }
  0x27   :  { %1176 = vmatpush3.bf16.msra.mxu0 %v1302_v41 }
  0x28   :  { %1177 = vmatprep.subr.bf16.mxu0 %v1305_v44 }
  0x29   :  { %1204 = vmatpush3.bf16.msra.mxu1 %v1304_v43 }
  0x2a   :  { %1205 = vmatprep.subr.bf16.mxu1 %v1307_v46  ;;  %754 = vmatmul.mubr.bf16.gmra.mxu0 %v1318_v56 }
  0x2b   :  { %1178 = vmatpush3.bf16.msra.mxu0 %v1306_v45  ;;  %843 = vmatprep.mubr.bf16.mxu0 %v1336_v8 }
  0x2c   :  { %1179 = vmatprep.subr.bf16.mxu0 %v1309_v48  ;;  %803 = vmatmul.mubr.bf16.gmra.mxu1 %v1323_v60 }
  0x2d   :  { %1206 = vmatpush3.bf16.msra.mxu1 %v1308_v47  ;;  %892 = vmatprep.mubr.bf16.mxu1 %v1341_v12 }
  0x2e   :  { %1207 = vmatprep.subr.bf16.mxu1 %v1311_v50 }
  0x2f   :  { %1180 = vmatpush3.bf16.msra.mxu0 %v1310_v49 }
  0x30   :  { %1181 = vmatprep.subr.bf16.mxu0 %v1313_v52 }
  0x31   :  { %1208 = vmatpush3.bf16.msra.mxu1 %v1312_v51 }
  0x32   :  { %1209 = vmatprep.subr.bf16.mxu1 %v1317_v55  ;;  %v998_v55 = vld [vmem:[%s1669_s2] ss:$0 sm:$0xff] }
  0x33   :  { %1182 = vmatpush3.bf16.msra.mxu0 %v1314_v53 }
  0x34   :  { %1183 = vmatprep.subr.bf16.mxu0 %v1322_v59 }
  0x35   :  { %1210 = vmatpush3.bf16.msra.mxu1 %v1319_v57 }
  0x36   :  { %1211 = vmatprep.subr.bf16.mxu1 %v1325_v62 }
  0x37   :  { %1184 = vmatpush3.bf16.msra.mxu0 %v1324_v61 }
  0x38   :  { %1185 = vmatprep.subr.bf16.mxu0 %v1327_v0 }
  0x39   :  { %1212 = vmatpush3.bf16.msra.mxu1 %v1326_v63 }
  0x3a   :  { %1213 = vmatprep.subr.bf16.mxu1 %v1329_v2 }
  0x3b   :  { %1186 = vmatpush3.bf16.msra.mxu0 %v1328_v1 }
  0x3c   :  { %1187 = vmatprep.subr.bf16.mxu0 %v1331_v4 }
  0x3d   :  { %1214 = vmatpush3.bf16.msra.mxu1 %v1330_v3 }
  0x3e   :  { %1215 = vmatprep.subr.bf16.mxu1 %v1333_v6 }
  0x3f   :  { %1188 = vmatpush3.bf16.msra.mxu0 %v1332_v5 }
  0x40   :  { %1239 = vmatprep.subr.bf16.mxu0 %v1338_v10 }
  0x41   :  { %1216 = vmatpush3.bf16.msra.mxu1 %v1337_v9 }
  0x42   :  { %844 = vmatmul.mubr.bf16.vlgmr.msra.gmra.mxu0 %v1334_v7 }
  0x43   :  { %1240 = vmatpush3.bf16.msra.mxu0 %v1338_v10  ;;  %851 = vmatprep.mubr.bf16.mxu0 %v1343_v14 }
  0x44   :  { %893 = vmatmul.mubr.bf16.vlgmr.msra.gmra.mxu1 %v1339_v11  ;;  %1241 = vmatprep.subr.bf16.mxu0 %v1342_v13 }
  0x45   :  { %900 = vmatprep.mubr.bf16.mxu1 %v1347_v17 }
  0x47   :  { %1242 = vmatpush3.bf16.msra.mxu0 %v1342_v13 }
  0x48   :  { %1243 = vmatprep.subr.bf16.mxu0 %v1346_v16 }
  0x4a   :  { %852 = vmatmul.mubr.bf16.gmra.mxu0 %v1345_v15 }
  0x4b   :  { %1244 = vmatpush3.bf16.msra.mxu0 %v1346_v16  ;;  %1255 = vmatprep.mubr.bf16.mxu0 %v1355_v21 }
  0x4c   :  { %901 = vmatmul.mubr.bf16.gmra.mxu1 %v1349_v18  ;;  %1245 = vmatprep.subr.bf16.mxu0 %v1350_v19  ;;  %v1115_v18 = vld [vmem:[%s1670_s3 + $0x8] sm:$0xff]  }
  0x4f   :  { %1246 = vmatpush3.bf16.msra.mxu0 %v1350_v19 }
  0x50   :  { %1247 = vmatprep.subr.bf16.mxu0 %v1351_v20 }
  0x53   :  { %1248 = vmatpush3.bf16.msra.mxu0 %v1351_v20 }
  0x54   :  { %1249 = vmatprep.subr.bf16.mxu0 %v1352_v22 }
  0x57   :  { %1250 = vmatpush3.bf16.msra.mxu0 %v1352_v22 }
  0x58   :  { %1251 = vmatprep.subr.bf16.mxu0 %v1353_v23 }
  0x5b   :  { %1252 = vmatpush3.bf16.msra.mxu0 %v1353_v23 }
  0x5c   :  { %1253 = vmatprep.subr.bf16.mxu0 %v1354_v24 }
  0x5f   :  { %1254 = vmatpush3.bf16.msra.mxu0 %v1354_v24  ;;  %v1103_v24 = vunpack.c.l.bf16 %v1115_v18 }
  0x62   :  { %1256 = vmatmul.mubr.bf16.vlgmr.msra.gmra.mxu0 %v1356_v25  ;;  %v1098_v25 = vld [vmem:[%s1670_s3] sm:$0xff]  }
  0xe2   :  { %v1133_v26 = vpop.f32.mrf.mxu0 }
  0xe4   :  { %v1161_v27 = vpop.f32.mrf.mxu1  ;;  %v1134_v28 = vpop.f32.mrf.mxu0 }
  0xe5   :  { %v1135_v54 = vadd.f32 %v1134_v28, %v1133_v26 }
  0xe6   :  { %v1162_v29 = vpop.f32.mrf.mxu1  ;;  %v1136_v30 = vpop.f32.mrf.mxu0 }
  0xe7   :  { %v748_v61 = vadd.f32 %v1135_v54, %v998_v55  ;;  %v1163_v62 = vadd.f32 %v1162_v29, %v1161_v27 }
  0xe8   :  { %v1164_v31 = vpop.f32.mrf.mxu1  ;;  %v1137_v32 = vpop.f32.mrf.mxu0 }
  0xe9   :  { %v1138_v63 = vadd.f32 %v1137_v32, %v1136_v30  ;;  %v797_v7 = vadd.f32 %v1163_v62, %v748_v61  ;;  %v1099_v32 = vunpack.c.l.bf16 %v1098_v25 }
  0xea   :  { %v1139_v33 = vpop.f32.mrf.mxu0  ;;  %v1165_v34 = vpop.f32.mrf.mxu1 }
  0xeb   :  { %v751_v8 = vadd.f32 %v1138_v63, %v998_v55  ;;  %v1166_v9 = vadd.f32 %v1165_v34, %v1164_v31  ;;  %v1104_v34 = vunpack.c.h.bf16 %v1115_v18 }
  0xec   :  { %v1167_v35 = vpop.f32.mrf.mxu1  ;;  %v1140_v36 = vpop.f32.mrf.mxu0 }
  0xed   :  { %v1141_v53 = vadd.f32 %v1140_v36, %v1139_v33  ;;  %v800_v19 = vadd.f32 %v1166_v9, %v751_v8 }
  0xee   :  { %v1168_v37 = vpop.f32.mrf.mxu1  ;;  %v1142_v38 = vpop.f32.mrf.mxu0 }
  0xef   :  { %v756_v58 = vadd.f32 %v1141_v53, %v998_v55  ;;  %v1169_v59 = vadd.f32 %v1168_v37, %v1167_v35 }
  0xf0   :  { %v1170_v39 = vpop.f32.mrf.mxu1  ;;  %v1143_v40 = vpop.f32.mrf.mxu0 }
  0xf1   :  { %v1144_v60 = vadd.f32 %v1143_v40, %v1142_v38  ;;  %v805_v3 = vadd.f32 %v1169_v59, %v756_v58 }
  0xf2   :  { %v1171_v42 = vpop.f32.mrf.mxu1 }
  0xf3   :  { %v759_v4 = vadd.f32 %v1144_v60, %v998_v55  ;;  %v1172_v5 = vadd.f32 %v1171_v42, %v1170_v39  ;;  %v1100_v39 = vunpack.c.h.bf16 %v1098_v25 }
  0xf5   :  { %v808_v14 = vadd.f32 %v1172_v5, %v759_v4 }
 0x102   :  { %v1189_v41 = vpop.f32.mrf.mxu0 }
 0x104   :  { %v1190_v43 = vpop.f32.mrf.mxu0  ;;  %v1217_v44 = vpop.f32.mrf.mxu1 }
 0x105   :  { %v1191_v6 = vadd.f32 %v1190_v43, %v1189_v41 }
 0x106   :  { %v1192_v45 = vpop.f32.mrf.mxu0  ;;  %v1218_v46 = vpop.f32.mrf.mxu1 }
 0x107   :  { %v846_v15 = vadd.f32 %v1191_v6, %v797_v7  ;;  %v1219_v16 = vadd.f32 %v1218_v46, %v1217_v44 }
 0x108   :  { %v1193_v47 = vpop.f32.mrf.mxu0  ;;  %v1220_v48 = vpop.f32.mrf.mxu1 }
 0x109   :  { %v1194_v17 = vadd.f32 %v1193_v47, %v1192_v45  ;;  %v895_v29 = vadd.f32 %v1219_v16, %v846_v15 }
 0x10a   :  { %v1195_v49 = vpop.f32.mrf.mxu0  ;;  %v1221_v50 = vpop.f32.mrf.mxu1 }
 0x10b   :  { %v849_v26 = vadd.f32 %v1194_v17, %v800_v19  ;;  %v1222_v27 = vadd.f32 %v1221_v50, %v1220_v48 }
 0x10c   :  { %v1196_v51 = vpop.f32.mrf.mxu0  ;;  %v1223_v52 = vpop.f32.mrf.mxu1 }
 0x10d   :  { %v1197_v0 = vadd.f32 %v1196_v51, %v1195_v49  ;;  %v898_v38 = vadd.f32 %v1222_v27, %v849_v26 }
 0x10e   :  { %v1198_v56 = vpop.f32.mrf.mxu0  ;;  %v1224_v57 = vpop.f32.mrf.mxu1 }
 0x10f   :  { %v854_v10 = vadd.f32 %v1197_v0, %v805_v3  ;;  %v1225_v11 = vadd.f32 %v1224_v57, %v1223_v52 }
 0x110   :  { %v1199_v1 = vpop.f32.mrf.mxu0  ;;  %v1226_v2 = vpop.f32.mrf.mxu1 }
 0x111   :  { %v1200_v12 = vadd.f32 %v1199_v1, %v1198_v56  ;;  %v903_v22 = vadd.f32 %v1225_v11, %v854_v10 }
 0x112   :  { %v1227_v13 = vpop.f32.mrf.mxu1 }
 0x113   :  { %v857_v20 = vadd.f32 %v1200_v12, %v808_v14  ;;  %v1228_v21 = vadd.f32 %v1227_v13, %v1226_v2 }
 0x115   :  { %v906_v33 = vadd.f32 %v1228_v21, %v857_v20 }
 0x122   :  { %v1257_v23 = vpop.f32.mrf.mxu0 }
 0x123   :  { %v952_v28 = vadd.f32 %v1257_v23, %v903_v22 }
 0x124   :  { %v943_v30 = vpop.f32.mrf.mxu0 }
 0x125   :  { %v944_v31 = vadd.f32 %v943_v30, %v895_v29  ;;  %v968_v36 = vadd.f32 %v1103_v24, %v952_v28 }
 0x126   :  { %v1258_v35 = vpop.f32.mrf.mxu0 }
 0x127   :  { %v955_v37 = vadd.f32 %v1258_v35, %v906_v33  ;;  %v966_v41 = vadd.f32 %v1099_v32, %v944_v31  ;;  %v972_v44 = vmax.f32 %v968_v36, 0.0 }
 0x128   :  { %v946_v40 = vpop.f32.mrf.mxu0 }
 0x129   :  { %v969_v42 = vadd.f32 %v1104_v34, %v955_v37  ;;  %v947_v43 = vadd.f32 %v946_v40, %v898_v38  ;;  %v970_v47 = vmax.f32 %v966_v41, 0.0 }
 0x12b   :  { %v973_v45 = vmax.f32 %v969_v42, 0.0  ;;  %v967_v46 = vadd.f32 %v1100_v39, %v947_v43 }
 0x12d   :  { %v1113_v48 = vpack.c.bf16 %v973_v45, %v972_v44  ;;  %v971_v49 = vmax.f32 %v967_v46, 0.0 }
 0x12f   :  { %1116 = vst [vmem:[%s1671_s4 + $0x8] sm:$0xff] %v1113_v48   ;;  %v1108_v50 = vpack.c.bf16 %v971_v49, %v970_v47 }
 0x131   :  { %1109 = vst [vmem:[%s1671_s4] sm:$0xff] %v1108_v50  }

</bundles_post_ra>
